<compile_context>
chip_gen: v7x
topology: tpu7x:2x2x1
jax: 0.10.0
libtpu: 0.0.40
codegen_flags: <defaults>
</compile_context>

<pallas_src>
import functools

import numpy as np
import jax
import jax.numpy as jnp
from jax.experimental import pallas as pl
from jax.experimental.pallas import tpu as pltpu

EPS = 1e-5  # nn.InstanceNorm2d default


# ------------------------------------------------------------------ kernel ---

def _in_norm(y, inv_n, relu):
    """One-pass instance norm over axis 0 of a (H*W, C) f32 tile (+ optional ReLU)."""
    mean = jnp.sum(y, axis=0, keepdims=True) * inv_n
    ex2 = jnp.sum(y * y, axis=0, keepdims=True) * inv_n
    var = jnp.maximum(ex2 - mean * mean, 0.0)
    y = (y - mean) * jax.lax.rsqrt(var + EPS)
    if relu:
        y = jnp.maximum(y, 0.0)
    return y


def _bottleneck_kernel(*refs, H, W, has_downsample, compute_dtype):
    if has_downsample:
        (x_ref, w1_ref, b1_ref, w2_ref, b2_ref, w3_ref, b3_ref,
         wd_ref, bd_ref, o_ref, big_scr) = refs
    else:
        (x_ref, w1_ref, b1_ref, w2_ref, b2_ref, w3_ref, b3_ref,
         o_ref, big_scr) = refs
        wd_ref = bd_ref = None

    HW = H * W
    Cmid = w1_ref.shape[1]
    inv_n = 1.0 / HW

    x2d = x_ref[0]                                   # (HW, Cin), compute_dtype

    # ---- conv1 (1x1) + instance-norm + ReLU ---------------------------------
    y1 = jnp.dot(x2d, w1_ref[...], preferred_element_type=jnp.float32)
    y1 = _in_norm(y1 + b1_ref[...], inv_n, relu=True)          # f32 (HW, Cmid)
    y1_img = y1.reshape(H, W, Cmid)

    # ---- build zero-halo, dy-stacked scratch for the 3x3 conv ---------------
    # big_scr[h, w', dy*Cmid + c] = out1_padded[h + dy - 1, w' - 1, c]
    big_scr[...] = jnp.zeros_like(big_scr)
    big_scr[1:H, 1:W + 1, 0:Cmid] = y1_img[0:H - 1]             # dy = 0
    big_scr[0:H, 1:W + 1, Cmid:2 * Cmid] = y1_img               # dy = 1
    big_scr[0:H - 1, 1:W + 1, 2 * Cmid:3 * Cmid] = y1_img[1:H]  # dy = 2

    # ---- conv2 (3x3, pad=1): 3 matmuls with K = 3*Cmid ----------------------
    acc = jnp.zeros((HW, Cmid), jnp.float32)
    for dx in range(3):                               # only 3 sublane slices
        taps = big_scr[:, dx:dx + W, :].reshape(HW, 3 * Cmid).astype(compute_dtype)
        acc = acc + jnp.dot(taps, w2_ref[dx], preferred_element_type=jnp.float32)
    y2 = _in_norm(acc + b2_ref[...], inv_n, relu=True).astype(compute_dtype)

    # ---- conv3 (1x1) + instance-norm ----------------------------------------
    y3 = jnp.dot(y2, w3_ref[...], preferred_element_type=jnp.float32)
    y3 = _in_norm(y3 + b3_ref[...], inv_n, relu=False)

    # ---- identity / downsample + residual add + ReLU ------------------------
    if has_downsample:
        ident = jnp.dot(x2d, wd_ref[...], preferred_element_type=jnp.float32)
        ident = ident + bd_ref[...]
    else:
        ident = x2d.astype(jnp.float32)
    o_ref[0] = jnp.maximum(y3 + ident, 0.0).astype(o_ref.dtype)


# ----------------------------------------------------------------- wrapper ---

def bottleneck_forward(x_nchw, w1, b1, w2, b2, w3, b3, wd=None, bd=None,
                       stride=1, compute_dtype=jnp.float32):
    """Pallas implementation of Bottleneck.forward.

    Weights are in PyTorch OIHW layout; biases are 1-D (C,). wd/bd may be None
    when no downsample branch exists (then Cin must equal Cout).
    compute_dtype: dtype of the MXU matmul operands (use jnp.bfloat16 on v6e/v7x);
    instance-norm statistics and accumulation are always f32.
    """
    assert stride == 1  # TODO(synk): strided conv2 / downsample not implemented
    N, Cin, H, W = x_nchw.shape
    Cmid = w1.shape[0]
    Cout = w3.shape[0]
    has_ds = wd is not None
    if not has_ds:
        assert Cin == Cout, "identity add requires Cin == Cout when downsample is None"

    # NCHW -> NHWC -> (N, H*W, C) so every conv is a plain 2-D matmul
    x = jnp.transpose(x_nchw, (0, 2, 3, 1)).reshape(N, H * W, Cin).astype(compute_dtype)

    # repack weights for the kernel's matmul layout
    w1k = jnp.transpose(w1[:, :, 0, 0], (1, 0)).astype(compute_dtype)      # (Cin, Cmid)
    # (O, I, KH, KW) -> (KW=dx, KH=dy, I, O) -> (3, 3*Cmid, Cmid); K index = dy*Cmid + c
    w2k = jnp.transpose(w2, (3, 2, 1, 0)).reshape(3, 3 * Cmid, Cmid).astype(compute_dtype)
    w3k = jnp.transpose(w3[:, :, 0, 0], (1, 0)).astype(compute_dtype)      # (Cmid, Cout)
    b1k = b1.reshape(1, Cmid).astype(jnp.float32)
    b2k = b2.reshape(1, Cmid).astype(jnp.float32)
    b3k = b3.reshape(1, Cout).astype(jnp.float32)

    args = [x, w1k, b1k, w2k, b2k, w3k, b3k]
    in_specs = [
        pl.BlockSpec((1, H * W, Cin), lambda i: (i, 0, 0)),
        pl.BlockSpec((Cin, Cmid), lambda i: (0, 0)),
        pl.BlockSpec((1, Cmid), lambda i: (0, 0)),
        pl.BlockSpec((3, 3 * Cmid, Cmid), lambda i: (0, 0, 0)),
        pl.BlockSpec((1, Cmid), lambda i: (0, 0)),
        pl.BlockSpec((Cmid, Cout), lambda i: (0, 0)),
        pl.BlockSpec((1, Cout), lambda i: (0, 0)),
    ]
    if has_ds:
        wdk = jnp.transpose(wd[:, :, 0, 0], (1, 0)).astype(compute_dtype)  # (Cin, Cout)
        bdk = bd.reshape(1, Cout).astype(jnp.float32)
        args += [wdk, bdk]
        in_specs += [pl.BlockSpec((Cin, Cout), lambda i: (0, 0)),
                     pl.BlockSpec((1, Cout), lambda i: (0, 0))]

    kernel = functools.partial(_bottleneck_kernel, H=H, W=W,
                               has_downsample=has_ds, compute_dtype=compute_dtype)

    out = pl.pallas_call(
        kernel,
        out_shape=jax.ShapeDtypeStruct((N, H * W, Cout), jnp.float32),
        grid=(N,),
        in_specs=in_specs,
        out_specs=pl.BlockSpec((1, H * W, Cout), lambda i: (i, 0, 0)),
        scratch_shapes=[pltpu.VMEM((H, W + 2, 3 * Cmid), jnp.float32)],
        compiler_params=pltpu.CompilerParams(
            dimension_semantics=("parallel",)),
    )(*args)

    return jnp.transpose(out.reshape(N, H, W, Cout), (0, 3, 1, 2))  # NHWC -> NCHW


# ------------------------------------------------------- pure-JAX reference --

def bottleneck_ref(x, w1, b1, w2, b2, w3, b3, wd, bd):
    def conv(x, w, b, pad=0):
        y = jax.lax.conv_general_dilated(
            x, w, (1, 1), [(pad, pad), (pad, pad)],
            dimension_numbers=("NCHW", "OIHW", "NCHW"))
        return y + b[None, :, None, None]

    def inorm(x):
        m = x.mean(axis=(2, 3), keepdims=True)
        v = ((x - m) ** 2).mean(axis=(2, 3), keepdims=True)
        return (x - m) / jnp.sqrt(v + EPS)

    out = jax.nn.relu(inorm(conv(x, w1, b1)))
    out = jax.nn.relu(inorm(conv(out, w2, b2, pad=1)))
    out = inorm(conv(out, w3, b3))
    identity = conv(x, wd, bd) if wd is not None else x
    return jax.nn.relu(out + identity)


# --------------------------------------------------------------------- main --

if __name__ == "__main__":
    key = jax.random.PRNGKey(0)
    N, Cin, Cmid, Cout, H, W = 2, 4, 4, 8, 16, 16
    ks = jax.random.split(key, 11)

    x = jax.random.normal(ks[0], (N, Cin, H, W), jnp.float32)
    # deterministic synthetic parameters (PyTorch OIHW conv layout)
    w1 = jax.random.normal(ks[1], (Cmid, Cin, 1, 1), jnp.float32) * 0.2
    b1 = jax.random.normal(ks[2], (Cmid,), jnp.float32) * 0.1
    w2 = jax.random.normal(ks[3], (Cmid, Cmid, 3, 3), jnp.float32) * 0.2
    b2 = jax.random.normal(ks[4], (Cmid,), jnp.float32) * 0.1
    w3 = jax.random.normal(ks[5], (Cout, Cmid, 1, 1), jnp.float32) * 0.2
    b3 = jax.random.normal(ks[6], (Cout,), jnp.float32) * 0.1
    # downsample exists because in_planes != out_planes (stride == 1)
    wd = jax.random.normal(ks[7], (Cout, Cin, 1, 1), jnp.float32) * 0.2
    bd = jax.random.normal(ks[8], (Cout,), jnp.float32) * 0.1

    # 1) downsample path, f32 MXU operands — exact check
    out = jax.block_until_ready(
        bottleneck_forward(x, w1, b1, w2, b2, w3, b3, wd, bd, stride=1))
    ref = bottleneck_ref(x, w1, b1, w2, b2, w3, b3, wd, bd)
    np.testing.assert_allclose(np.asarray(out), np.asarray(ref), rtol=2e-3, atol=2e-3)

    # 2) downsample path, bf16 MXU operands (v6e/v7x fast path) — loose check
    out_bf16 = jax.block_until_ready(
        bottleneck_forward(x, w1, b1, w2, b2, w3, b3, wd, bd, stride=1,
                           compute_dtype=jnp.bfloat16))
    np.testing.assert_allclose(np.asarray(out_bf16), np.asarray(ref), rtol=1e-1, atol=1e-1)

    # 3) no-downsample (identity) path: Cin == Cout, wd is None
    x8 = jax.random.normal(ks[9], (N, Cout, H, W), jnp.float32)
    w1b = jax.random.normal(ks[10], (Cmid, Cout, 1, 1), jnp.float32) * 0.2
    out_id = jax.block_until_ready(
        bottleneck_forward(x8, w1b, b1, w2, b2, w3, b3, None, None, stride=1))
    ref_id = bottleneck_ref(x8, w1b, b1, w2, b2, w3, b3, None, None)
    np.testing.assert_allclose(np.asarray(out_id), np.asarray(ref_id), rtol=2e-3, atol=2e-3)

    print("KERNEL_OK")
</pallas_src>

<mosaic_0001>
module attributes {stable_mosaic.version = 11 : i64} {
  func.func @_bottleneck_kernel(%arg0: i32, %arg1: memref<1x256x4xf32, #tpu.memory_space<vmem>>, %arg2: memref<4x4xf32, #tpu.memory_space<vmem>>, %arg3: memref<1x4xf32, #tpu.memory_space<vmem>>, %arg4: memref<3x12x4xf32, #tpu.memory_space<vmem>>, %arg5: memref<1x4xf32, #tpu.memory_space<vmem>>, %arg6: memref<4x8xf32, #tpu.memory_space<vmem>>, %arg7: memref<1x8xf32, #tpu.memory_space<vmem>>, %arg8: memref<4x8xf32, #tpu.memory_space<vmem>>, %arg9: memref<1x8xf32, #tpu.memory_space<vmem>>, %arg10: memref<1x256x8xf32, #tpu.memory_space<vmem>>, %arg11: memref<16x18x12xf32, #tpu.memory_space<vmem>>) attributes {dimension_semantics = [#tpu.dimension_semantics<parallel>], iteration_bounds = array<i64: 2>, scalar_prefetch = 0 : i64, scratch_operands = 1 : i64, tpu.core_type = #tpu.core_type<tc>, window_params = [{transform_indices = @transform_0, window_bounds = array<i64: 1, 256, 4>}, {pipeline_mode = #tpu.pipeline_mode<synchronous>, transform_indices = @transform_1, window_bounds = array<i64: 4, 4>}, {pipeline_mode = #tpu.pipeline_mode<synchronous>, transform_indices = @transform_2, window_bounds = array<i64: 1, 4>}, {pipeline_mode = #tpu.pipeline_mode<synchronous>, transform_indices = @transform_3, window_bounds = array<i64: 3, 12, 4>}, {pipeline_mode = #tpu.pipeline_mode<synchronous>, transform_indices = @transform_4, window_bounds = array<i64: 1, 4>}, {pipeline_mode = #tpu.pipeline_mode<synchronous>, transform_indices = @transform_5, window_bounds = array<i64: 4, 8>}, {pipeline_mode = #tpu.pipeline_mode<synchronous>, transform_indices = @transform_6, window_bounds = array<i64: 1, 8>}, {pipeline_mode = #tpu.pipeline_mode<synchronous>, transform_indices = @transform_7, window_bounds = array<i64: 4, 8>}, {pipeline_mode = #tpu.pipeline_mode<synchronous>, transform_indices = @transform_8, window_bounds = array<i64: 1, 8>}, {transform_indices = @transform_9, window_bounds = array<i64: 1, 256, 8>}]} {
    %c0 = arith.constant 0 : index
    %c0_0 = arith.constant 0 : index
    %c0_1 = arith.constant 0 : index
    %0 = vector.load %arg1[%c0, %c0_0, %c0_1] : memref<1x256x4xf32, #tpu.memory_space<vmem>>, vector<1x256x4xf32>
    %1 = vector.shape_cast %0 : vector<1x256x4xf32> to vector<256x4xf32>
    %c0_2 = arith.constant 0 : index
    %c0_3 = arith.constant 0 : index
    %2 = vector.load %arg2[%c0_2, %c0_3] : memref<4x4xf32, #tpu.memory_space<vmem>>, vector<4x4xf32>
    %cst = arith.constant dense<0.000000e+00> : vector<256x4xf32>
    %3 = tpu.matmul %1, %2, %cst {dimension_numbers = #tpu.dot_dimension_numbers<[1], [0], [0], [1], [0, 0, 1, 1], [], []>} : vector<256x4xf32>, vector<4x4xf32>, vector<256x4xf32> -> vector<256x4xf32>
    %c0_4 = arith.constant 0 : index
    %c0_5 = arith.constant 0 : index
    %4 = vector.load %arg3[%c0_4, %c0_5] : memref<1x4xf32, #tpu.memory_space<vmem>>, vector<1x4xf32>
    %5 = vector.broadcast %4 : vector<1x4xf32> to vector<256x4xf32>
    %6 = arith.addf %3, %5 : vector<256x4xf32>
    %cst_6 = arith.constant dense<0.000000e+00> : vector<4xf32>
    %7 = vector.multi_reduction <add>, %6, %cst_6 [0] : vector<256x4xf32> to vector<4xf32>
    %8 = vector.shape_cast %7 : vector<4xf32> to vector<1x4xf32>
    %cst_7 = arith.constant 3.906250e-03 : f32
    %9 = vector.broadcast %cst_7 : f32 to vector<1x4xf32>
    %10 = arith.mulf %8, %9 : vector<1x4xf32>
    %11 = arith.mulf %6, %6 : vector<256x4xf32>
    %cst_8 = arith.constant dense<0.000000e+00> : vector<4xf32>
    %12 = vector.multi_reduction <add>, %11, %cst_8 [0] : vector<256x4xf32> to vector<4xf32>
    %13 = vector.shape_cast %12 : vector<4xf32> to vector<1x4xf32>
    %cst_9 = arith.constant 3.906250e-03 : f32
    %14 = vector.broadcast %cst_9 : f32 to vector<1x4xf32>
    %15 = arith.mulf %13, %14 : vector<1x4xf32>
    %16 = arith.mulf %10, %10 : vector<1x4xf32>
    %17 = arith.subf %15, %16 : vector<1x4xf32>
    %cst_10 = arith.constant 0.000000e+00 : f32
    %18 = vector.broadcast %cst_10 : f32 to vector<1x4xf32>
    %19 = arith.maximumf %17, %18 : vector<1x4xf32>
    %20 = vector.broadcast %10 : vector<1x4xf32> to vector<256x4xf32>
    %21 = arith.subf %6, %20 : vector<256x4xf32>
    %cst_11 = arith.constant 9.99999974E-6 : f32
    %22 = vector.broadcast %cst_11 : f32 to vector<1x4xf32>
    %23 = arith.addf %19, %22 : vector<1x4xf32>
    %24 = math.rsqrt %23 : vector<1x4xf32>
    %25 = vector.broadcast %24 : vector<1x4xf32> to vector<256x4xf32>
    %26 = arith.mulf %21, %25 : vector<256x4xf32>
    %cst_12 = arith.constant 0.000000e+00 : f32
    %27 = vector.broadcast %cst_12 : f32 to vector<256x4xf32>
    %28 = arith.maximumf %26, %27 : vector<256x4xf32>
    %29 = vector.shape_cast %28 : vector<256x4xf32> to vector<16x16x4xf32>
    %cst_13 = arith.constant 0.000000e+00 : f32
    %30 = vector.broadcast %cst_13 : f32 to vector<16x18x12xf32>
    %c0_14 = arith.constant 0 : index
    %c0_15 = arith.constant 0 : index
    %c0_16 = arith.constant 0 : index
    %31 = vector.load %arg11[%c0_14, %c0_15, %c0_16] : memref<16x18x12xf32, #tpu.memory_space<vmem>>, vector<16x18x12xf32>
    tpu.vector_store %arg11[%c0_14, %c0_15, %c0_16], %30 {strides = array<i32>} : memref<16x18x12xf32, #tpu.memory_space<vmem>>, vector<16x18x12xf32>,
    %32 = vector.extract_strided_slice %29 {offsets = [0, 0, 0], sizes = [15, 16, 4], strides = [1, 1, 1]} : vector<16x16x4xf32> to vector<15x16x4xf32>
    %c1 = arith.constant 1 : index
    %c1_17 = arith.constant 1 : index
    %c0_18 = arith.constant 0 : index
    %33 = vector.load %arg11[%c1, %c1_17, %c0_18] : memref<16x18x12xf32, #tpu.memory_space<vmem>>, vector<15x16x4xf32>
    tpu.vector_store %arg11[%c1, %c1_17, %c0_18], %32 {strides = array<i32>} : memref<16x18x12xf32, #tpu.memory_space<vmem>>, vector<15x16x4xf32>,
    %c0_19 = arith.constant 0 : index
    %c1_20 = arith.constant 1 : index
    %c4 = arith.constant 4 : index
    %34 = vector.load %arg11[%c0_19, %c1_20, %c4] : memref<16x18x12xf32, #tpu.memory_space<vmem>>, vector<16x16x4xf32>
    tpu.vector_store %arg11[%c0_19, %c1_20, %c4], %29 {strides = array<i32>} : memref<16x18x12xf32, #tpu.memory_space<vmem>>, vector<16x16x4xf32>,
    %35 = vector.extract_strided_slice %29 {offsets = [1, 0, 0], sizes = [15, 16, 4], strides = [1, 1, 1]} : vector<16x16x4xf32> to vector<15x16x4xf32>
    %c0_21 = arith.constant 0 : index
    %c1_22 = arith.constant 1 : index
    %c8 = arith.constant 8 : index
    %36 = vector.load %arg11[%c0_21, %c1_22, %c8] : memref<16x18x12xf32, #tpu.memory_space<vmem>>, vector<15x16x4xf32>
    tpu.vector_store %arg11[%c0_21, %c1_22, %c8], %35 {strides = array<i32>} : memref<16x18x12xf32, #tpu.memory_space<vmem>>, vector<15x16x4xf32>,
    %cst_23 = arith.constant 0.000000e+00 : f32
    %37 = vector.broadcast %cst_23 : f32 to vector<256x4xf32>
    %c0_24 = arith.constant 0 : index
    %c0_25 = arith.constant 0 : index
    %c0_26 = arith.constant 0 : index
    %38 = vector.load %arg11[%c0_24, %c0_25, %c0_26] : memref<16x18x12xf32, #tpu.memory_space<vmem>>, vector<16x16x12xf32>
    %39 = vector.shape_cast %38 : vector<16x16x12xf32> to vector<256x12xf32>
    %c0_27 = arith.constant 0 : index
    %c0_28 = arith.constant 0 : index
    %c0_29 = arith.constant 0 : index
    %40 = vector.load %arg4[%c0_27, %c0_28, %c0_29] : memref<3x12x4xf32, #tpu.memory_space<vmem>>, vector<1x12x4xf32>
    %41 = vector.shape_cast %40 : vector<1x12x4xf32> to vector<12x4xf32>
    %cst_30 = arith.constant dense<0.000000e+00> : vector<256x4xf32>
    %42 = tpu.matmul %39, %41, %cst_30 {dimension_numbers = #tpu.dot_dimension_numbers<[1], [0], [0], [1], [0, 0, 1, 1], [], []>} : vector<256x12xf32>, vector<12x4xf32>, vector<256x4xf32> -> vector<256x4xf32>
    %43 = arith.addf %37, %42 : vector<256x4xf32>
    %c0_31 = arith.constant 0 : index
    %c1_32 = arith.constant 1 : index
    %c0_33 = arith.constant 0 : index
    %44 = vector.load %arg11[%c0_31, %c1_32, %c0_33] : memref<16x18x12xf32, #tpu.memory_space<vmem>>, vector<16x16x12xf32>
    %45 = vector.shape_cast %44 : vector<16x16x12xf32> to vector<256x12xf32>
    %c1_34 = arith.constant 1 : index
    %c0_35 = arith.constant 0 : index
    %c0_36 = arith.constant 0 : index
    %46 = vector.load %arg4[%c1_34, %c0_35, %c0_36] : memref<3x12x4xf32, #tpu.memory_space<vmem>>, vector<1x12x4xf32>
    %47 = vector.shape_cast %46 : vector<1x12x4xf32> to vector<12x4xf32>
    %cst_37 = arith.constant dense<0.000000e+00> : vector<256x4xf32>
    %48 = tpu.matmul %45, %47, %cst_37 {dimension_numbers = #tpu.dot_dimension_numbers<[1], [0], [0], [1], [0, 0, 1, 1], [], []>} : vector<256x12xf32>, vector<12x4xf32>, vector<256x4xf32> -> vector<256x4xf32>
    %49 = arith.addf %43, %48 : vector<256x4xf32>
    %c0_38 = arith.constant 0 : index
    %c2 = arith.constant 2 : index
    %c0_39 = arith.constant 0 : index
    %50 = vector.load %arg11[%c0_38, %c2, %c0_39] : memref<16x18x12xf32, #tpu.memory_space<vmem>>, vector<16x16x12xf32>
    %51 = vector.shape_cast %50 : vector<16x16x12xf32> to vector<256x12xf32>
    %c2_40 = arith.constant 2 : index
    %c0_41 = arith.constant 0 : index
    %c0_42 = arith.constant 0 : index
    %52 = vector.load %arg4[%c2_40, %c0_41, %c0_42] : memref<3x12x4xf32, #tpu.memory_space<vmem>>, vector<1x12x4xf32>
    %53 = vector.shape_cast %52 : vector<1x12x4xf32> to vector<12x4xf32>
    %cst_43 = arith.constant dense<0.000000e+00> : vector<256x4xf32>
    %54 = tpu.matmul %51, %53, %cst_43 {dimension_numbers = #tpu.dot_dimension_numbers<[1], [0], [0], [1], [0, 0, 1, 1], [], []>} : vector<256x12xf32>, vector<12x4xf32>, vector<256x4xf32> -> vector<256x4xf32>
    %55 = arith.addf %49, %54 : vector<256x4xf32>
    %c0_44 = arith.constant 0 : index
    %c0_45 = arith.constant 0 : index
    %56 = vector.load %arg5[%c0_44, %c0_45] : memref<1x4xf32, #tpu.memory_space<vmem>>, vector<1x4xf32>
    %57 = vector.broadcast %56 : vector<1x4xf32> to vector<256x4xf32>
    %58 = arith.addf %55, %57 : vector<256x4xf32>
    %cst_46 = arith.constant dense<0.000000e+00> : vector<4xf32>
    %59 = vector.multi_reduction <add>, %58, %cst_46 [0] : vector<256x4xf32> to vector<4xf32>
    %60 = vector.shape_cast %59 : vector<4xf32> to vector<1x4xf32>
    %cst_47 = arith.constant 3.906250e-03 : f32
    %61 = vector.broadcast %cst_47 : f32 to vector<1x4xf32>
    %62 = arith.mulf %60, %61 : vector<1x4xf32>
    %63 = arith.mulf %58, %58 : vector<256x4xf32>
    %cst_48 = arith.constant dense<0.000000e+00> : vector<4xf32>
    %64 = vector.multi_reduction <add>, %63, %cst_48 [0] : vector<256x4xf32> to vector<4xf32>
    %65 = vector.shape_cast %64 : vector<4xf32> to vector<1x4xf32>
    %cst_49 = arith.constant 3.906250e-03 : f32
    %66 = vector.broadcast %cst_49 : f32 to vector<1x4xf32>
    %67 = arith.mulf %65, %66 : vector<1x4xf32>
    %68 = arith.mulf %62, %62 : vector<1x4xf32>
    %69 = arith.subf %67, %68 : vector<1x4xf32>
    %cst_50 = arith.constant 0.000000e+00 : f32
    %70 = vector.broadcast %cst_50 : f32 to vector<1x4xf32>
    %71 = arith.maximumf %69, %70 : vector<1x4xf32>
    %72 = vector.broadcast %62 : vector<1x4xf32> to vector<256x4xf32>
    %73 = arith.subf %58, %72 : vector<256x4xf32>
    %cst_51 = arith.constant 9.99999974E-6 : f32
    %74 = vector.broadcast %cst_51 : f32 to vector<1x4xf32>
    %75 = arith.addf %71, %74 : vector<1x4xf32>
    %76 = math.rsqrt %75 : vector<1x4xf32>
    %77 = vector.broadcast %76 : vector<1x4xf32> to vector<256x4xf32>
    %78 = arith.mulf %73, %77 : vector<256x4xf32>
    %cst_52 = arith.constant 0.000000e+00 : f32
    %79 = vector.broadcast %cst_52 : f32 to vector<256x4xf32>
    %80 = arith.maximumf %78, %79 : vector<256x4xf32>
    %c0_53 = arith.constant 0 : index
    %c0_54 = arith.constant 0 : index
    %81 = vector.load %arg6[%c0_53, %c0_54] : memref<4x8xf32, #tpu.memory_space<vmem>>, vector<4x8xf32>
    %cst_55 = arith.constant dense<0.000000e+00> : vector<256x8xf32>
    %82 = tpu.matmul %80, %81, %cst_55 {dimension_numbers = #tpu.dot_dimension_numbers<[1], [0], [0], [1], [0, 0, 1, 1], [], []>} : vector<256x4xf32>, vector<4x8xf32>, vector<256x8xf32> -> vector<256x8xf32>
    %c0_56 = arith.constant 0 : index
    %c0_57 = arith.constant 0 : index
    %83 = vector.load %arg7[%c0_56, %c0_57] : memref<1x8xf32, #tpu.memory_space<vmem>>, vector<1x8xf32>
    %84 = vector.broadcast %83 : vector<1x8xf32> to vector<256x8xf32>
    %85 = arith.addf %82, %84 : vector<256x8xf32>
    %cst_58 = arith.constant dense<0.000000e+00> : vector<8xf32>
    %86 = vector.multi_reduction <add>, %85, %cst_58 [0] : vector<256x8xf32> to vector<8xf32>
    %87 = vector.shape_cast %86 : vector<8xf32> to vector<1x8xf32>
    %cst_59 = arith.constant 3.906250e-03 : f32
    %88 = vector.broadcast %cst_59 : f32 to vector<1x8xf32>
    %89 = arith.mulf %87, %88 : vector<1x8xf32>
    %90 = arith.mulf %85, %85 : vector<256x8xf32>
    %cst_60 = arith.constant dense<0.000000e+00> : vector<8xf32>
    %91 = vector.multi_reduction <add>, %90, %cst_60 [0] : vector<256x8xf32> to vector<8xf32>
    %92 = vector.shape_cast %91 : vector<8xf32> to vector<1x8xf32>
    %cst_61 = arith.constant 3.906250e-03 : f32
    %93 = vector.broadcast %cst_61 : f32 to vector<1x8xf32>
    %94 = arith.mulf %92, %93 : vector<1x8xf32>
    %95 = arith.mulf %89, %89 : vector<1x8xf32>
    %96 = arith.subf %94, %95 : vector<1x8xf32>
    %cst_62 = arith.constant 0.000000e+00 : f32
    %97 = vector.broadcast %cst_62 : f32 to vector<1x8xf32>
    %98 = arith.maximumf %96, %97 : vector<1x8xf32>
    %99 = vector.broadcast %89 : vector<1x8xf32> to vector<256x8xf32>
    %100 = arith.subf %85, %99 : vector<256x8xf32>
    %cst_63 = arith.constant 9.99999974E-6 : f32
    %101 = vector.broadcast %cst_63 : f32 to vector<1x8xf32>
    %102 = arith.addf %98, %101 : vector<1x8xf32>
    %103 = math.rsqrt %102 : vector<1x8xf32>
    %104 = vector.broadcast %103 : vector<1x8xf32> to vector<256x8xf32>
    %105 = arith.mulf %100, %104 : vector<256x8xf32>
    %c0_64 = arith.constant 0 : index
    %c0_65 = arith.constant 0 : index
    %106 = vector.load %arg8[%c0_64, %c0_65] : memref<4x8xf32, #tpu.memory_space<vmem>>, vector<4x8xf32>
    %cst_66 = arith.constant dense<0.000000e+00> : vector<256x8xf32>
    %107 = tpu.matmul %1, %106, %cst_66 {dimension_numbers = #tpu.dot_dimension_numbers<[1], [0], [0], [1], [0, 0, 1, 1], [], []>} : vector<256x4xf32>, vector<4x8xf32>, vector<256x8xf32> -> vector<256x8xf32>
    %c0_67 = arith.constant 0 : index
    %c0_68 = arith.constant 0 : index
    %108 = vector.load %arg9[%c0_67, %c0_68] : memref<1x8xf32, #tpu.memory_space<vmem>>, vector<1x8xf32>
    %109 = vector.broadcast %108 : vector<1x8xf32> to vector<256x8xf32>
    %110 = arith.addf %107, %109 : vector<256x8xf32>
    %111 = arith.addf %105, %110 : vector<256x8xf32>
    %cst_69 = arith.constant 0.000000e+00 : f32
    %112 = vector.broadcast %cst_69 : f32 to vector<256x8xf32>
    %113 = arith.maximumf %111, %112 : vector<256x8xf32>
    %c0_70 = arith.constant 0 : index
    %c0_71 = arith.constant 0 : index
    %c0_72 = arith.constant 0 : index
    %114 = vector.load %arg10[%c0_70, %c0_71, %c0_72] : memref<1x256x8xf32, #tpu.memory_space<vmem>>, vector<1x256x8xf32>
    %115 = vector.shape_cast %114 : vector<1x256x8xf32> to vector<256x8xf32>
    %116 = vector.shape_cast %113 : vector<256x8xf32> to vector<1x256x8xf32>
    tpu.vector_store %arg10[%c0_70, %c0_71, %c0_72], %116 {strides = array<i32>} : memref<1x256x8xf32, #tpu.memory_space<vmem>>, vector<1x256x8xf32>,
    return
  }
  func.func @transform_0(%arg0: i32) -> (i32, i32, i32) {
    %c0_i32 = arith.constant 0 : i32
    %c0_i32_0 = arith.constant 0 : i32
    %c0_i32_1 = arith.constant 0 : i32
    return %arg0, %c0_i32, %c0_i32_0 : i32, i32, i32
  }
  func.func @transform_1(%arg0: i32) -> (i32, i32) {
    %c0_i32 = arith.constant 0 : i32
    %c0_i32_0 = arith.constant 0 : i32
    %c0_i32_1 = arith.constant 0 : i32
    return %c0_i32, %c0_i32_0 : i32, i32
  }
  func.func @transform_2(%arg0: i32) -> (i32, i32) {
    %c0_i32 = arith.constant 0 : i32
    %c0_i32_0 = arith.constant 0 : i32
    %c0_i32_1 = arith.constant 0 : i32
    return %c0_i32, %c0_i32_0 : i32, i32
  }
  func.func @transform_3(%arg0: i32) -> (i32, i32, i32) {
    %c0_i32 = arith.constant 0 : i32
    %c0_i32_0 = arith.constant 0 : i32
    %c0_i32_1 = arith.constant 0 : i32
    %c0_i32_2 = arith.constant 0 : i32
    return %c0_i32, %c0_i32_0, %c0_i32_1 : i32, i32, i32
  }
  func.func @transform_4(%arg0: i32) -> (i32, i32) {
    %c0_i32 = arith.constant 0 : i32
    %c0_i32_0 = arith.constant 0 : i32
    %c0_i32_1 = arith.constant 0 : i32
    return %c0_i32, %c0_i32_0 : i32, i32
  }
  func.func @transform_5(%arg0: i32) -> (i32, i32) {
    %c0_i32 = arith.constant 0 : i32
    %c0_i32_0 = arith.constant 0 : i32
    %c0_i32_1 = arith.constant 0 : i32
    return %c0_i32, %c0_i32_0 : i32, i32
  }
  func.func @transform_6(%arg0: i32) -> (i32, i32) {
    %c0_i32 = arith.constant 0 : i32
    %c0_i32_0 = arith.constant 0 : i32
    %c0_i32_1 = arith.constant 0 : i32
    return %c0_i32, %c0_i32_0 : i32, i32
  }
  func.func @transform_7(%arg0: i32) -> (i32, i32) {
    %c0_i32 = arith.constant 0 : i32
    %c0_i32_0 = arith.constant 0 : i32
    %c0_i32_1 = arith.constant 0 : i32
    return %c0_i32, %c0_i32_0 : i32, i32
  }
  func.func @transform_8(%arg0: i32) -> (i32, i32) {
    %c0_i32 = arith.constant 0 : i32
    %c0_i32_0 = arith.constant 0 : i32
    %c0_i32_1 = arith.constant 0 : i32
    return %c0_i32, %c0_i32_0 : i32, i32
  }
  func.func @transform_9(%arg0: i32) -> (i32, i32, i32) {
    %c0_i32 = arith.constant 0 : i32
    %c0_i32_0 = arith.constant 0 : i32
    %c0_i32_1 = arith.constant 0 : i32
    return %arg0, %c0_i32, %c0_i32_0 : i32, i32, i32
  }
}

</mosaic_0001>

<bundles_post_ra>
// kernel: tpu_custom_call.1
= control target key start
LH: loop header
LB: loop body
LE: loop exit
PB: predicated region body
PF: predicated region fallthrough
CT: control target
= control target key end

     0   :  { %s4636_s30 = smov 0   ;;  %s6628_s0 = inlined_call_operand.vmem [shape: f32[2,256,4], index: 0, kind: input, shape index: {}]   ;;  %s6629_s1 = inlined_call_operand.vmem [shape: f32[4,4], index: 1, kind: input, shape index: {}]   ;;  %s6630_s2 = inlined_call_operand.vmem [shape: f32[1,4], index: 2, kind: input, shape index: {}]   ;;  %s6631_s3 = inlined_call_operand.vmem [shape: f32[3,12,4], index: 3, kind: input, shape index: {}]   ;;  %s6632_s4 = inlined_call_operand.vmem [shape: f32[1,4], index: 4, kind: input, shape index: {}]   ;;  %s6633_s5 = inlined_call_operand.vmem [shape: f32[4,8], index: 5, kind: input, shape index: {}]   ;;  %s6634_s6 = inlined_call_operand.vmem [shape: f32[1,8], index: 6, kind: input, shape index: {}]   ;;  %s6635_s7 = inlined_call_operand.vmem [shape: f32[4,8], index: 7, kind: input, shape index: {}]   ;;  %s6636_s8 = inlined_call_operand.vmem [shape: f32[1,8], index: 8, kind: input, shape index: {}]   ;;  %s6637_s9 = inlined_call_operand.vmem [shape: f32[2,256,8], index: 9, kind: output, shape index: {}]  }
   0x1 LB: > { %s3716_s10 = sadd.s32 4294967295, %s4580_s30   ;;  %p3720_p0 = scmp.ge.s32.totalorder %s4580_s30, 1  ;;  %s4580_s30 = sphi %s4636_s30, %s19_s30  }
   0x2   : > { %p287_p1 = scmp.lt.s32.totalorder %s4580_s30, 3 }
   0x4   : > { %p288_p2 = pnand %p3720_p0, %p287_p1 }
   0x6   : > { %291 = sbr.rel (%p288_p2) target bundleno = 1326 (0x52e), region = 56 }
   0xd   : > { %v365_v0 = vld [vmem:[%s6629_s1] sm:$0xf]  ;;  %vm470_vm0 = vcmask 1043456   ;;  %p323_p3 = scmp.lt.s32.totalorder %s3716_s10, 1  ;;  %vm373_vm1 = vcmask 31744   ;;  %vm972_vm2 = vcmask 97280  }
   0xe   : > { %4136 = vmatprep.subr.msk.mxu0 %vm470_vm0, %v365_v0  ;;  %v4582_v33 = vmov 0.0   ;;  %vm975_vm3 = vcmask 91136   ;;  %v4774_v34 = vld [vmem:[%s6630_s2] ss:$0 sm:$0xff]  ;;  %s4583_s19 = smov 8   ;;  %s4584_s20 = smov 4  }
   0xf   : > { %4137 = vmatpush3.msk.msra.mxu0 %vm470_vm0, %v365_v0  ;;  %s6675_s10 = smov (!%p323_p3, %s3716_s10), 1  ;;  %973 = vst.msk [vmem:[#allocation2] sm:$0xff] %vm972_vm2, %v4582_v33  ;;  %974 = vst.msk [vmem:[#allocation2 + $0x8] sm:$0xff] %vm972_vm2, %v4582_v33  ;;  %vm4585_vm4 = vmmov 1   ;;  %vm1181_vm6 = vcmask 64544   ;;  %vm1304_vm7 = vcmask 97344  }
  0x10   : > { %s3933_s13 = sshll.u32 %s6675_s10, 8  ;;  %977 = vst.msk [vmem:[#allocation2 + $0x18] sm:$0xff] %vm972_vm2, %v4582_v33  ;;  %978 = vst.msk [vmem:[#allocation2 + $0x20] sm:$0xff] %vm972_vm2, %v4582_v33  ;;  %vm3087_vm8 = vcmask 64512  }
  0x11   : > { %s4657_s16 = scalar_lea.vmem %s6628_s0, %s3933_s13  ;;  %980 = vst.msk [vmem:[#allocation2 + $0x30] sm:$0xff] %vm972_vm2, %v4582_v33  ;;  %981 = vst.msk [vmem:[#allocation2 + $0x38] sm:$0xff] %vm972_vm2, %v4582_v33  ;;  %s6446_s27 = scalar_lea.vmem %s6637_s9, %s3933_s13 }
  0x12   : > { %v333_v1 = vld [vmem:[%s4657_s16] sm:$0xff]  ;;  %v334_v2 = vld [vmem:[%s4657_s16 + $0x8] sm:$0xff]  ;;  %v335_v3 = vld [vmem:[%s4657_s16 + $0x10] sm:$0xff]  ;;  %983 = vst.msk [vmem:[#allocation2 + $0x48] sm:$0xff] %vm972_vm2, %v4582_v33 }
  0x13   : > { %4138 = vmatprep.mubr.msk.f32.mxu0 %vm373_vm1, %v333_v1  ;;  %v336_v4 = vld [vmem:[%s4657_s16 + $0x18] sm:$0xff]  ;;  %v337_v5 = vld [vmem:[%s4657_s16 + $0x20] sm:$0xff]  ;;  %v338_v6 = vld [vmem:[%s4657_s16 + $0x28] sm:$0xff]  ;;  %984 = vst.msk [vmem:[#allocation2 + $0x50] sm:$0xff] %vm972_vm2, %v4582_v33 }
  0x14   : > { %4139 = vmatmul.mubr.msk.f32.vlgmr.msra.gmra.mrb[0].mxu0 %vm373_vm1, %v334_v2  ;;  %v339_v7 = vld [vmem:[%s4657_s16 + $0x30] sm:$0xff]  ;;  %v340_v8 = vld [vmem:[%s4657_s16 + $0x38] sm:$0xff]  ;;  %v341_v9 = vld [vmem:[%s4657_s16 + $0x40] sm:$0xff]  ;;  %986 = vst.msk [vmem:[#allocation2 + $0x60] sm:$0xff] %vm972_vm2, %v4582_v33 }
  0x15   : > { %4141 = vmatprep.mubr.msk.f32.mxu0 %vm373_vm1, %v335_v3  ;;  %v342_v10 = vld [vmem:[%s4657_s16 + $0x48] sm:$0xff]  ;;  %v343_v11 = vld [vmem:[%s4657_s16 + $0x50] sm:$0xff]  ;;  %v344_v12 = vld [vmem:[%s4657_s16 + $0x58] sm:$0xff]  ;;  %987 = vst.msk [vmem:[#allocation2 + $0x68] sm:$0xff] %vm972_vm2, %v4582_v33 }
  0x16   : > { %v345_v13 = vld [vmem:[%s4657_s16 + $0x60] sm:$0xff]  ;;  %v346_v14 = vld [vmem:[%s4657_s16 + $0x68] sm:$0xff]  ;;  %v347_v15 = vld [vmem:[%s4657_s16 + $0x70] sm:$0xff]  ;;  %989 = vst.msk [vmem:[#allocation2 + $0x78] sm:$0xff] %vm972_vm2, %v4582_v33 }
  0x17   : > { %v348_v16 = vld [vmem:[%s4657_s16 + $0x78] sm:$0xff]  ;;  %v349_v17 = vld [vmem:[%s4657_s16 + $0x80] sm:$0xff]  ;;  %v350_v18 = vld [vmem:[%s4657_s16 + $0x88] sm:$0xff]  ;;  %990 = vst.msk [vmem:[#allocation2 + $0x80] sm:$0xff] %vm972_vm2, %v4582_v33 }
  0x18   : > { %4142 = vmatmul.mubr.msk.f32.gmra.mrb[2].mxu0 %vm373_vm1, %v336_v4  ;;  %v351_v19 = vld [vmem:[%s4657_s16 + $0x90] sm:$0xff]  ;;  %v352_v20 = vld [vmem:[%s4657_s16 + $0x98] sm:$0xff]  ;;  %v353_v21 = vld [vmem:[%s4657_s16 + $0xa0] sm:$0xff]  ;;  %992 = vst.msk [vmem:[#allocation2 + $0x90] sm:$0xff] %vm972_vm2, %v4582_v33 }
  0x19   : > { %4144 = vmatprep.mubr.msk.f32.mxu0 %vm373_vm1, %v337_v5  ;;  %v354_v22 = vld [vmem:[%s4657_s16 + $0xa8] sm:$0xff]  ;;  %v355_v23 = vld [vmem:[%s4657_s16 + $0xb0] sm:$0xff]  ;;  %v356_v24 = vld [vmem:[%s4657_s16 + $0xb8] sm:$0xff]  ;;  %993 = vst.msk [vmem:[#allocation2 + $0x98] sm:$0xff] %vm972_vm2, %v4582_v33 }
  0x1a   : > { %v357_v25 = vld [vmem:[%s4657_s16 + $0xc0] sm:$0xff]  ;;  %v358_v26 = vld [vmem:[%s4657_s16 + $0xc8] sm:$0xff]  ;;  %v359_v27 = vld [vmem:[%s4657_s16 + $0xd0] sm:$0xff]  ;;  %995 = vst.msk [vmem:[#allocation2 + $0xa8] sm:$0xff] %vm972_vm2, %v4582_v33 }
  0x1b   : > { %v360_v28 = vld [vmem:[%s4657_s16 + $0xd8] sm:$0xff]  ;;  %v361_v29 = vld [vmem:[%s4657_s16 + $0xe0] sm:$0xff]  ;;  %v362_v30 = vld [vmem:[%s4657_s16 + $0xe8] sm:$0xff]  ;;  %996 = vst.msk [vmem:[#allocation2 + $0xb0] sm:$0xff] %vm972_vm2, %v4582_v33 }
  0x1c   : > { %4145 = vmatmul.mubr.msk.f32.gmra.mrb[4].mxu0 %vm373_vm1, %v338_v6  ;;  %v363_v31 = vld [vmem:[%s4657_s16 + $0xf0] sm:$0xff]  ;;  %v364_v32 = vld [vmem:[%s4657_s16 + $0xf8] sm:$0xff]  ;;  %998 = vst.msk [vmem:[#allocation2 + $0xc0] sm:$0xff] %vm972_vm2, %v4582_v33  ;;  %999 = vst.msk [vmem:[#allocation2 + $0xc8] sm:$0xff] %vm972_vm2, %v4582_v33 }
  0x1d   : > { %4147 = vmatprep.mubr.msk.f32.mxu0 %vm373_vm1, %v339_v7  ;;  %1001 = vst.msk [vmem:[#allocation2 + $0xd8] sm:$0xff] %vm972_vm2, %v4582_v33  ;;  %1002 = vst.msk [vmem:[#allocation2 + $0xe0] sm:$0xff] %vm972_vm2, %v4582_v33 }
  0x1e   : > { %1004 = vst.msk [vmem:[#allocation2 + $0xf0] sm:$0xff] %vm972_vm2, %v4582_v33  ;;  %1005 = vst.msk [vmem:[#allocation2 + $0xf8] sm:$0xff] %vm972_vm2, %v4582_v33 }
  0x1f   : > { %1007 = vst.msk [vmem:[#allocation2 + $0x108] sm:$0xff] %vm972_vm2, %v4582_v33  ;;  %1008 = vst.msk [vmem:[#allocation2 + $0x110] sm:$0xff] %vm972_vm2, %v4582_v33 }
  0x20   : > { %4148 = vmatmul.mubr.msk.f32.gmra.mrb[6].mxu0 %vm373_vm1, %v340_v8  ;;  %1010 = vst.msk [vmem:[#allocation2 + $0x120] sm:$0xff] %vm972_vm2, %v4582_v33  ;;  %1011 = vst.msk [vmem:[#allocation2 + $0x128] sm:$0xff] %vm972_vm2, %v4582_v33 }
  0x21   : > { %4150 = vmatprep.mubr.msk.f32.mxu0 %vm373_vm1, %v341_v9  ;;  %1013 = vst.msk [vmem:[#allocation2 + $0x138] sm:$0xff] %vm972_vm2, %v4582_v33  ;;  %1014 = vst.msk [vmem:[#allocation2 + $0x140] sm:$0xff] %vm972_vm2, %v4582_v33 }
  0x22   : > { %1016 = vst.msk [vmem:[#allocation2 + $0x150] sm:$0xff] %vm972_vm2, %v4582_v33  ;;  %1017 = vst.msk [vmem:[#allocation2 + $0x158] sm:$0xff] %vm972_vm2, %v4582_v33 }
  0x23   : > { %1019 = vst.msk [vmem:[#allocation2 + $0x168] sm:$0xff] %vm972_vm2, %v4582_v33  ;;  %1020 = vst.msk [vmem:[#allocation2 + $0x170] sm:$0xff] %vm972_vm2, %v4582_v33 }
  0x24   : > { %4151 = vmatmul.mubr.msk.f32.gmra.mrb[8].mxu0 %vm373_vm1, %v342_v10  ;;  %976 = vst.msk [vmem:[#allocation2 + $0x10] sm:$0x3] %vm975_vm3, %v4582_v33  ;;  %979 = vst.msk [vmem:[#allocation2 + $0x28] sm:$0x3] %vm975_vm3, %v4582_v33 }
  0x25   : > { %4153 = vmatprep.mubr.msk.f32.mxu0 %vm373_vm1, %v343_v11  ;;  %982 = vst.msk [vmem:[#allocation2 + $0x40] sm:$0x3] %vm975_vm3, %v4582_v33  ;;  %985 = vst.msk [vmem:[#allocation2 + $0x58] sm:$0x3] %vm975_vm3, %v4582_v33 }
  0x26   : > { %988 = vst.msk [vmem:[#allocation2 + $0x70] sm:$0x3] %vm975_vm3, %v4582_v33  ;;  %991 = vst.msk [vmem:[#allocation2 + $0x88] sm:$0x3] %vm975_vm3, %v4582_v33 }
  0x27   : > { %994 = vst.msk [vmem:[#allocation2 + $0xa0] sm:$0x3] %vm975_vm3, %v4582_v33  ;;  %997 = vst.msk [vmem:[#allocation2 + $0xb8] sm:$0x3] %vm975_vm3, %v4582_v33 }
  0x28   : > { %4154 = vmatmul.mubr.msk.f32.gmra.mrb[10].mxu0 %vm373_vm1, %v344_v12  ;;  %1000 = vst.msk [vmem:[#allocation2 + $0xd0] sm:$0x3] %vm975_vm3, %v4582_v33  ;;  %1003 = vst.msk [vmem:[#allocation2 + $0xe8] sm:$0x3] %vm975_vm3, %v4582_v33 }
  0x29   : > { %4156 = vmatprep.mubr.msk.f32.mxu0 %vm373_vm1, %v345_v13  ;;  %1006 = vst.msk [vmem:[#allocation2 + $0x100] sm:$0x3] %vm975_vm3, %v4582_v33  ;;  %1009 = vst.msk [vmem:[#allocation2 + $0x118] sm:$0x3] %vm975_vm3, %v4582_v33 }
  0x2a   : > { %1012 = vst.msk [vmem:[#allocation2 + $0x130] sm:$0x3] %vm975_vm3, %v4582_v33  ;;  %1015 = vst.msk [vmem:[#allocation2 + $0x148] sm:$0x3] %vm975_vm3, %v4582_v33 }
  0x2b   : > { %1018 = vst.msk [vmem:[#allocation2 + $0x160] sm:$0x3] %vm975_vm3, %v4582_v33  ;;  %1021 = vst.msk [vmem:[#allocation2 + $0x178] sm:$0x3] %vm975_vm3, %v4582_v33 }
  0x2c   : > { %4157 = vmatmul.mubr.msk.f32.gmra.mrb[12].mxu0 %vm373_vm1, %v346_v14  ;;  %vm5298_vm5 = vmpackc.low %vm470_vm0, %vm4585_vm4 }
  0x2d   : > { %4159 = vmatprep.mubr.msk.f32.mxu0 %vm373_vm1, %v347_v15 }
  0x30   : > { %4160 = vmatmul.mubr.msk.f32.gmra.mrb[14].mxu0 %vm373_vm1, %v348_v16 }
  0x31   : > { %4162 = vmatprep.mubr.msk.f32.mxu0 %vm373_vm1, %v349_v17 }
  0x34   : > { %4163 = vmatmul.mubr.msk.f32.gmra.mrb[16].mxu0 %vm373_vm1, %v350_v18 }
  0x35   : > { %4165 = vmatprep.mubr.msk.f32.mxu0 %vm373_vm1, %v351_v19 }
  0x38   : > { %4166 = vmatmul.mubr.msk.f32.gmra.mrb[18].mxu0 %vm373_vm1, %v352_v20 }
  0x39   : > { %4168 = vmatprep.mubr.msk.f32.mxu0 %vm373_vm1, %v353_v21 }
  0x3c   : > { %4169 = vmatmul.mubr.msk.f32.gmra.mrb[20].mxu0 %vm373_vm1, %v354_v22 }
  0x3d   : > { %4171 = vmatprep.mubr.msk.f32.mxu0 %vm373_vm1, %v355_v23 }
  0x40   : > { %4172 = vmatmul.mubr.msk.f32.gmra.mrb[22].mxu0 %vm373_vm1, %v356_v24 }
  0x41   : > { %4174 = vmatprep.mubr.msk.f32.mxu0 %vm373_vm1, %v357_v25 }
  0x44   : > { %4175 = vmatmul.mubr.msk.f32.gmra.mrb[24].mxu0 %vm373_vm1, %v358_v26 }
  0x45   : > { %4177 = vmatprep.mubr.msk.f32.mxu0 %vm373_vm1, %v359_v27 }
  0x48   : > { %4178 = vmatmul.mubr.msk.f32.gmra.mrb[26].mxu0 %vm373_vm1, %v360_v28 }
  0x49   : > { %4180 = vmatprep.mubr.msk.f32.mxu0 %vm373_vm1, %v361_v29 }
  0x4c   : > { %4181 = vmatmul.mubr.msk.f32.gmra.mrb[28].mxu0 %vm373_vm1, %v362_v30 }
  0x4d   : > { %4183 = vmatprep.mubr.msk.f32.mxu0 %vm373_vm1, %v363_v31 }
  0x50   : > { %4184 = vmatmul.mubr.msk.f32.gmra.mrb[30].mxu0 %vm373_vm1, %v364_v32 }
  0xe7   : > { %v4140_v35 = vpop.f32.mrb[0].mxu0 }
  0xe8   : > { %v4777_v36 = vadd.f32 %v4140_v35, %v4774_v34  ;;  %v540_v37 = vpop.f32.mrb[1].mxu0 }
  0xe9   : > { %v4780_v38 = vadd.f32 %v4774_v34, %v540_v37 }
  0xea   : > { %v770_v39 = vmul.f32 %v4777_v36, %v4777_v36  ;;  %v700_v40 = vsel %vm373_vm1, %v4777_v36, 0.0 }
  0xeb   : > { %v699_v41 = vsel %vm373_vm1, %v4780_v38, 0.0  ;;  %v769_v42 = vmul.f32 %v4780_v38, %v4780_v38  ;;  %v4143_v43 = vpop.f32.mrb[2].mxu0 }
  0xec   : > { %v4791_v44 = vadd.f32 %v4143_v43, %v4774_v34  ;;  %v550_v45 = vpop.f32.mrb[3].mxu0  ;;  %v802_v46 = vsel %vm373_vm1, %v770_v39, 0.0  ;;  %v701_v49 = vadd.f32 %v700_v40, %v699_v41 }
  0xed   : > { %v801_v47 = vsel %vm373_vm1, %v769_v42, 0.0  ;;  %v4796_v48 = vadd.f32 %v4774_v34, %v550_v45 }
  0xee   : > { %v772_v50 = vmul.f32 %v4791_v44, %v4791_v44  ;;  %v803_v54 = vadd.f32 %v802_v46, %v801_v47  ;;  %v704_v58 = vsel %vm373_vm1, %v4791_v44, 0.0 }
  0xef   : > { %v702_v51 = vsel %vm373_vm1, %v4796_v48, 0.0  ;;  %v771_v52 = vmul.f32 %v4796_v48, %v4796_v48  ;;  %v4146_v53 = vpop.f32.mrb[4].mxu0 }
  0xf0   : > { %v703_v55 = vadd.f32 %v702_v51, %v701_v49  ;;  %v4805_v56 = vadd.f32 %v4146_v53, %v4774_v34  ;;  %v560_v57 = vpop.f32.mrb[5].mxu0  ;;  %v806_v63 = vsel %vm373_vm1, %v772_v50, 0.0 }
  0xf1   : > { %v804_v59 = vsel %vm373_vm1, %v771_v52, 0.0  ;;  %v4811_v60 = vadd.f32 %v4774_v34, %v560_v57 }
  0xf2   : > { %v805_v61 = vadd.f32 %v804_v59, %v803_v54  ;;  %v705_v62 = vadd.f32 %v704_v58, %v703_v55  ;;  %v774_v0 = vmul.f32 %v4805_v56, %v4805_v56  ;;  %v708_v8 = vsel %vm373_vm1, %v4805_v56, 0.0 }
  0xf3   : > { %v706_v1 = vsel %vm373_vm1, %v4811_v60, 0.0  ;;  %v773_v2 = vmul.f32 %v4811_v60, %v4811_v60  ;;  %v4149_v3 = vpop.f32.mrb[6].mxu0 }
  0xf4   : > { %v707_v4 = vadd.f32 %v706_v1, %v705_v62  ;;  %v807_v5 = vadd.f32 %v806_v63, %v805_v61  ;;  %v4821_v6 = vadd.f32 %v4149_v3, %v4774_v34  ;;  %v570_v7 = vpop.f32.mrb[7].mxu0  ;;  %v810_v13 = vsel %vm373_vm1, %v774_v0, 0.0 }
  0xf5   : > { %v808_v9 = vsel %vm373_vm1, %v773_v2, 0.0  ;;  %v4827_v10 = vadd.f32 %v4774_v34, %v570_v7 }
  0xf6   : > { %v809_v11 = vadd.f32 %v808_v9, %v807_v5  ;;  %v709_v12 = vadd.f32 %v708_v8, %v707_v4  ;;  %v776_v14 = vmul.f32 %v4821_v6, %v4821_v6  ;;  %v712_v22 = vsel %vm373_vm1, %v4821_v6, 0.0 }
  0xf7   : > { %v710_v15 = vsel %vm373_vm1, %v4827_v10, 0.0  ;;  %v775_v16 = vmul.f32 %v4827_v10, %v4827_v10  ;;  %v4152_v17 = vpop.f32.mrb[8].mxu0 }
  0xf8   : > { %v711_v18 = vadd.f32 %v710_v15, %v709_v12  ;;  %v811_v19 = vadd.f32 %v810_v13, %v809_v11  ;;  %v4837_v20 = vadd.f32 %v4152_v17, %v4774_v34  ;;  %v580_v21 = vpop.f32.mrb[9].mxu0  ;;  %v814_v27 = vsel %vm373_vm1, %v776_v14, 0.0 }
  0xf9   : > { %v812_v23 = vsel %vm373_vm1, %v775_v16, 0.0  ;;  %v4843_v24 = vadd.f32 %v4774_v34, %v580_v21 }
  0xfa   : > { %v813_v25 = vadd.f32 %v812_v23, %v811_v19  ;;  %v713_v26 = vadd.f32 %v712_v22, %v711_v18  ;;  %v778_v28 = vmul.f32 %v4837_v20, %v4837_v20  ;;  %v716_v39 = vsel %vm373_vm1, %v4837_v20, 0.0 }
  0xfb   : > { %v714_v29 = vsel %vm373_vm1, %v4843_v24, 0.0  ;;  %v777_v30 = vmul.f32 %v4843_v24, %v4843_v24  ;;  %v4155_v31 = vpop.f32.mrb[10].mxu0 }
  0xfc   : > { %v715_v32 = vadd.f32 %v714_v29, %v713_v26  ;;  %v815_v33 = vadd.f32 %v814_v27, %v813_v25  ;;  %v4853_v35 = vadd.f32 %v4155_v31, %v4774_v34  ;;  %v590_v37 = vpop.f32.mrb[11].mxu0  ;;  %v818_v45 = vsel %vm373_vm1, %v778_v28, 0.0 }
  0xfd   : > { %v816_v40 = vsel %vm373_vm1, %v777_v30, 0.0  ;;  %v4859_v41 = vadd.f32 %v4774_v34, %v590_v37 }
  0xfe   : > { %v817_v42 = vadd.f32 %v816_v40, %v815_v33  ;;  %v717_v43 = vadd.f32 %v716_v39, %v715_v32  ;;  %v780_v46 = vmul.f32 %v4853_v35, %v4853_v35  ;;  %v720_v55 = vsel %vm373_vm1, %v4853_v35, 0.0 }
  0xff   : > { %v718_v47 = vsel %vm373_vm1, %v4859_v41, 0.0  ;;  %v779_v49 = vmul.f32 %v4859_v41, %v4859_v41  ;;  %v4158_v50 = vpop.f32.mrb[12].mxu0 }
 0x100   : > { %v719_v51 = vadd.f32 %v718_v47, %v717_v43  ;;  %v819_v52 = vadd.f32 %v818_v45, %v817_v42  ;;  %v4869_v53 = vadd.f32 %v4158_v50, %v4774_v34  ;;  %v600_v54 = vpop.f32.mrb[13].mxu0  ;;  %v822_v62 = vsel %vm373_vm1, %v780_v46, 0.0 }
 0x101   : > { %v820_v57 = vsel %vm373_vm1, %v779_v49, 0.0  ;;  %v4875_v58 = vadd.f32 %v4774_v34, %v600_v54 }
 0x102   : > { %v821_v59 = vadd.f32 %v820_v57, %v819_v52  ;;  %v721_v61 = vadd.f32 %v720_v55, %v719_v51  ;;  %v782_v63 = vmul.f32 %v4869_v53, %v4869_v53  ;;  %v724_v8 = vsel %vm373_vm1, %v4869_v53, 0.0 }
 0x103   : > { %v722_v0 = vsel %vm373_vm1, %v4875_v58, 0.0  ;;  %v781_v1 = vmul.f32 %v4875_v58, %v4875_v58  ;;  %v4161_v2 = vpop.f32.mrb[14].mxu0 }
 0x104   : > { %v723_v3 = vadd.f32 %v722_v0, %v721_v61  ;;  %v823_v4 = vadd.f32 %v822_v62, %v821_v59  ;;  %v4885_v5 = vadd.f32 %v4161_v2, %v4774_v34  ;;  %v610_v7 = vpop.f32.mrb[15].mxu0  ;;  %v826_v14 = vsel %vm373_vm1, %v782_v63, 0.0 }
 0x105   : > { %v824_v9 = vsel %vm373_vm1, %v781_v1, 0.0  ;;  %v4891_v11 = vadd.f32 %v4774_v34, %v610_v7 }
 0x106   : > { %v825_v12 = vadd.f32 %v824_v9, %v823_v4  ;;  %v725_v13 = vadd.f32 %v724_v8, %v723_v3  ;;  %v784_v15 = vmul.f32 %v4885_v5, %v4885_v5  ;;  %v728_v25 = vsel %vm373_vm1, %v4885_v5, 0.0 }
 0x107   : > { %v726_v16 = vsel %vm373_vm1, %v4891_v11, 0.0  ;;  %v783_v17 = vmul.f32 %v4891_v11, %v4891_v11  ;;  %v4164_v18 = vpop.f32.mrb[16].mxu0 }
 0x108   : > { %v727_v19 = vadd.f32 %v726_v16, %v725_v13  ;;  %v827_v21 = vadd.f32 %v826_v14, %v825_v12  ;;  %v4901_v22 = vadd.f32 %v4164_v18, %v4774_v34  ;;  %v620_v23 = vpop.f32.mrb[17].mxu0  ;;  %v830_v30 = vsel %vm373_vm1, %v784_v15, 0.0 }
 0x109   : > { %v828_v26 = vsel %vm373_vm1, %v783_v17, 0.0  ;;  %v4907_v27 = vadd.f32 %v4774_v34, %v620_v23 }
 0x10a   : > { %v829_v28 = vadd.f32 %v828_v26, %v827_v21  ;;  %v729_v29 = vadd.f32 %v728_v25, %v727_v19  ;;  %v786_v31 = vmul.f32 %v4901_v22, %v4901_v22  ;;  %v732_v45 = vsel %vm373_vm1, %v4901_v22, 0.0 }
 0x10b   : > { %v730_v32 = vsel %vm373_vm1, %v4907_v27, 0.0  ;;  %v785_v33 = vmul.f32 %v4907_v27, %v4907_v27  ;;  %v4167_v37 = vpop.f32.mrb[18].mxu0 }
 0x10c   : > { %v731_v39 = vadd.f32 %v730_v32, %v729_v29  ;;  %v831_v40 = vadd.f32 %v830_v30, %v829_v28  ;;  %v4917_v42 = vadd.f32 %v4167_v37, %v4774_v34  ;;  %v630_v43 = vpop.f32.mrb[19].mxu0  ;;  %v834_v51 = vsel %vm373_vm1, %v786_v31, 0.0 }
 0x10d   : > { %v832_v46 = vsel %vm373_vm1, %v785_v33, 0.0  ;;  %v4923_v47 = vadd.f32 %v4774_v34, %v630_v43 }
 0x10e   : > { %v833_v49 = vadd.f32 %v832_v46, %v831_v40  ;;  %v733_v50 = vadd.f32 %v732_v45, %v731_v39  ;;  %v788_v52 = vmul.f32 %v4917_v42, %v4917_v42  ;;  %v736_v0 = vsel %vm373_vm1, %v4917_v42, 0.0 }
 0x10f   : > { %v734_v54 = vsel %vm373_vm1, %v4923_v47, 0.0  ;;  %v787_v55 = vmul.f32 %v4923_v47, %v4923_v47  ;;  %v4170_v57 = vpop.f32.mrb[20].mxu0 }
 0x110   : > { %v735_v59 = vadd.f32 %v734_v54, %v733_v50  ;;  %v835_v61 = vadd.f32 %v834_v51, %v833_v49  ;;  %v4933_v62 = vadd.f32 %v4170_v57, %v4774_v34  ;;  %v640_v63 = vpop.f32.mrb[21].mxu0  ;;  %v838_v7 = vsel %vm373_vm1, %v788_v52, 0.0 }
 0x111   : > { %v836_v1 = vsel %vm373_vm1, %v787_v55, 0.0  ;;  %v4939_v2 = vadd.f32 %v4774_v34, %v640_v63 }
 0x112   : > { %v837_v3 = vadd.f32 %v836_v1, %v835_v61  ;;  %v737_v4 = vadd.f32 %v736_v0, %v735_v59  ;;  %v790_v8 = vmul.f32 %v4933_v62, %v4933_v62  ;;  %v740_v18 = vsel %vm373_vm1, %v4933_v62, 0.0 }
 0x113   : > { %v738_v9 = vsel %vm373_vm1, %v4939_v2, 0.0  ;;  %v789_v12 = vmul.f32 %v4939_v2, %v4939_v2  ;;  %v4173_v13 = vpop.f32.mrb[22].mxu0 }
 0x114   : > { %v739_v14 = vadd.f32 %v738_v9, %v737_v4  ;;  %v839_v15 = vadd.f32 %v838_v7, %v837_v3  ;;  %v4949_v16 = vadd.f32 %v4173_v13, %v4774_v34  ;;  %v650_v17 = vpop.f32.mrb[23].mxu0  ;;  %v842_v26 = vsel %vm373_vm1, %v790_v8, 0.0 }
 0x115   : > { %v840_v19 = vsel %vm373_vm1, %v789_v12, 0.0  ;;  %v4955_v21 = vadd.f32 %v4774_v34, %v650_v17 }
 0x116   : > { %v841_v23 = vadd.f32 %v840_v19, %v839_v15  ;;  %v741_v25 = vadd.f32 %v740_v18, %v739_v14  ;;  %v792_v28 = vmul.f32 %v4949_v16, %v4949_v16  ;;  %v744_v40 = vsel %vm373_vm1, %v4949_v16, 0.0 }
 0x117   : > { %v742_v29 = vsel %vm373_vm1, %v4955_v21, 0.0  ;;  %v791_v30 = vmul.f32 %v4955_v21, %v4955_v21  ;;  %v4176_v31 = vpop.f32.mrb[24].mxu0 }
 0x118   : > { %v743_v32 = vadd.f32 %v742_v29, %v741_v25  ;;  %v843_v33 = vadd.f32 %v842_v26, %v841_v23  ;;  %v4965_v37 = vadd.f32 %v4176_v31, %v4774_v34  ;;  %v660_v39 = vpop.f32.mrb[25].mxu0  ;;  %v846_v50 = vsel %vm373_vm1, %v792_v28, 0.0 }
 0x119   : > { %v844_v43 = vsel %vm373_vm1, %v791_v30, 0.0  ;;  %v4971_v45 = vadd.f32 %v4774_v34, %v660_v39 }
 0x11a   : > { %v845_v46 = vadd.f32 %v844_v43, %v843_v33  ;;  %v745_v49 = vadd.f32 %v744_v40, %v743_v32  ;;  %v794_v51 = vmul.f32 %v4965_v37, %v4965_v37  ;;  %v748_v0 = vsel %vm373_vm1, %v4965_v37, 0.0 }
 0x11b   : > { %v746_v52 = vsel %vm373_vm1, %v4971_v45, 0.0  ;;  %v793_v54 = vmul.f32 %v4971_v45, %v4971_v45  ;;  %v4179_v55 = vpop.f32.mrb[26].mxu0 }
 0x11c   : > { %v747_v57 = vadd.f32 %v746_v52, %v745_v49  ;;  %v847_v59 = vadd.f32 %v846_v50, %v845_v46  ;;  %v4981_v61 = vadd.f32 %v4179_v55, %v4774_v34  ;;  %v670_v63 = vpop.f32.mrb[27].mxu0  ;;  %v850_v8 = vsel %vm373_vm1, %v794_v51, 0.0 }
 0x11d   : > { %v848_v1 = vsel %vm373_vm1, %v793_v54, 0.0  ;;  %v4987_v3 = vadd.f32 %v4774_v34, %v670_v63 }
 0x11e   : > { %v849_v4 = vadd.f32 %v848_v1, %v847_v59  ;;  %v749_v7 = vadd.f32 %v748_v0, %v747_v57  ;;  %v796_v9 = vmul.f32 %v4981_v61, %v4981_v61  ;;  %v752_v23 = vsel %vm373_vm1, %v4981_v61, 0.0 }
 0x11f   : > { %v750_v12 = vsel %vm373_vm1, %v4987_v3, 0.0  ;;  %v795_v13 = vmul.f32 %v4987_v3, %v4987_v3  ;;  %v4182_v14 = vpop.f32.mrb[28].mxu0 }
 0x120   : > { %v751_v15 = vadd.f32 %v750_v12, %v749_v7  ;;  %v851_v17 = vadd.f32 %v850_v8, %v849_v4  ;;  %v4997_v18 = vadd.f32 %v4182_v14, %v4774_v34  ;;  %v680_v19 = vpop.f32.mrb[29].mxu0  ;;  %v854_v30 = vsel %vm373_vm1, %v796_v9, 0.0 }
 0x121   : > { %v852_v25 = vsel %vm373_vm1, %v795_v13, 0.0  ;;  %v5003_v26 = vadd.f32 %v4774_v34, %v680_v19 }
 0x122   : > { %v853_v28 = vadd.f32 %v852_v25, %v851_v17  ;;  %v753_v29 = vadd.f32 %v752_v23, %v751_v15  ;;  %v798_v31 = vmul.f32 %v4997_v18, %v4997_v18  ;;  %v756_v50 = vsel %vm373_vm1, %v4997_v18, 0.0 }
 0x123   : > { %v754_v32 = vsel %vm373_vm1, %v5003_v26, 0.0  ;;  %v797_v33 = vmul.f32 %v5003_v26, %v5003_v26  ;;  %v4185_v39 = vpop.f32.mrb[30].mxu0 }
 0x124   : > { %v755_v40 = vadd.f32 %v754_v32, %v753_v29  ;;  %v855_v43 = vadd.f32 %v854_v30, %v853_v28  ;;  %v5013_v46 = vadd.f32 %v4185_v39, %v4774_v34  ;;  %v690_v49 = vpop.f32.mrb[31].mxu0  ;;  %v858_v57 = vsel %vm373_vm1, %v798_v31, 0.0 }
 0x125   : > { %v856_v51 = vsel %vm373_vm1, %v797_v33, 0.0  ;;  %v5019_v52 = vadd.f32 %v4774_v34, %v690_v49 }
 0x126   : > { %v857_v54 = vadd.f32 %v856_v51, %v855_v43  ;;  %v757_v55 = vadd.f32 %v756_v50, %v755_v40  ;;  %v800_v59 = vmul.f32 %v5013_v46, %v5013_v46  ;;  %v760_v7 = vsel %vm373_vm1, %v5013_v46, 0.0 }
 0x127   : > { %v758_v63 = vsel %vm373_vm1, %v5019_v52, 0.0  ;;  %v799_v0 = vmul.f32 %v5019_v52, %v5019_v52 }
 0x128   : > { %v759_v1 = vadd.f32 %v758_v63, %v757_v55  ;;  %v859_v4 = vadd.f32 %v858_v57, %v857_v54  ;;  %v862_v12 = vsel %vm373_vm1, %v800_v59, 0.0 }
 0x129   : > { %v860_v34 = vsel %vm373_vm1, %v799_v0, 0.0 }
 0x12a   : > { %v761_v8 = vadd.f32 %v760_v7, %v759_v1  ;;  %v861_v9 = vadd.f32 %v860_v34, %v859_v4 }
 0x12c   : > { %v762_v13 = vrot.slane %v761_v8, 4  ;;  %v863_v14 = vadd.f32 %v862_v12, %v861_v9 }
 0x12e   : > { %v763_v15 = vadd.f32 %v762_v13, %v761_v8  ;;  %v864_v17 = vrot.slane %v863_v14, 4 }
 0x130   : > { %v764_v19 = vrot.slane %v763_v15, 2  ;;  %v865_v23 = vadd.f32 %v864_v17, %v863_v14 }
 0x132   : > { %v765_v25 = vadd.f32 %v764_v19, %v763_v15  ;;  %v866_v28 = vrot.slane %v865_v23, 2 }
 0x134   : > { %v766_v29 = vrot.slane %v765_v25, 1  ;;  %v867_v30 = vadd.f32 %v866_v28, %v865_v23 }
 0x136   : > { %v767_v31 = vadd.f32 %v766_v29, %v765_v25  ;;  %v868_v32 = vrot.slane %v867_v30, 1 }
 0x138   : > { %v5032_v33 = vmul.f32 0.00390625, %v767_v31  ;;  %v869_v39 = vadd.f32 %v868_v32, %v867_v30 }
 0x13a   : > { %v870_v40 = vmul.f32 0.00390625, %v869_v39  ;;  %v871_v43 = vmul.f32 %v5032_v33, %v5032_v33  ;;  %v904_v49 = vsub.f32 %v5019_v52, %v5032_v33  ;;  %v884_v51 = vsub.f32 %v4859_v41, %v5032_v33 }
 0x13b   : > { %v885_v54 = vsub.f32 %v4853_v35, %v5032_v33  ;;  %v886_v55 = vsub.f32 %v4875_v58, %v5032_v33  ;;  %v887_v59 = vsub.f32 %v4869_v53, %v5032_v33  ;;  %v888_v63 = vsub.f32 %v4891_v11, %v5032_v33 }
 0x13c   : > { %v872_v50 = vsub.f32 %v870_v40, %v871_v43  ;;  %v889_v0 = vsub.f32 %v4885_v5, %v5032_v33  ;;  %v890_v1 = vsub.f32 %v4907_v27, %v5032_v33  ;;  %v891_v41 = vsub.f32 %v4901_v22, %v5032_v33 }
 0x13d   : > { %v892_v35 = vsub.f32 %v4923_v47, %v5032_v33  ;;  %v893_v58 = vsub.f32 %v4917_v42, %v5032_v33  ;;  %v894_v53 = vsub.f32 %v4939_v2, %v5032_v33  ;;  %v895_v7 = vsub.f32 %v4933_v62, %v5032_v33 }
 0x13e   : > { %v873_v57 = vmax.f32 %v872_v50, 0.0  ;;  %v896_v5 = vsub.f32 %v4955_v21, %v5032_v33  ;;  %v897_v34 = vsub.f32 %v4949_v16, %v5032_v33  ;;  %v898_v8 = vsub.f32 %v4971_v45, %v5032_v33 }
 0x13f   : > { %v899_v9 = vsub.f32 %v4965_v37, %v5032_v33  ;;  %v900_v12 = vsub.f32 %v4987_v3, %v5032_v33  ;;  %v901_v13 = vsub.f32 %v4981_v61, %v5032_v33  ;;  %v902_v14 = vsub.f32 %v5003_v26, %v5032_v33  ;;  %v3759_v3 = vld [vmem:[%s6631_s3 + $0x10] sm:$0xff] }
 0x140   : > { %v906_v4 = vadd.f32 1e-05, %v873_v57  ;;  %v903_v15 = vsub.f32 %v4997_v18, %v5032_v33  ;;  %v905_v17 = vsub.f32 %v5013_v46, %v5032_v33  ;;  %v875_v19 = vsub.f32 %v4777_v36, %v5032_v33  ;;  %v3760_v18 = vld [vmem:[%s6631_s3 + $0x18] sm:$0xf] }
 0x141   : > { %v876_v23 = vsub.f32 %v4796_v48, %v5032_v33  ;;  %v877_v25 = vsub.f32 %v4791_v44, %v5032_v33  ;;  %v878_v28 = vsub.f32 %v4811_v60, %v5032_v33  ;;  %v879_v29 = vsub.f32 %v4805_v56, %v5032_v33 }
 0x142   : > { %4536 = vrsqrt.f32 %v906_v4  ;;  %v874_v30 = vsub.f32 %v4780_v38, %v5032_v33  ;;  %v880_v36 = vsub.f32 %v4827_v10, %v5032_v33  ;;  %v881_v48 = vsub.f32 %v4821_v6, %v5032_v33 }
 0x143   : > { %v882_v44 = vsub.f32 %v4843_v24, %v5032_v33  ;;  %v883_v60 = vsub.f32 %v4837_v20, %v5032_v33  ;;  %v4442_v52 = vpack.c.bf16 %v3760_v18, %v3759_v3  ;;  %v1367_v33 = vld [vmem:[%s6631_s3] sm:$0xff] }
 0x145   : > { %4444 = vmatprep.subr.msk.bf16.mxu1 %vm5298_vm5, %v4442_v52 }
 0x146   : > { %4447 = vmatpush3.bf16.msk.msra.mxu1 %vm5298_vm5, %v4442_v52 }
 0x14c   : > { %v5092_v31 = vpop.eup %4536 }
 0x14d   : > { %v910_v32 = vmul.f32 %v5092_v31, %v876_v23  ;;  %v908_v56 = vmul.f32 %v5092_v31, %v874_v30  ;;  %v911_v38 = vmul.f32 %v5092_v31, %v877_v25  ;;  %v909_v39 = vmul.f32 %v5092_v31, %v875_v19 }
 0x14e   : > { %v913_v40 = vmul.f32 %v5092_v31, %v879_v29  ;;  %v912_v10 = vmul.f32 %v5092_v31, %v878_v28  ;;  %v915_v6 = vmul.f32 %v5092_v31, %v881_v48  ;;  %v914_v43 = vmul.f32 %v5092_v31, %v880_v36 }
 0x14f   : > { %v942_v24 = vmax.f32 %v910_v32, 0.0  ;;  %v940_v50 = vmax.f32 %v908_v56, 0.0  ;;  %v943_v57 = vmax.f32 %v911_v38, 0.0  ;;  %v941_v20 = vmax.f32 %v909_v39, 0.0 }
 0x150   : > { %v5110_v4 = vmax.f32 %v913_v40, 0.0  ;;  %v5112_v23 = vmax.f32 %v912_v10, 0.0  ;;  %v5114_v30 = vmax.f32 %v915_v6, 0.0  ;;  %v5116_v25 = vmax.f32 %v914_v43, 0.0 }
 0x151   : > { %1214 = vrot.lane.b32.xlu1 %v942_v24, %s4583_s19  ;;  %1085 = vrot.lane.b32.xlu0 %v940_v50, %s4584_s20  ;;  %v917_v19 = vmul.f32 %v5092_v31, %v883_v60  ;;  %v916_v28 = vmul.f32 %v5092_v31, %v882_v44  ;;  %v919_v29 = vmul.f32 %v5092_v31, %v885_v54 }
 0x152   : > { %1023 = vst.msk [vmem:[#allocation2 + $0x19] sm:$0xff] %vm373_vm1, %v940_v50  ;;  %1025 = vst.msk [vmem:[#allocation2 + $0x31] sm:$0xff] %vm373_vm1, %v942_v24  ;;  %v918_v36 = vmul.f32 %v5092_v31, %v884_v51  ;;  %v921_v48 = vmul.f32 %v5092_v31, %v887_v59  ;;  %v920_v32 = vmul.f32 %v5092_v31, %v886_v55 }
 0x153   : > { %1024 = vst.msk [vmem:[#allocation2 + $0x21] sm:$0xff] %vm373_vm1, %v941_v20  ;;  %1026 = vst.msk [vmem:[#allocation2 + $0x39] sm:$0xff] %vm373_vm1, %v943_v57  ;;  %v923_v60 = vmul.f32 %v5092_v31, %v889_v0  ;;  %v5139_v54 = vmax.f32 %v917_v19, 0.0  ;;  %v5141_v51 = vmax.f32 %v916_v28, 0.0  ;;  %v5143_v59 = vmax.f32 %v919_v29, 0.0 }
 0x154   : > { %1027 = vst.msk [vmem:[#allocation2 + $0x49] sm:$0xff] %vm373_vm1, %v5112_v23  ;;  %1029 = vst.msk [vmem:[#allocation2 + $0x61] sm:$0xff] %vm373_vm1, %v5116_v25  ;;  %v922_v55 = vmul.f32 %v5092_v31, %v888_v63  ;;  %v5149_v0 = vmax.f32 %v918_v36, 0.0  ;;  %v5151_v44 = vmax.f32 %v921_v48, 0.0  ;;  %v5153_v56 = vmax.f32 %v920_v32, 0.0 }
 0x155   : > { %1028 = vst.msk [vmem:[#allocation2 + $0x51] sm:$0xff] %vm373_vm1, %v5110_v4  ;;  %1030 = vst.msk [vmem:[#allocation2 + $0x69] sm:$0xff] %vm373_vm1, %v5114_v30  ;;  %v5155_v38 = vmax.f32 %v923_v60, 0.0  ;;  %1216 = vrot.lane.b32.xlu1 %v943_v57, %s4583_s19  ;;  %1087 = vrot.lane.b32.xlu0 %v941_v20, %s4584_s20  ;;  %v925_v11 = vmul.f32 %v5092_v31, %v891_v41  ;;  %v924_v63 = vmul.f32 %v5092_v31, %v890_v1 }
 0x156   : > { %v5159_v39 = vmax.f32 %v922_v55, 0.0  ;;  %v927_v40 = vmul.f32 %v5092_v31, %v893_v58  ;;  %1031 = vst.msk [vmem:[#allocation2 + $0x79] sm:$0xff] %vm373_vm1, %v5141_v51  ;;  %1032 = vst.msk [vmem:[#allocation2 + $0x81] sm:$0xff] %vm373_vm1, %v5139_v54  ;;  %v926_v22 = vmul.f32 %v5092_v31, %v892_v35  ;;  %v929_v27 = vmul.f32 %v5092_v31, %v895_v7 }
 0x157   : > { %1034 = vst.msk [vmem:[#allocation2 + $0x99] sm:$0xff] %vm373_vm1, %v5143_v59  ;;  %v928_v42 = vmul.f32 %v5092_v31, %v894_v53  ;;  %v931_v1 = vmul.f32 %v5092_v31, %v897_v34  ;;  %1033 = vst.msk [vmem:[#allocation2 + $0x91] sm:$0xff] %vm373_vm1, %v5149_v0  ;;  %v5203_v47 = vmax.f32 %v925_v11, 0.0  ;;  %v5205_v62 = vmax.f32 %v924_v63, 0.0 }
 0x158   : > { %1035 = vst.msk [vmem:[#allocation2 + $0xa9] sm:$0xff] %vm373_vm1, %v5153_v56  ;;  %1036 = vst.msk [vmem:[#allocation2 + $0xb1] sm:$0xff] %vm373_vm1, %v5151_v44  ;;  %v5207_v2 = vmax.f32 %v927_v40, 0.0  ;;  %v930_v16 = vmul.f32 %v5092_v31, %v896_v5  ;;  %v5215_v41 = vmax.f32 %v926_v22, 0.0  ;;  %v5217_v35 = vmax.f32 %v929_v27, 0.0 }
 0x159   : > { %1038 = vst.msk [vmem:[#allocation2 + $0xc9] sm:$0xff] %vm373_vm1, %v5155_v38  ;;  %1037 = vst.msk [vmem:[#allocation2 + $0xc1] sm:$0xff] %vm373_vm1, %v5159_v39  ;;  %v5219_v58 = vmax.f32 %v928_v42, 0.0  ;;  %v5221_v53 = vmax.f32 %v931_v1, 0.0  ;;  %1091 = vrot.lane.b32.xlu1 %v943_v57, %s4584_s20  ;;  %1089 = vrot.lane.b32.xlu0 %v942_v24, %s4584_s20  ;;  %v933_v21 = vmul.f32 %v5092_v31, %v899_v9 }
 0x15a   : > { %v5225_v7 = vmax.f32 %v930_v16, 0.0  ;;  %v932_v5 = vmul.f32 %v5092_v31, %v898_v8  ;;  %v935_v34 = vmul.f32 %v5092_v31, %v901_v13  ;;  %1039 = vst.msk [vmem:[#allocation2 + $0xd9] sm:$0xff] %vm373_vm1, %v5205_v62  ;;  %1040 = vst.msk [vmem:[#allocation2 + $0xe1] sm:$0xff] %vm373_vm1, %v5203_v47  ;;  %v934_v37 = vmul.f32 %v5092_v31, %v900_v12 }
 0x15b   : > { %1042 = vst.msk [vmem:[#allocation2 + $0xf9] sm:$0xff] %vm373_vm1, %v5207_v2  ;;  %v937_v45 = vmul.f32 %v5092_v31, %v903_v15  ;;  %v936_v61 = vmul.f32 %v5092_v31, %v902_v14  ;;  %v5261_v8 = vmul.f32 %v5092_v31, %v905_v17  ;;  %1041 = vst.msk [vmem:[#allocation2 + $0xf1] sm:$0xff] %vm373_vm1, %v5215_v41  ;;  %v5277_v26 = vmax.f32 %v933_v21, 0.0 }
 0x15c   : > { %1043 = vst.msk [vmem:[#allocation2 + $0x109] sm:$0xff] %vm373_vm1, %v5219_v58  ;;  %1044 = vst.msk [vmem:[#allocation2 + $0x111] sm:$0xff] %vm373_vm1, %v5217_v35  ;;  %v5279_v46 = vmax.f32 %v932_v5, 0.0  ;;  %v5281_v9 = vmax.f32 %v935_v34, 0.0  ;;  %v5289_v12 = vmul.f32 %v5092_v31, %v904_v49  ;;  %v5291_v13 = vmax.f32 %v934_v37, 0.0 }
 0x15d   : > { %1046 = vst.msk [vmem:[#allocation2 + $0x129] sm:$0xff] %vm373_vm1, %v5221_v53  ;;  %1045 = vst.msk [vmem:[#allocation2 + $0x121] sm:$0xff] %vm373_vm1, %v5225_v7  ;;  %v5293_v14 = vmax.f32 %v937_v45, 0.0  ;;  %v5295_v15 = vmax.f32 %v936_v61, 0.0  ;;  %1220 = vrot.lane.b32.xlu1 %v5110_v4, %s4583_s19  ;;  %1218 = vrot.lane.b32.xlu0 %v5112_v23, %s4583_s19  ;;  %v1368_v49 = vld [vmem:[%s6631_s3 + $0x8] sm:$0xf] }
 0x15e   : > { %1047 = vst.msk [vmem:[#allocation2 + $0x139] sm:$0xff] %vm373_vm1, %v5279_v46  ;;  %1048 = vst.msk [vmem:[#allocation2 + $0x141] sm:$0xff] %vm373_vm1, %v5277_v26  ;;  %v4448_v31 = vpack.c.bf16 %v1368_v49, %v1367_v33  ;;  %v971_v43 = vmax.f32 %v5261_v8, 0.0  ;;  %v970_v24 = vmax.f32 %v5289_v12, 0.0 }
 0x15f   : > { %1050 = vst.msk [vmem:[#allocation2 + $0x159] sm:$0xff] %vm373_vm1, %v5281_v9  ;;  %1049 = vst.msk [vmem:[#allocation2 + $0x151] sm:$0xff] %vm373_vm1, %v5291_v13 }
 0x160   : > { %1051 = vst.msk [vmem:[#allocation2 + $0x169] sm:$0xff] %vm373_vm1, %v5295_v15  ;;  %1052 = vst.msk [vmem:[#allocation2 + $0x171] sm:$0xff] %vm373_vm1, %v5293_v14  ;;  %4450 = vmatprep.subr.msk.bf16.mxu1 %vm5298_vm5, %v4448_v31 }
 0x161   : > { %1095 = vrot.lane.b32.xlu1 %v5110_v4, %s4584_s20  ;;  %1093 = vrot.lane.b32.xlu0 %v5112_v23, %s4584_s20 }
 0x165   : > { %1224 = vrot.lane.b32.xlu1 %v5114_v30, %s4583_s19  ;;  %1222 = vrot.lane.b32.xlu0 %v5116_v25, %s4583_s19 }
 0x169   : > { %1099 = vrot.lane.b32.xlu1 %v5114_v30, %s4584_s20  ;;  %1097 = vrot.lane.b32.xlu0 %v5116_v25, %s4584_s20  ;;  %v3827_v30 = vld [vmem:[%s6631_s3 + $0x20] sm:$0xff]  ;;  %v3828_v25 = vld [vmem:[%s6631_s3 + $0x28] sm:$0xf] }
 0x16a   : > { %v5449_v29 = vpack.c.bf16 %v3828_v25, %v3827_v30 }
 0x16d   : > { %1228 = vrot.lane.b32.xlu1 %v5139_v54, %s4583_s19  ;;  %1226 = vrot.lane.b32.xlu0 %v5141_v51, %s4583_s19 }
 0x171   : > { %1103 = vrot.lane.b32.xlu1 %v5139_v54, %s4584_s20  ;;  %1101 = vrot.lane.b32.xlu0 %v5141_v51, %s4584_s20 }
 0x175   : > { %1232 = vrot.lane.b32.xlu1 %v5143_v59, %s4583_s19  ;;  %1230 = vrot.lane.b32.xlu0 %v5149_v0, %s4583_s19 }
 0x179   : > { %1107 = vrot.lane.b32.xlu1 %v5143_v59, %s4584_s20  ;;  %1105 = vrot.lane.b32.xlu0 %v5149_v0, %s4584_s20 }
 0x17d   : > { %1236 = vrot.lane.b32.xlu1 %v5151_v44, %s4583_s19  ;;  %1234 = vrot.lane.b32.xlu0 %v5153_v56, %s4583_s19 }
 0x181   : > { %1111 = vrot.lane.b32.xlu1 %v5151_v44, %s4584_s20  ;;  %1109 = vrot.lane.b32.xlu0 %v5153_v56, %s4584_s20 }
 0x185   : > { %1240 = vrot.lane.b32.xlu1 %v5155_v38, %s4583_s19  ;;  %1238 = vrot.lane.b32.xlu0 %v5159_v39, %s4583_s19 }
 0x189   : > { %1115 = vrot.lane.b32.xlu1 %v5155_v38, %s4584_s20  ;;  %1113 = vrot.lane.b32.xlu0 %v5159_v39, %s4584_s20 }
 0x18d   : > { %1244 = vrot.lane.b32.xlu1 %v5203_v47, %s4583_s19  ;;  %1242 = vrot.lane.b32.xlu0 %v5205_v62, %s4583_s19 }
 0x191   : > { %1119 = vrot.lane.b32.xlu1 %v5203_v47, %s4584_s20  ;;  %1117 = vrot.lane.b32.xlu0 %v5205_v62, %s4584_s20 }
 0x195   : > { %1248 = vrot.lane.b32.xlu1 %v5207_v2, %s4583_s19  ;;  %1246 = vrot.lane.b32.xlu0 %v5215_v41, %s4583_s19 }
 0x199   : > { %1123 = vrot.lane.b32.xlu1 %v5207_v2, %s4584_s20  ;;  %1121 = vrot.lane.b32.xlu0 %v5215_v41, %s4584_s20 }
 0x19d   : > { %1252 = vrot.lane.b32.xlu1 %v5217_v35, %s4583_s19  ;;  %1250 = vrot.lane.b32.xlu0 %v5219_v58, %s4583_s19 }
 0x1a1   : > { %1127 = vrot.lane.b32.xlu1 %v5217_v35, %s4584_s20  ;;  %1125 = vrot.lane.b32.xlu0 %v5219_v58, %s4584_s20 }
 0x1a5   : > { %1256 = vrot.lane.b32.xlu1 %v5221_v53, %s4583_s19  ;;  %1254 = vrot.lane.b32.xlu0 %v5225_v7, %s4583_s19 }
 0x1a9   : > { %1131 = vrot.lane.b32.xlu1 %v5221_v53, %s4584_s20  ;;  %1129 = vrot.lane.b32.xlu0 %v5225_v7, %s4584_s20 }
 0x1ad   : > { %1260 = vrot.lane.b32.xlu1 %v5277_v26, %s4583_s19  ;;  %1258 = vrot.lane.b32.xlu0 %v5279_v46, %s4583_s19 }
 0x1b1   : > { %1135 = vrot.lane.b32.xlu1 %v5277_v26, %s4584_s20  ;;  %1133 = vrot.lane.b32.xlu0 %v5279_v46, %s4584_s20 }
 0x1b5   : > { %1264 = vrot.lane.b32.xlu1 %v5281_v9, %s4583_s19  ;;  %1262 = vrot.lane.b32.xlu0 %v5291_v13, %s4583_s19 }
 0x1b9   : > { %1139 = vrot.lane.b32.xlu1 %v5281_v9, %s4584_s20  ;;  %1137 = vrot.lane.b32.xlu0 %v5291_v13, %s4584_s20 }
 0x1bd   : > { %1268 = vrot.lane.b32.xlu1 %v5293_v14, %s4583_s19  ;;  %1266 = vrot.lane.b32.xlu0 %v5295_v15, %s4583_s19 }
 0x1c1   : > { %1143 = vrot.lane.b32.xlu1 %v5293_v14, %s4584_s20  ;;  %1141 = vrot.lane.b32.xlu0 %v5295_v15, %s4584_s20 }
 0x1c3   : > { %v1215_v10 = vpop.permute.xlu1 %1214  ;;  %v1086_v6 = vpop.permute.xlu0 %1085 }
 0x1c4   : > { %1182 = vst.msk [vmem:[#allocation2 + $0x1] sm:$0xff] %vm1181_vm6, %v1086_v6 }
 0x1c5   : > { %1305 = vst.msk [vmem:[#allocation2 + $0x1] sm:$0xff] %vm1304_vm7, %v1215_v10  ;;  %1272 = vrot.lane.b32.xlu1 %v971_v43, %s4583_s19  ;;  %1270 = vrot.lane.b32.xlu0 %v970_v24, %s4583_s19 }
 0x1c7   : > { %v1217_v50 = vpop.permute.xlu1 %1216  ;;  %v1088_v57 = vpop.permute.xlu0 %1087 }
 0x1c8   : > { %1183 = vst.msk [vmem:[#allocation2 + $0x9] sm:$0xff] %vm1181_vm6, %v1088_v57 }
 0x1c9   : > { %1306 = vst.msk [vmem:[#allocation2 + $0x9] sm:$0xff] %vm1304_vm7, %v1217_v50  ;;  %1147 = vrot.lane.b32.xlu1 %v971_v43, %s4584_s20  ;;  %1145 = vrot.lane.b32.xlu0 %v970_v24, %s4584_s20 }
 0x1cb   : > { %v1092_v20 = vpop.permute.xlu1 %1091  ;;  %v1090_v4 = vpop.permute.xlu0 %1089 }
 0x1cc   : > { %1185 = vst.msk [vmem:[#allocation2 + $0x21] sm:$0xff] %vm1181_vm6, %v1092_v20  ;;  %1184 = vst.msk [vmem:[#allocation2 + $0x19] sm:$0xff] %vm1181_vm6, %v1090_v4  ;;  %v1369_v23 = vld [vmem:[#allocation2 + $0x1] sm:$0xff] }
 0x1cd   : > { %4190 = vmatprep.mubr.msk.f32.mxu1 %vm972_vm2, %v1369_v23 }
 0x1cf   : > { %v1221_v19 = vpop.permute.xlu1 %1220  ;;  %v1219_v28 = vpop.permute.xlu0 %1218 }
 0x1d0   : > { %1308 = vst.msk [vmem:[#allocation2 + $0x21] sm:$0xff] %vm1304_vm7, %v1221_v19  ;;  %1307 = vst.msk [vmem:[#allocation2 + $0x19] sm:$0xff] %vm1304_vm7, %v1219_v28  ;;  %v1370_v36 = vld [vmem:[#allocation2 + $0x9] sm:$0xff] }
 0x1d1   : > { %4191 = vmatmul.mubr.msk.f32.vlgmr.msra.gmra.mrb[0].mxu1 %vm972_vm2, %v1370_v36 }
 0x1d2   : > { %4453 = vmatpush3.bf16.msk.msra.mxu1 %vm5298_vm5, %v4448_v31 }
 0x1d3   : > { %v1096_v48 = vpop.permute.xlu1 %1095  ;;  %v1094_v32 = vpop.permute.xlu0 %1093  ;;  %4456 = vmatprep.subr.msk.bf16.mxu1 %vm5298_vm5, %v5449_v29 }
 0x1d4   : > { %1187 = vst.msk [vmem:[#allocation2 + $0x39] sm:$0xff] %vm1181_vm6, %v1096_v48  ;;  %1186 = vst.msk [vmem:[#allocation2 + $0x31] sm:$0xff] %vm1181_vm6, %v1094_v32 }
 0x1d7   : > { %v1225_v60 = vpop.permute.xlu1 %1224  ;;  %v1223_v54 = vpop.permute.xlu0 %1222  ;;  %v1371_v51 = vld [vmem:[#allocation2 + $0x19] sm:$0xff]  ;;  %v1372_v59 = vld [vmem:[#allocation2 + $0x21] sm:$0xff] }
 0x1d8   : > { %1310 = vst.msk [vmem:[#allocation2 + $0x39] sm:$0xff] %vm1304_vm7, %v1225_v60  ;;  %1309 = vst.msk [vmem:[#allocation2 + $0x31] sm:$0xff] %vm1304_vm7, %v1223_v54  ;;  %4193 = vmatprep.mubr.msk.f32.mxu1 %vm972_vm2, %v1371_v51 }
 0x1d9   : > { %4194 = vmatmul.mubr.msk.f32.gmra.mrb[2].mxu1 %vm972_vm2, %v1372_v59 }
 0x1db   : > { %v1100_v55 = vpop.permute.xlu1 %1099  ;;  %v1098_v0 = vpop.permute.xlu0 %1097 }
 0x1dc   : > { %1189 = vst.msk [vmem:[#allocation2 + $0x51] sm:$0xff] %vm1181_vm6, %v1100_v55  ;;  %1188 = vst.msk [vmem:[#allocation2 + $0x49] sm:$0xff] %vm1181_vm6, %v1098_v0 }
 0x1df   : > { %v1229_v44 = vpop.permute.xlu1 %1228  ;;  %v1227_v56 = vpop.permute.xlu0 %1226  ;;  %v1373_v38 = vld [vmem:[#allocation2 + $0x31] sm:$0xff]  ;;  %v1374_v39 = vld [vmem:[#allocation2 + $0x39] sm:$0xff] }
 0x1e0   : > { %1312 = vst.msk [vmem:[#allocation2 + $0x51] sm:$0xff] %vm1304_vm7, %v1229_v44  ;;  %1311 = vst.msk [vmem:[#allocation2 + $0x49] sm:$0xff] %vm1304_vm7, %v1227_v56  ;;  %4196 = vmatprep.mubr.msk.f32.mxu1 %vm972_vm2, %v1373_v38 }
 0x1e1   : > { %4197 = vmatmul.mubr.msk.f32.gmra.mrb[4].mxu1 %vm972_vm2, %v1374_v39 }
 0x1e3   : > { %v1104_v11 = vpop.permute.xlu1 %1103  ;;  %v1102_v63 = vpop.permute.xlu0 %1101 }
 0x1e4   : > { %1191 = vst.msk [vmem:[#allocation2 + $0x69] sm:$0xff] %vm1181_vm6, %v1104_v11  ;;  %1190 = vst.msk [vmem:[#allocation2 + $0x61] sm:$0xff] %vm1181_vm6, %v1102_v63 }
 0x1e7   : > { %v1233_v40 = vpop.permute.xlu1 %1232  ;;  %v1231_v22 = vpop.permute.xlu0 %1230  ;;  %v1375_v27 = vld [vmem:[#allocation2 + $0x49] sm:$0xff]  ;;  %v1376_v42 = vld [vmem:[#allocation2 + $0x51] sm:$0xff] }
 0x1e8   : > { %1314 = vst.msk [vmem:[#allocation2 + $0x69] sm:$0xff] %vm1304_vm7, %v1233_v40  ;;  %1313 = vst.msk [vmem:[#allocation2 + $0x61] sm:$0xff] %vm1304_vm7, %v1231_v22  ;;  %4199 = vmatprep.mubr.msk.f32.mxu1 %vm972_vm2, %v1375_v27 }
 0x1e9   : > { %4200 = vmatmul.mubr.msk.f32.gmra.mrb[6].mxu1 %vm972_vm2, %v1376_v42 }
 0x1eb   : > { %v1108_v1 = vpop.permute.xlu1 %1107  ;;  %v1106_v47 = vpop.permute.xlu0 %1105 }
 0x1ec   : > { %1193 = vst.msk [vmem:[#allocation2 + $0x81] sm:$0xff] %vm1181_vm6, %v1108_v1  ;;  %1192 = vst.msk [vmem:[#allocation2 + $0x79] sm:$0xff] %vm1181_vm6, %v1106_v47 }
 0x1ef   : > { %v1237_v62 = vpop.permute.xlu1 %1236  ;;  %v1235_v2 = vpop.permute.xlu0 %1234  ;;  %v1377_v16 = vld [vmem:[#allocation2 + $0x61] sm:$0xff]  ;;  %v1378_v41 = vld [vmem:[#allocation2 + $0x69] sm:$0xff] }
 0x1f0   : > { %1316 = vst.msk [vmem:[#allocation2 + $0x81] sm:$0xff] %vm1304_vm7, %v1237_v62  ;;  %1315 = vst.msk [vmem:[#allocation2 + $0x79] sm:$0xff] %vm1304_vm7, %v1235_v2  ;;  %4202 = vmatprep.mubr.msk.f32.mxu1 %vm972_vm2, %v1377_v16  ;;  %v1335_v16 = vld [vmem:[#allocation2] sm:$0xff]  ;;  %v1344_v17 = vld [vmem:[#allocation2 + $0x68] sm:$0xff] }
 0x1f1   : > { %4203 = vmatmul.mubr.msk.f32.gmra.mrb[8].mxu1 %vm972_vm2, %v1378_v41  ;;  %v1336_v41 = vld [vmem:[#allocation2 + $0x8] sm:$0xff] }
 0x1f3   : > { %v1112_v35 = vpop.permute.xlu1 %1111  ;;  %v1110_v58 = vpop.permute.xlu0 %1109 }
 0x1f4   : > { %1195 = vst.msk [vmem:[#allocation2 + $0x99] sm:$0xff] %vm1181_vm6, %v1112_v35  ;;  %1194 = vst.msk [vmem:[#allocation2 + $0x91] sm:$0xff] %vm1181_vm6, %v1110_v58  ;;  %v1337_v35 = vld [vmem:[#allocation2 + $0x18] sm:$0xff]  ;;  %v1338_v58 = vld [vmem:[#allocation2 + $0x20] sm:$0xff] }
 0x1f7   : > { %v1241_v53 = vpop.permute.xlu1 %1240  ;;  %v1239_v7 = vpop.permute.xlu0 %1238  ;;  %v1379_v21 = vld [vmem:[#allocation2 + $0x79] sm:$0xff]  ;;  %v1380_v5 = vld [vmem:[#allocation2 + $0x81] sm:$0xff] }
 0x1f8   : > { %1318 = vst.msk [vmem:[#allocation2 + $0x99] sm:$0xff] %vm1304_vm7, %v1241_v53  ;;  %1317 = vst.msk [vmem:[#allocation2 + $0x91] sm:$0xff] %vm1304_vm7, %v1239_v7  ;;  %4205 = vmatprep.mubr.msk.f32.mxu1 %vm972_vm2, %v1379_v21  ;;  %v1339_v53 = vld [vmem:[#allocation2 + $0x30] sm:$0xff]  ;;  %v1340_v7 = vld [vmem:[#allocation2 + $0x38] sm:$0xff] }
 0x1f9   : > { %4206 = vmatmul.mubr.msk.f32.gmra.mrb[10].mxu1 %vm972_vm2, %v1380_v5  ;;  %v1341_v21 = vld [vmem:[#allocation2 + $0x48] sm:$0xff]  ;;  %v1342_v5 = vld [vmem:[#allocation2 + $0x50] sm:$0xff] }
 0x1fb   : > { %v1116_v34 = vpop.permute.xlu1 %1115  ;;  %v1114_v37 = vpop.permute.xlu0 %1113 }
 0x1fc   : > { %1197 = vst.msk [vmem:[#allocation2 + $0xb1] sm:$0xff] %vm1181_vm6, %v1116_v34  ;;  %1196 = vst.msk [vmem:[#allocation2 + $0xa9] sm:$0xff] %vm1181_vm6, %v1114_v37  ;;  %v1343_v34 = vld [vmem:[#allocation2 + $0x60] sm:$0xff] }
 0x1fd   : > { %v1346_v37 = vld [vmem:[#allocation2 + $0x80] sm:$0xff] }
 0x1ff   : > { %v1245_v45 = vpop.permute.xlu1 %1244  ;;  %v1243_v61 = vpop.permute.xlu0 %1242  ;;  %v1381_v8 = vld [vmem:[#allocation2 + $0x91] sm:$0xff]  ;;  %v1382_v3 = vld [vmem:[#allocation2 + $0x99] sm:$0xff] }
 0x200   : > { %1320 = vst.msk [vmem:[#allocation2 + $0xb1] sm:$0xff] %vm1304_vm7, %v1245_v45  ;;  %1319 = vst.msk [vmem:[#allocation2 + $0xa9] sm:$0xff] %vm1304_vm7, %v1243_v61  ;;  %4208 = vmatprep.mubr.msk.f32.mxu1 %vm972_vm2, %v1381_v8  ;;  %v1347_v45 = vld [vmem:[#allocation2 + $0x90] sm:$0xff]  ;;  %v1348_v61 = vld [vmem:[#allocation2 + $0x98] sm:$0xff] }
 0x201   : > { %4209 = vmatmul.mubr.msk.f32.gmra.mrb[12].mxu1 %vm972_vm2, %v1382_v3 }
 0x203   : > { %v1120_v18 = vpop.permute.xlu1 %1119  ;;  %v1118_v26 = vpop.permute.xlu0 %1117 }
 0x204   : > { %1199 = vst.msk [vmem:[#allocation2 + $0xc9] sm:$0xff] %vm1181_vm6, %v1120_v18  ;;  %1198 = vst.msk [vmem:[#allocation2 + $0xc1] sm:$0xff] %vm1181_vm6, %v1118_v26 }
 0x207   : > { %v1249_v46 = vpop.permute.xlu1 %1248  ;;  %v1247_v9 = vpop.permute.xlu0 %1246  ;;  %v1383_v12 = vld [vmem:[#allocation2 + $0xa9] sm:$0xff]  ;;  %v1384_v13 = vld [vmem:[#allocation2 + $0xb1] sm:$0xff] }
 0x208   : > { %1322 = vst.msk [vmem:[#allocation2 + $0xc9] sm:$0xff] %vm1304_vm7, %v1249_v46  ;;  %1321 = vst.msk [vmem:[#allocation2 + $0xc1] sm:$0xff] %vm1304_vm7, %v1247_v9  ;;  %4211 = vmatprep.mubr.msk.f32.mxu1 %vm972_vm2, %v1383_v12  ;;  %v1349_v8 = vld [vmem:[#allocation2 + $0xa8] sm:$0xff]  ;;  %v1350_v3 = vld [vmem:[#allocation2 + $0xb0] sm:$0xff] }
 0x209   : > { %4212 = vmatmul.mubr.msk.f32.gmra.mrb[14].mxu1 %vm972_vm2, %v1384_v13 }
 0x20b   : > { %v1124_v14 = vpop.permute.xlu1 %1123  ;;  %v1122_v15 = vpop.permute.xlu0 %1121 }
 0x20c   : > { %1201 = vst.msk [vmem:[#allocation2 + $0xe1] sm:$0xff] %vm1181_vm6, %v1124_v14  ;;  %1200 = vst.msk [vmem:[#allocation2 + $0xd9] sm:$0xff] %vm1181_vm6, %v1122_v15 }
 0x20f   : > { %v1253_v52 = vpop.permute.xlu1 %1252  ;;  %v1251_v33 = vpop.permute.xlu0 %1250  ;;  %v1385_v49 = vld [vmem:[#allocation2 + $0xc1] sm:$0xff]  ;;  %v1386_v31 = vld [vmem:[#allocation2 + $0xc9] sm:$0xff] }
 0x210   : > { %1324 = vst.msk [vmem:[#allocation2 + $0xe1] sm:$0xff] %vm1304_vm7, %v1253_v52  ;;  %1323 = vst.msk [vmem:[#allocation2 + $0xd9] sm:$0xff] %vm1304_vm7, %v1251_v33  ;;  %4214 = vmatprep.mubr.msk.f32.mxu1 %vm972_vm2, %v1385_v49  ;;  %v1351_v18 = vld [vmem:[#allocation2 + $0xc0] sm:$0xff]  ;;  %v1352_v26 = vld [vmem:[#allocation2 + $0xc8] sm:$0xff] }
 0x211   : > { %4215 = vmatmul.mubr.msk.f32.gmra.mrb[16].mxu1 %vm972_vm2, %v1386_v31 }
 0x213   : > { %v1128_v10 = vpop.permute.xlu1 %1127  ;;  %v1126_v6 = vpop.permute.xlu0 %1125 }
 0x214   : > { %1203 = vst.msk [vmem:[#allocation2 + $0xf9] sm:$0xff] %vm1181_vm6, %v1128_v10  ;;  %1202 = vst.msk [vmem:[#allocation2 + $0xf1] sm:$0xff] %vm1181_vm6, %v1126_v6 }
 0x217   : > { %v1257_v43 = vpop.permute.xlu1 %1256  ;;  %v1255_v24 = vpop.permute.xlu0 %1254  ;;  %v1387_v50 = vld [vmem:[#allocation2 + $0xd9] sm:$0xff]  ;;  %v1388_v57 = vld [vmem:[#allocation2 + $0xe1] sm:$0xff] }
 0x218   : > { %1326 = vst.msk [vmem:[#allocation2 + $0xf9] sm:$0xff] %vm1304_vm7, %v1257_v43  ;;  %1325 = vst.msk [vmem:[#allocation2 + $0xf1] sm:$0xff] %vm1304_vm7, %v1255_v24  ;;  %4217 = vmatprep.mubr.msk.f32.mxu1 %vm972_vm2, %v1387_v50  ;;  %v1353_v46 = vld [vmem:[#allocation2 + $0xd8] sm:$0xff]  ;;  %v1354_v9 = vld [vmem:[#allocation2 + $0xe0] sm:$0xff] }
 0x219   : > { %4218 = vmatmul.mubr.msk.f32.gmra.mrb[18].mxu1 %vm972_vm2, %v1388_v57  ;;  %v2052_v50 = vld [vmem:[#allocation2 + $0x2] sm:$0xff]  ;;  %v2053_v57 = vld [vmem:[#allocation2 + $0xa] sm:$0xff] }
 0x21b   : > { %v1132_v20 = vpop.permute.xlu1 %1131  ;;  %v1130_v4 = vpop.permute.xlu0 %1129 }
 0x21c   : > { %1205 = vst.msk [vmem:[#allocation2 + $0x111] sm:$0xff] %vm1181_vm6, %v1132_v20  ;;  %1204 = vst.msk [vmem:[#allocation2 + $0x109] sm:$0xff] %vm1181_vm6, %v1130_v4  ;;  %v2054_v20 = vld [vmem:[#allocation2 + $0x1a] sm:$0xff]  ;;  %v2055_v4 = vld [vmem:[#allocation2 + $0x22] sm:$0xff] }
 0x21f   : > { %v1261_v23 = vpop.permute.xlu1 %1260  ;;  %v1259_v30 = vpop.permute.xlu0 %1258  ;;  %v1389_v25 = vld [vmem:[#allocation2 + $0xf1] sm:$0xff]  ;;  %v1390_v19 = vld [vmem:[#allocation2 + $0xf9] sm:$0xff] }
 0x220   : > { %1328 = vst.msk [vmem:[#allocation2 + $0x111] sm:$0xff] %vm1304_vm7, %v1261_v23  ;;  %1327 = vst.msk [vmem:[#allocation2 + $0x109] sm:$0xff] %vm1304_vm7, %v1259_v30  ;;  %4220 = vmatprep.mubr.msk.f32.mxu1 %vm972_vm2, %v1389_v25  ;;  %v1355_v12 = vld [vmem:[#allocation2 + $0xf0] sm:$0xff]  ;;  %v1356_v13 = vld [vmem:[#allocation2 + $0xf8] sm:$0xff] }
 0x221   : > { %4221 = vmatmul.mubr.msk.f32.gmra.mrb[20].mxu1 %vm972_vm2, %v1390_v19  ;;  %v2056_v23 = vld [vmem:[#allocation2 + $0x32] sm:$0xff]  ;;  %v2057_v30 = vld [vmem:[#allocation2 + $0x3a] sm:$0xff]  ;;  %v2058_v25 = vld [vmem:[#allocation2 + $0x4a] sm:$0xff] }
 0x222   : > { %v2059_v19 = vld [vmem:[#allocation2 + $0x52] sm:$0xff] }
 0x223   : > { %v1136_v28 = vpop.permute.xlu1 %1135  ;;  %v1134_v36 = vpop.permute.xlu0 %1133 }
 0x224   : > { %1207 = vst.msk [vmem:[#allocation2 + $0x129] sm:$0xff] %vm1181_vm6, %v1136_v28  ;;  %1206 = vst.msk [vmem:[#allocation2 + $0x121] sm:$0xff] %vm1181_vm6, %v1134_v36  ;;  %v2060_v28 = vld [vmem:[#allocation2 + $0x62] sm:$0xff]  ;;  %v2061_v36 = vld [vmem:[#allocation2 + $0x6a] sm:$0xff] }
 0x227   : > { %v1265_v48 = vpop.permute.xlu1 %1264  ;;  %v1263_v32 = vpop.permute.xlu0 %1262  ;;  %v1391_v60 = vld [vmem:[#allocation2 + $0x109] sm:$0xff]  ;;  %v1392_v54 = vld [vmem:[#allocation2 + $0x111] sm:$0xff] }
 0x228   : > { %1330 = vst.msk [vmem:[#allocation2 + $0x129] sm:$0xff] %vm1304_vm7, %v1265_v48  ;;  %1329 = vst.msk [vmem:[#allocation2 + $0x121] sm:$0xff] %vm1304_vm7, %v1263_v32  ;;  %4223 = vmatprep.mubr.msk.f32.mxu1 %vm972_vm2, %v1391_v60  ;;  %v1357_v14 = vld [vmem:[#allocation2 + $0x108] sm:$0xff]  ;;  %v1358_v15 = vld [vmem:[#allocation2 + $0x110] sm:$0xff] }
 0x229   : > { %4224 = vmatmul.mubr.msk.f32.gmra.mrb[22].mxu1 %vm972_vm2, %v1392_v54  ;;  %v2062_v48 = vld [vmem:[#allocation2 + $0x7a] sm:$0xff]  ;;  %v2063_v32 = vld [vmem:[#allocation2 + $0x82] sm:$0xff]  ;;  %v2064_v60 = vld [vmem:[#allocation2 + $0x92] sm:$0xff] }
 0x22a   : > { %v2065_v54 = vld [vmem:[#allocation2 + $0x9a] sm:$0xff] }
 0x22b   : > { %v1140_v51 = vpop.permute.xlu1 %1139  ;;  %v1138_v59 = vpop.permute.xlu0 %1137 }
 0x22c   : > { %1209 = vst.msk [vmem:[#allocation2 + $0x141] sm:$0xff] %vm1181_vm6, %v1140_v51  ;;  %1208 = vst.msk [vmem:[#allocation2 + $0x139] sm:$0xff] %vm1181_vm6, %v1138_v59  ;;  %v2066_v51 = vld [vmem:[#allocation2 + $0xaa] sm:$0xff]  ;;  %v2067_v59 = vld [vmem:[#allocation2 + $0xb2] sm:$0xff] }
 0x22f   : > { %v1269_v55 = vpop.permute.xlu1 %1268  ;;  %v1267_v0 = vpop.permute.xlu0 %1266  ;;  %v1393_v44 = vld [vmem:[#allocation2 + $0x121] sm:$0xff]  ;;  %v1394_v56 = vld [vmem:[#allocation2 + $0x129] sm:$0xff] }
 0x230   : > { %1332 = vst.msk [vmem:[#allocation2 + $0x141] sm:$0xff] %vm1304_vm7, %v1269_v55  ;;  %1331 = vst.msk [vmem:[#allocation2 + $0x139] sm:$0xff] %vm1304_vm7, %v1267_v0  ;;  %4226 = vmatprep.mubr.msk.f32.mxu1 %vm972_vm2, %v1393_v44  ;;  %v1359_v52 = vld [vmem:[#allocation2 + $0x120] sm:$0xff]  ;;  %v1360_v33 = vld [vmem:[#allocation2 + $0x128] sm:$0xff] }
 0x231   : > { %4227 = vmatmul.mubr.msk.f32.gmra.mrb[24].mxu1 %vm972_vm2, %v1394_v56  ;;  %v2068_v55 = vld [vmem:[#allocation2 + $0xc2] sm:$0xff]  ;;  %v2069_v0 = vld [vmem:[#allocation2 + $0xca] sm:$0xff]  ;;  %v2070_v44 = vld [vmem:[#allocation2 + $0xda] sm:$0xff] }
 0x232   : > { %v2071_v56 = vld [vmem:[#allocation2 + $0xe2] sm:$0xff] }
 0x233   : > { %v1144_v38 = vpop.permute.xlu1 %1143  ;;  %v1142_v39 = vpop.permute.xlu0 %1141 }
 0x234   : > { %1211 = vst.msk [vmem:[#allocation2 + $0x159] sm:$0xff] %vm1181_vm6, %v1144_v38  ;;  %1210 = vst.msk [vmem:[#allocation2 + $0x151] sm:$0xff] %vm1181_vm6, %v1142_v39  ;;  %v2072_v38 = vld [vmem:[#allocation2 + $0xf2] sm:$0xff]  ;;  %v2073_v39 = vld [vmem:[#allocation2 + $0xfa] sm:$0xff] }
 0x237   : > { %v1273_v11 = vpop.permute.xlu1 %1272  ;;  %v1271_v63 = vpop.permute.xlu0 %1270  ;;  %v1395_v40 = vld [vmem:[#allocation2 + $0x139] sm:$0xff]  ;;  %v1396_v22 = vld [vmem:[#allocation2 + $0x141] sm:$0xff] }
 0x238   : > { %1334 = vst.msk [vmem:[#allocation2 + $0x159] sm:$0xff] %vm1304_vm7, %v1273_v11  ;;  %1333 = vst.msk [vmem:[#allocation2 + $0x151] sm:$0xff] %vm1304_vm7, %v1271_v63  ;;  %4229 = vmatprep.mubr.msk.f32.mxu1 %vm972_vm2, %v1395_v40  ;;  %v1361_v49 = vld [vmem:[#allocation2 + $0x138] sm:$0xff]  ;;  %v1362_v31 = vld [vmem:[#allocation2 + $0x140] sm:$0xff] }
 0x239   : > { %4230 = vmatmul.mubr.msk.f32.gmra.mrb[26].mxu1 %vm972_vm2, %v1396_v22  ;;  %v2074_v11 = vld [vmem:[#allocation2 + $0x10a] sm:$0xff]  ;;  %v2075_v63 = vld [vmem:[#allocation2 + $0x112] sm:$0xff]  ;;  %v2076_v40 = vld [vmem:[#allocation2 + $0x122] sm:$0xff] }
 0x23a   : > { %v2077_v22 = vld [vmem:[#allocation2 + $0x12a] sm:$0xff] }
 0x23b   : > { %v1148_v27 = vpop.permute.xlu1 %1147  ;;  %v1146_v42 = vpop.permute.xlu0 %1145 }
 0x23c   : > { %1213 = vst.msk [vmem:[#allocation2 + $0x171] sm:$0xff] %vm1181_vm6, %v1148_v27  ;;  %1212 = vst.msk [vmem:[#allocation2 + $0x169] sm:$0xff] %vm1181_vm6, %v1146_v42  ;;  %v2078_v27 = vld [vmem:[#allocation2 + $0x13a] sm:$0xff]  ;;  %v2079_v42 = vld [vmem:[#allocation2 + $0x142] sm:$0xff] }
 0x23f   : > { %v1397_v1 = vld [vmem:[#allocation2 + $0x151] sm:$0xff]  ;;  %v1398_v47 = vld [vmem:[#allocation2 + $0x159] sm:$0xff] }
 0x240   : > { %4232 = vmatprep.mubr.msk.f32.mxu1 %vm972_vm2, %v1397_v1  ;;  %v1363_v10 = vld [vmem:[#allocation2 + $0x150] sm:$0xff]  ;;  %v1364_v6 = vld [vmem:[#allocation2 + $0x158] sm:$0xff] }
 0x241   : > { %4233 = vmatmul.mubr.msk.f32.gmra.mrb[28].mxu1 %vm972_vm2, %v1398_v47  ;;  %v2080_v1 = vld [vmem:[#allocation2 + $0x152] sm:$0xff]  ;;  %v2081_v47 = vld [vmem:[#allocation2 + $0x15a] sm:$0xff] }
 0x243   : > { %v1399_v62 = vld [vmem:[#allocation2 + $0x169] sm:$0xff]  ;;  %v1400_v2 = vld [vmem:[#allocation2 + $0x171] sm:$0xff] }
 0x244   : > { %4235 = vmatprep.mubr.msk.f32.mxu1 %vm972_vm2, %v1399_v62  ;;  %v1365_v43 = vld [vmem:[#allocation2 + $0x168] sm:$0xff]  ;;  %v1366_v24 = vld [vmem:[#allocation2 + $0x170] sm:$0xff] }
 0x245   : > { %4236 = vmatmul.mubr.msk.f32.gmra.mrb[30].mxu1 %vm972_vm2, %v1400_v2  ;;  %v2082_v62 = vld [vmem:[#allocation2 + $0x16a] sm:$0xff]  ;;  %v2083_v2 = vld [vmem:[#allocation2 + $0x172] sm:$0xff] }
 0x246   : > { %4242 = vmatprep.mubr.msk.f32.mxu1 %vm972_vm2, %v1335_v16  ;;  %v2755_v16 = vld [vmem:[%s6633_s5] sm:$0xf] }
 0x247   : > { %4342 = vmatprep.subr.msk.mxu0 %vm470_vm0, %v2755_v16 }
 0x248   : > { %4343 = vmatpush3.msk.msra.mxu0 %vm470_vm0, %v2755_v16 }
 0x249   : > { %4243 = vmatmul.mubr.msk.f32.vlgmr.msra.gmra.mrb[0].mxu1 %vm972_vm2, %v1336_v41  ;;  %v5618_v41 = vld [vmem:[%s6635_s7] sm:$0xf] }
 0x24a   : > { %4459 = vmatpush3.bf16.msk.msra.mxu1 %vm5298_vm5, %v5449_v29  ;;  %4245 = vmatprep.mubr.msk.f32.mxu1 %vm972_vm2, %v1337_v35  ;;  %v1345_v29 = vld [vmem:[#allocation2 + $0x78] sm:$0xff]  ;;  %v5625_v35 = vld [vmem:[%s6632_s4] ss:$0 sm:$0xff] }
 0x24b   : > { %4392 = vmatprep.subr.msk.mxu0 %vm470_vm0, %v5618_v41 }
 0x24d   : > { %4246 = vmatmul.mubr.msk.f32.gmra.mrb[2].mxu1 %vm972_vm2, %v1338_v58 }
 0x24e   : > { %4248 = vmatprep.mubr.msk.f32.mxu1 %vm972_vm2, %v1339_v53 }
 0x251   : > { %4249 = vmatmul.mubr.msk.f32.gmra.mrb[4].mxu1 %vm972_vm2, %v1340_v7 }
 0x252   : > { %4251 = vmatprep.mubr.msk.f32.mxu1 %vm972_vm2, %v1341_v21 }
 0x255   : > { %4252 = vmatmul.mubr.msk.f32.gmra.mrb[6].mxu1 %vm972_vm2, %v1342_v5 }
 0x256   : > { %4254 = vmatprep.mubr.msk.f32.mxu1 %vm972_vm2, %v1343_v34 }
 0x259   : > { %4255 = vmatmul.mubr.msk.f32.gmra.mrb[8].mxu1 %vm972_vm2, %v1344_v17 }
 0x25a   : > { %4257 = vmatprep.mubr.msk.f32.mxu1 %vm972_vm2, %v1345_v29 }
 0x25d   : > { %4258 = vmatmul.mubr.msk.f32.gmra.mrb[10].mxu1 %vm972_vm2, %v1346_v37 }
 0x25e   : > { %4260 = vmatprep.mubr.msk.f32.mxu1 %vm972_vm2, %v1347_v45 }
 0x261   : > { %4261 = vmatmul.mubr.msk.f32.gmra.mrb[12].mxu1 %vm972_vm2, %v1348_v61 }
 0x262   : > { %4263 = vmatprep.mubr.msk.f32.mxu1 %vm972_vm2, %v1349_v8 }
 0x265   : > { %4264 = vmatmul.mubr.msk.f32.gmra.mrb[14].mxu1 %vm972_vm2, %v1350_v3 }
 0x266   : > { %4266 = vmatprep.mubr.msk.f32.mxu1 %vm972_vm2, %v1351_v18 }
 0x269   : > { %4267 = vmatmul.mubr.msk.f32.gmra.mrb[16].mxu1 %vm972_vm2, %v1352_v26 }
 0x26a   : > { %4269 = vmatprep.mubr.msk.f32.mxu1 %vm972_vm2, %v1353_v46 }
 0x26d   : > { %4270 = vmatmul.mubr.msk.f32.gmra.mrb[18].mxu1 %vm972_vm2, %v1354_v9 }
 0x26e   : > { %4272 = vmatprep.mubr.msk.f32.mxu1 %vm972_vm2, %v1355_v12 }
 0x271   : > { %4273 = vmatmul.mubr.msk.f32.gmra.mrb[20].mxu1 %vm972_vm2, %v1356_v13 }
 0x272   : > { %4275 = vmatprep.mubr.msk.f32.mxu1 %vm972_vm2, %v1357_v14 }
 0x275   : > { %4276 = vmatmul.mubr.msk.f32.gmra.mrb[22].mxu1 %vm972_vm2, %v1358_v15 }
 0x276   : > { %4278 = vmatprep.mubr.msk.f32.mxu1 %vm972_vm2, %v1359_v52 }
 0x279   : > { %4279 = vmatmul.mubr.msk.f32.gmra.mrb[24].mxu1 %vm972_vm2, %v1360_v33 }
 0x27a   : > { %4281 = vmatprep.mubr.msk.f32.mxu1 %vm972_vm2, %v1361_v49 }
 0x27d   : > { %4282 = vmatmul.mubr.msk.f32.gmra.mrb[26].mxu1 %vm972_vm2, %v1362_v31 }
 0x27e   : > { %4284 = vmatprep.mubr.msk.f32.mxu1 %vm972_vm2, %v1363_v10 }
 0x281   : > { %4285 = vmatmul.mubr.msk.f32.gmra.mrb[28].mxu1 %vm972_vm2, %v1364_v6 }
 0x282   : > { %4287 = vmatprep.mubr.msk.f32.mxu1 %vm972_vm2, %v1365_v43 }
 0x285   : > { %4288 = vmatmul.mubr.msk.f32.gmra.mrb[30].mxu1 %vm972_vm2, %v1366_v24 }
 0x286   : > { %4294 = vmatprep.mubr.msk.f32.mxu1 %vm972_vm2, %v2052_v50 }
 0x289   : > { %4295 = vmatmul.mubr.msk.f32.vlgmr.msra.gmra.mrb[0].mxu1 %vm972_vm2, %v2053_v57 }
 0x28a   : > { %4297 = vmatprep.mubr.msk.f32.mxu1 %vm972_vm2, %v2054_v20 }
 0x28d   : > { %4298 = vmatmul.mubr.msk.f32.gmra.mrb[2].mxu1 %vm972_vm2, %v2055_v4 }
 0x28e   : > { %4300 = vmatprep.mubr.msk.f32.mxu1 %vm972_vm2, %v2056_v23 }
 0x291   : > { %4301 = vmatmul.mubr.msk.f32.gmra.mrb[4].mxu1 %vm972_vm2, %v2057_v30 }
 0x292   : > { %4303 = vmatprep.mubr.msk.f32.mxu1 %vm972_vm2, %v2058_v25 }
 0x295   : > { %4304 = vmatmul.mubr.msk.f32.gmra.mrb[6].mxu1 %vm972_vm2, %v2059_v19 }
 0x296   : > { %4306 = vmatprep.mubr.msk.f32.mxu1 %vm972_vm2, %v2060_v28 }
 0x299   : > { %4307 = vmatmul.mubr.msk.f32.gmra.mrb[8].mxu1 %vm972_vm2, %v2061_v36 }
 0x29a   : > { %4309 = vmatprep.mubr.msk.f32.mxu1 %vm972_vm2, %v2062_v48 }
 0x29d   : > { %4310 = vmatmul.mubr.msk.f32.gmra.mrb[10].mxu1 %vm972_vm2, %v2063_v32 }
 0x29e   : > { %4312 = vmatprep.mubr.msk.f32.mxu1 %vm972_vm2, %v2064_v60 }
 0x2a1   : > { %4313 = vmatmul.mubr.msk.f32.gmra.mrb[12].mxu1 %vm972_vm2, %v2065_v54 }
 0x2a2   : > { %4315 = vmatprep.mubr.msk.f32.mxu1 %vm972_vm2, %v2066_v51 }
 0x2a5   : > { %4316 = vmatmul.mubr.msk.f32.gmra.mrb[14].mxu1 %vm972_vm2, %v2067_v59 }
 0x2a6   : > { %4318 = vmatprep.mubr.msk.f32.mxu1 %vm972_vm2, %v2068_v55 }
 0x2a9   : > { %4319 = vmatmul.mubr.msk.f32.gmra.mrb[16].mxu1 %vm972_vm2, %v2069_v0 }
 0x2aa   : > { %4321 = vmatprep.mubr.msk.f32.mxu1 %vm972_vm2, %v2070_v44 }
 0x2ad   : > { %4322 = vmatmul.mubr.msk.f32.gmra.mrb[18].mxu1 %vm972_vm2, %v2071_v56 }
 0x2ae   : > { %4324 = vmatprep.mubr.msk.f32.mxu1 %vm972_vm2, %v2072_v38 }
 0x2b1   : > { %4325 = vmatmul.mubr.msk.f32.gmra.mrb[20].mxu1 %vm972_vm2, %v2073_v39 }
 0x2b2   : > { %4327 = vmatprep.mubr.msk.f32.mxu1 %vm972_vm2, %v2074_v11 }
 0x2b5   : > { %4328 = vmatmul.mubr.msk.f32.gmra.mrb[22].mxu1 %vm972_vm2, %v2075_v63 }
 0x2b6   : > { %4330 = vmatprep.mubr.msk.f32.mxu1 %vm972_vm2, %v2076_v40 }
 0x2b9   : > { %4331 = vmatmul.mubr.msk.f32.gmra.mrb[24].mxu1 %vm972_vm2, %v2077_v22 }
 0x2ba   : > { %4333 = vmatprep.mubr.msk.f32.mxu1 %vm972_vm2, %v2078_v27 }
 0x2bd   : > { %4334 = vmatmul.mubr.msk.f32.gmra.mrb[26].mxu1 %vm972_vm2, %v2079_v42 }
 0x2be   : > { %4336 = vmatprep.mubr.msk.f32.mxu1 %vm972_vm2, %v2080_v1 }
 0x2c1   : > { %4337 = vmatmul.mubr.msk.f32.gmra.mrb[28].mxu1 %vm972_vm2, %v2081_v47 }
 0x2c2   : > { %4339 = vmatprep.mubr.msk.f32.mxu1 %vm972_vm2, %v2082_v62 }
 0x2c5   : > { %4340 = vmatmul.mubr.msk.f32.gmra.mrb[30].mxu1 %vm972_vm2, %v2083_v2 }
 0x35c   : > { %v4296_v58 = vpop.f32.mrb[0].mxu1 }
 0x35d   : > { %v5628_v53 = vadd.f32 %v4296_v58, %v5625_v35  ;;  %v2252_v7 = vpop.f32.mrb[1].mxu1 }
 0x35e   : > { %v5631_v21 = vadd.f32 %v5625_v35, %v2252_v7 }
 0x35f   : > { %v2553_v5 = vmul.f32 %v5628_v53, %v5628_v53  ;;  %v2483_v34 = vsel %vm373_vm1, %v5628_v53, 0.0 }
 0x360   : > { %v2482_v17 = vsel %vm373_vm1, %v5631_v21, 0.0  ;;  %v2552_v29 = vmul.f32 %v5631_v21, %v5631_v21  ;;  %v4299_v37 = vpop.f32.mrb[2].mxu1 }
 0x361   : > { %v5642_v45 = vadd.f32 %v4299_v37, %v5625_v35  ;;  %v2262_v61 = vpop.f32.mrb[3].mxu1  ;;  %v2585_v8 = vsel %vm373_vm1, %v2553_v5, 0.0  ;;  %v2484_v26 = vadd.f32 %v2483_v34, %v2482_v17 }
 0x362   : > { %v2584_v3 = vsel %vm373_vm1, %v2552_v29, 0.0  ;;  %v5647_v18 = vadd.f32 %v5625_v35, %v2262_v61 }
 0x363   : > { %v2555_v46 = vmul.f32 %v5642_v45, %v5642_v45  ;;  %v2586_v14 = vadd.f32 %v2585_v8, %v2584_v3  ;;  %v2487_v49 = vsel %vm373_vm1, %v5642_v45, 0.0 }
 0x364   : > { %v2485_v9 = vsel %vm373_vm1, %v5647_v18, 0.0  ;;  %v2554_v12 = vmul.f32 %v5647_v18, %v5647_v18  ;;  %v4302_v13 = vpop.f32.mrb[4].mxu1 }
 0x365   : > { %v2486_v15 = vadd.f32 %v2485_v9, %v2484_v26  ;;  %v5656_v52 = vadd.f32 %v4302_v13, %v5625_v35  ;;  %v2272_v33 = vpop.f32.mrb[5].mxu1  ;;  %v2589_v24 = vsel %vm373_vm1, %v2555_v46, 0.0 }
 0x366   : > { %v2587_v31 = vsel %vm373_vm1, %v2554_v12, 0.0  ;;  %v5662_v10 = vadd.f32 %v5625_v35, %v2272_v33 }
 0x367   : > { %v2588_v6 = vadd.f32 %v2587_v31, %v2586_v14  ;;  %v2488_v43 = vadd.f32 %v2487_v49, %v2486_v15  ;;  %v2557_v50 = vmul.f32 %v5656_v52, %v5656_v52  ;;  %v2491_v28 = vsel %vm373_vm1, %v5656_v52, 0.0 }
 0x368   : > { %v2489_v57 = vsel %vm373_vm1, %v5662_v10, 0.0  ;;  %v2556_v20 = vmul.f32 %v5662_v10, %v5662_v10  ;;  %v4305_v4 = vpop.f32.mrb[6].mxu1 }
 0x369   : > { %v2490_v23 = vadd.f32 %v2489_v57, %v2488_v43  ;;  %v2590_v30 = vadd.f32 %v2589_v24, %v2588_v6  ;;  %v5672_v25 = vadd.f32 %v4305_v4, %v5625_v35  ;;  %v2282_v19 = vpop.f32.mrb[7].mxu1  ;;  %v2593_v54 = vsel %vm373_vm1, %v2557_v50, 0.0 }
 0x36a   : > { %v2591_v36 = vsel %vm373_vm1, %v2556_v20, 0.0  ;;  %v5678_v48 = vadd.f32 %v5625_v35, %v2282_v19 }
 0x36b   : > { %v2592_v32 = vadd.f32 %v2591_v36, %v2590_v30  ;;  %v2492_v60 = vadd.f32 %v2491_v28, %v2490_v23  ;;  %v2559_v51 = vmul.f32 %v5672_v25, %v5672_v25  ;;  %v2495_v11 = vsel %vm373_vm1, %v5672_v25, 0.0 }
 0x36c   : > { %v2493_v59 = vsel %vm373_vm1, %v5678_v48, 0.0  ;;  %v2558_v55 = vmul.f32 %v5678_v48, %v5678_v48  ;;  %v4308_v0 = vpop.f32.mrb[8].mxu1 }
 0x36d   : > { %v2494_v44 = vadd.f32 %v2493_v59, %v2492_v60  ;;  %v2594_v56 = vadd.f32 %v2593_v54, %v2592_v32  ;;  %v5688_v38 = vadd.f32 %v4308_v0, %v5625_v35  ;;  %v2292_v39 = vpop.f32.mrb[9].mxu1  ;;  %v2597_v42 = vsel %vm373_vm1, %v2559_v51, 0.0 }
 0x36e   : > { %v2595_v63 = vsel %vm373_vm1, %v2558_v55, 0.0  ;;  %v5694_v40 = vadd.f32 %v5625_v35, %v2292_v39 }
 0x36f   : > { %v2596_v22 = vadd.f32 %v2595_v63, %v2594_v56  ;;  %v2496_v27 = vadd.f32 %v2495_v11, %v2494_v44  ;;  %v2561_v1 = vmul.f32 %v5688_v38, %v5688_v38  ;;  %v2499_v34 = vsel %vm373_vm1, %v5688_v38, 0.0 }
 0x370   : > { %v2497_v47 = vsel %vm373_vm1, %v5694_v40, 0.0  ;;  %v2560_v62 = vmul.f32 %v5694_v40, %v5694_v40  ;;  %v4311_v2 = vpop.f32.mrb[10].mxu1 }
 0x371   : > { %v2498_v16 = vadd.f32 %v2497_v47, %v2496_v27  ;;  %v2598_v58 = vadd.f32 %v2597_v42, %v2596_v22  ;;  %v5704_v7 = vadd.f32 %v4311_v2, %v5625_v35  ;;  %v2302_v5 = vpop.f32.mrb[11].mxu1  ;;  %v2601_v8 = vsel %vm373_vm1, %v2561_v1, 0.0 }
 0x372   : > { %v2599_v17 = vsel %vm373_vm1, %v2560_v62, 0.0  ;;  %v5710_v29 = vadd.f32 %v5625_v35, %v2302_v5 }
 0x373   : > { %v2600_v37 = vadd.f32 %v2599_v17, %v2598_v58  ;;  %v2500_v61 = vadd.f32 %v2499_v34, %v2498_v16  ;;  %v2563_v3 = vmul.f32 %v5704_v7, %v5704_v7  ;;  %v2503_v33 = vsel %vm373_vm1, %v5704_v7, 0.0 }
 0x374   : > { %v2501_v26 = vsel %vm373_vm1, %v5710_v29, 0.0  ;;  %v2562_v46 = vmul.f32 %v5710_v29, %v5710_v29  ;;  %v4314_v9 = vpop.f32.mrb[12].mxu1 }
 0x375   : > { %v2502_v12 = vadd.f32 %v2501_v26, %v2500_v61  ;;  %v2602_v13 = vadd.f32 %v2601_v8, %v2600_v37  ;;  %v5720_v14 = vadd.f32 %v4314_v9, %v5625_v35  ;;  %v2312_v15 = vpop.f32.mrb[13].mxu1  ;;  %v2605_v24 = vsel %vm373_vm1, %v2563_v3, 0.0 }
 0x376   : > { %v2603_v49 = vsel %vm373_vm1, %v2562_v46, 0.0  ;;  %v5726_v31 = vadd.f32 %v5625_v35, %v2312_v15 }
 0x377   : > { %v2604_v6 = vadd.f32 %v2603_v49, %v2602_v13  ;;  %v2504_v43 = vadd.f32 %v2503_v33, %v2502_v12  ;;  %v2565_v50 = vmul.f32 %v5720_v14, %v5720_v14  ;;  %v2507_v36 = vsel %vm373_vm1, %v5720_v14, 0.0 }
 0x378   : > { %v2505_v57 = vsel %vm373_vm1, %v5726_v31, 0.0  ;;  %v2564_v20 = vmul.f32 %v5726_v31, %v5726_v31  ;;  %v4317_v4 = vpop.f32.mrb[14].mxu1 }
 0x379   : > { %v2506_v23 = vadd.f32 %v2505_v57, %v2504_v43  ;;  %v2606_v30 = vadd.f32 %v2605_v24, %v2604_v6  ;;  %v5736_v19 = vadd.f32 %v4317_v4, %v5625_v35  ;;  %v2322_v28 = vpop.f32.mrb[15].mxu1  ;;  %v2609_v59 = vsel %vm373_vm1, %v2565_v50, 0.0 }
 0x37a   : > { %v2607_v32 = vsel %vm373_vm1, %v2564_v20, 0.0  ;;  %v5742_v60 = vadd.f32 %v5625_v35, %v2322_v28 }
 0x37b   : > { %v2608_v54 = vadd.f32 %v2607_v32, %v2606_v30  ;;  %v2508_v51 = vadd.f32 %v2507_v36, %v2506_v23  ;;  %v2567_v55 = vmul.f32 %v5736_v19, %v5736_v19  ;;  %v2511_v27 = vsel %vm373_vm1, %v5736_v19, 0.0 }
 0x37c   : > { %v2509_v0 = vsel %vm373_vm1, %v5742_v60, 0.0  ;;  %v2566_v44 = vmul.f32 %v5742_v60, %v5742_v60  ;;  %v4320_v56 = vpop.f32.mrb[16].mxu1 }
 0x37d   : > { %v2510_v39 = vadd.f32 %v2509_v0, %v2508_v51  ;;  %v2610_v11 = vadd.f32 %v2609_v59, %v2608_v54  ;;  %v5752_v63 = vadd.f32 %v4320_v56, %v5625_v35  ;;  %v2332_v22 = vpop.f32.mrb[17].mxu1  ;;  %v2613_v2 = vsel %vm373_vm1, %v2567_v55, 0.0 }
 0x37e   : > { %v2611_v42 = vsel %vm373_vm1, %v2566_v44, 0.0  ;;  %v5758_v1 = vadd.f32 %v5625_v35, %v2332_v22 }
 0x37f   : > { %v2612_v47 = vadd.f32 %v2611_v42, %v2610_v11  ;;  %v2512_v62 = vadd.f32 %v2511_v27, %v2510_v39  ;;  %v2569_v16 = vmul.f32 %v5752_v63, %v5752_v63  ;;  %v2515_v3 = vsel %vm373_vm1, %v5752_v63, 0.0 }
 0x380   : > { %v2513_v58 = vsel %vm373_vm1, %v5758_v1, 0.0  ;;  %v2568_v5 = vmul.f32 %v5758_v1, %v5758_v1  ;;  %v4323_v34 = vpop.f32.mrb[18].mxu1 }
 0x381   : > { %v2514_v17 = vadd.f32 %v2513_v58, %v2512_v62  ;;  %v2614_v37 = vadd.f32 %v2613_v2, %v2612_v47  ;;  %v5768_v61 = vadd.f32 %v4323_v34, %v5625_v35  ;;  %v2342_v8 = vpop.f32.mrb[19].mxu1  ;;  %v2617_v13 = vsel %vm373_vm1, %v2569_v16, 0.0 }
 0x382   : > { %v2615_v26 = vsel %vm373_vm1, %v2568_v5, 0.0  ;;  %v5774_v46 = vadd.f32 %v5625_v35, %v2342_v8 }
 0x383   : > { %v2616_v9 = vadd.f32 %v2615_v26, %v2614_v37  ;;  %v2516_v12 = vadd.f32 %v2515_v3, %v2514_v17  ;;  %v2571_v15 = vmul.f32 %v5768_v61, %v5768_v61  ;;  %v2519_v20 = vsel %vm373_vm1, %v5768_v61, 0.0 }
 0x384   : > { %v2517_v33 = vsel %vm373_vm1, %v5774_v46, 0.0  ;;  %v2570_v49 = vmul.f32 %v5774_v46, %v5774_v46  ;;  %v4326_v6 = vpop.f32.mrb[20].mxu1 }
 0x385   : > { %v2518_v43 = vadd.f32 %v2517_v33, %v2516_v12  ;;  %v2618_v24 = vadd.f32 %v2617_v13, %v2616_v9  ;;  %v5784_v50 = vadd.f32 %v4326_v6, %v5625_v35  ;;  %v2352_v57 = vpop.f32.mrb[21].mxu1  ;;  %v2621_v36 = vsel %vm373_vm1, %v2571_v15, 0.0 }
 0x386   : > { %v2619_v4 = vsel %vm373_vm1, %v2570_v49, 0.0  ;;  %v5790_v23 = vadd.f32 %v5625_v35, %v2352_v57 }
 0x387   : > { %v2620_v30 = vadd.f32 %v2619_v4, %v2618_v24  ;;  %v2520_v28 = vadd.f32 %v2519_v20, %v2518_v43  ;;  %v2573_v32 = vmul.f32 %v5784_v50, %v5784_v50  ;;  %v2523_v39 = vsel %vm373_vm1, %v5784_v50, 0.0 }
 0x388   : > { %v2521_v54 = vsel %vm373_vm1, %v5790_v23, 0.0  ;;  %v2572_v51 = vmul.f32 %v5790_v23, %v5790_v23  ;;  %v4329_v59 = vpop.f32.mrb[22].mxu1 }
 0x389   : > { %v2522_v55 = vadd.f32 %v2521_v54, %v2520_v28  ;;  %v2622_v0 = vadd.f32 %v2621_v36, %v2620_v30  ;;  %v5800_v44 = vadd.f32 %v4329_v59, %v5625_v35  ;;  %v2362_v56 = vpop.f32.mrb[23].mxu1  ;;  %v2625_v47 = vsel %vm373_vm1, %v2573_v32, 0.0 }
 0x38a   : > { %v2623_v11 = vsel %vm373_vm1, %v2572_v51, 0.0  ;;  %v5806_v22 = vadd.f32 %v5625_v35, %v2362_v56 }
 0x38b   : > { %v2624_v27 = vadd.f32 %v2623_v11, %v2622_v0  ;;  %v2524_v42 = vadd.f32 %v2523_v39, %v2522_v55  ;;  %v2575_v62 = vmul.f32 %v5800_v44, %v5800_v44  ;;  %v2527_v8 = vsel %vm373_vm1, %v5800_v44, 0.0 }
 0x38c   : > { %v2525_v2 = vsel %vm373_vm1, %v5806_v22, 0.0  ;;  %v2574_v16 = vmul.f32 %v5806_v22, %v5806_v22  ;;  %v4332_v58 = vpop.f32.mrb[24].mxu1 }
 0x38d   : > { %v2526_v5 = vadd.f32 %v2525_v2, %v2524_v42  ;;  %v2626_v34 = vadd.f32 %v2625_v47, %v2624_v27  ;;  %v5816_v17 = vadd.f32 %v4332_v58, %v5625_v35  ;;  %v2372_v37 = vpop.f32.mrb[25].mxu1  ;;  %v2629_v13 = vsel %vm373_vm1, %v2575_v62, 0.0 }
 0x38e   : > { %v2627_v3 = vsel %vm373_vm1, %v2574_v16, 0.0  ;;  %v5822_v26 = vadd.f32 %v5625_v35, %v2372_v37 }
 0x38f   : > { %v2628_v9 = vadd.f32 %v2627_v3, %v2626_v34  ;;  %v2528_v12 = vadd.f32 %v2527_v8, %v2526_v5  ;;  %v2577_v15 = vmul.f32 %v5816_v17, %v5816_v17  ;;  %v2531_v4 = vsel %vm373_vm1, %v5816_v17, 0.0 }
 0x390   : > { %v2529_v33 = vsel %vm373_vm1, %v5822_v26, 0.0  ;;  %v2576_v49 = vmul.f32 %v5822_v26, %v5822_v26  ;;  %v4335_v6 = vpop.f32.mrb[26].mxu1 }
 0x391   : > { %v2530_v43 = vadd.f32 %v2529_v33, %v2528_v12  ;;  %v2630_v24 = vadd.f32 %v2629_v13, %v2628_v9  ;;  %v5832_v57 = vadd.f32 %v4335_v6, %v5625_v35  ;;  %v2382_v20 = vpop.f32.mrb[27].mxu1  ;;  %v2633_v54 = vsel %vm373_vm1, %v2577_v15, 0.0 }
 0x392   : > { %v2631_v30 = vsel %vm373_vm1, %v2576_v49, 0.0  ;;  %v5838_v28 = vadd.f32 %v5625_v35, %v2382_v20 }
 0x393   : > { %v2632_v36 = vadd.f32 %v2631_v30, %v2630_v24  ;;  %v2532_v32 = vadd.f32 %v2531_v4, %v2530_v43  ;;  %v2579_v51 = vmul.f32 %v5832_v57, %v5832_v57  ;;  %v2535_v42 = vsel %vm373_vm1, %v5832_v57, 0.0 }
 0x394   : > { %v2533_v59 = vsel %vm373_vm1, %v5838_v28, 0.0  ;;  %v2578_v55 = vmul.f32 %v5838_v28, %v5838_v28  ;;  %v4338_v0 = vpop.f32.mrb[28].mxu1 }
 0x395   : > { %v2534_v56 = vadd.f32 %v2533_v59, %v2532_v32  ;;  %v2634_v39 = vadd.f32 %v2633_v54, %v2632_v36  ;;  %v5848_v11 = vadd.f32 %v4338_v0, %v5625_v35  ;;  %v2392_v27 = vpop.f32.mrb[29].mxu1  ;;  %v2637_v58 = vsel %vm373_vm1, %v2579_v51, 0.0 }
 0x396   : > { %v2635_v47 = vsel %vm373_vm1, %v2578_v55, 0.0  ;;  %v5854_v62 = vadd.f32 %v5625_v35, %v2392_v27 }
 0x397   : > { %v2636_v2 = vadd.f32 %v2635_v47, %v2634_v39  ;;  %v2536_v16 = vadd.f32 %v2535_v42, %v2534_v56  ;;  %v2581_v5 = vmul.f32 %v5848_v11, %v5848_v11  ;;  %v2539_v15 = vsel %vm373_vm1, %v5848_v11, 0.0 }
 0x398   : > { %v2537_v34 = vsel %vm373_vm1, %v5854_v62, 0.0  ;;  %v2580_v37 = vmul.f32 %v5854_v62, %v5854_v62  ;;  %v4341_v8 = vpop.f32.mrb[30].mxu1 }
 0x399   : > { %v2538_v3 = vadd.f32 %v2537_v34, %v2536_v16  ;;  %v2638_v9 = vadd.f32 %v2637_v58, %v2636_v2  ;;  %v5864_v12 = vadd.f32 %v4341_v8, %v5625_v35  ;;  %v2402_v13 = vpop.f32.mrb[31].mxu1  ;;  %v2641_v24 = vsel %vm373_vm1, %v2581_v5, 0.0 }
 0x39a   : > { %v2639_v33 = vsel %vm373_vm1, %v2580_v37, 0.0  ;;  %v5870_v49 = vadd.f32 %v5625_v35, %v2402_v13 }
 0x39b   : > { %v2640_v6 = vadd.f32 %v2639_v33, %v2638_v9  ;;  %v2540_v43 = vadd.f32 %v2539_v15, %v2538_v3  ;;  %v2583_v20 = vmul.f32 %v5864_v12, %v5864_v12  ;;  %v2543_v54 = vsel %vm373_vm1, %v5864_v12, 0.0 }
 0x39c   : > { %v2541_v4 = vsel %vm373_vm1, %v5870_v49, 0.0  ;;  %v2582_v30 = vmul.f32 %v5870_v49, %v5870_v49 }
 0x39d   : > { %v2542_v36 = vadd.f32 %v2541_v4, %v2540_v43  ;;  %v2642_v32 = vadd.f32 %v2641_v24, %v2640_v6  ;;  %v2645_v55 = vsel %vm373_vm1, %v2583_v20, 0.0 }
 0x39e   : > { %v2643_v35 = vsel %vm373_vm1, %v2582_v30, 0.0 }
 0x39f   : > { %v2544_v51 = vadd.f32 %v2543_v54, %v2542_v36  ;;  %v2644_v59 = vadd.f32 %v2643_v35, %v2642_v32 }
 0x3a1   : > { %v2545_v0 = vrot.slane %v2544_v51, 4  ;;  %v2646_v56 = vadd.f32 %v2645_v55, %v2644_v59 }
 0x3a3   : > { %v2546_v39 = vadd.f32 %v2545_v0, %v2544_v51  ;;  %v2647_v27 = vrot.slane %v2646_v56, 4 }
 0x3a5   : > { %v2547_v42 = vrot.slane %v2546_v39, 2  ;;  %v2648_v47 = vadd.f32 %v2647_v27, %v2646_v56 }
 0x3a7   : > { %v2548_v2 = vadd.f32 %v2547_v42, %v2546_v39  ;;  %v2649_v16 = vrot.slane %v2648_v47, 2 }
 0x3a9   : > { %v2549_v58 = vrot.slane %v2548_v2, 1  ;;  %v2650_v5 = vadd.f32 %v2649_v16, %v2648_v47 }
 0x3ab   : > { %v2550_v34 = vadd.f32 %v2549_v58, %v2548_v2  ;;  %v2651_v37 = vrot.slane %v2650_v5, 1 }
 0x3ad   : > { %v5883_v8 = vmul.f32 0.00390625, %v2550_v34  ;;  %v2652_v3 = vadd.f32 %v2651_v37, %v2650_v5 }
 0x3af   : > { %v2653_v9 = vmul.f32 0.00390625, %v2652_v3  ;;  %v2654_v13 = vmul.f32 %v5883_v8, %v5883_v8  ;;  %v2687_v15 = vsub.f32 %v5870_v49, %v5883_v8  ;;  %v2667_v6 = vsub.f32 %v5710_v29, %v5883_v8 }
 0x3b0   : > { %v2668_v43 = vsub.f32 %v5704_v7, %v5883_v8  ;;  %v2669_v20 = vsub.f32 %v5726_v31, %v5883_v8  ;;  %v2670_v4 = vsub.f32 %v5720_v14, %v5883_v8  ;;  %v2671_v30 = vsub.f32 %v5742_v60, %v5883_v8 }
 0x3b1   : > { %v2655_v33 = vsub.f32 %v2653_v9, %v2654_v13  ;;  %v2672_v49 = vsub.f32 %v5736_v19, %v5883_v8  ;;  %v2673_v36 = vsub.f32 %v5758_v1, %v5883_v8  ;;  %v2674_v29 = vsub.f32 %v5752_v63, %v5883_v8 }
 0x3b2   : > { %v2675_v7 = vsub.f32 %v5774_v46, %v5883_v8  ;;  %v2676_v31 = vsub.f32 %v5768_v61, %v5883_v8  ;;  %v2677_v14 = vsub.f32 %v5790_v23, %v5883_v8  ;;  %v2678_v60 = vsub.f32 %v5784_v50, %v5883_v8 }
 0x3b3   : > { %v2656_v24 = vmax.f32 %v2655_v33, 0.0  ;;  %v2679_v19 = vsub.f32 %v5806_v22, %v5883_v8  ;;  %v2680_v1 = vsub.f32 %v5800_v44, %v5883_v8  ;;  %v2681_v63 = vsub.f32 %v5822_v26, %v5883_v8 }
 0x3b4   : > { %v2682_v46 = vsub.f32 %v5816_v17, %v5883_v8  ;;  %v2683_v61 = vsub.f32 %v5838_v28, %v5883_v8  ;;  %v2684_v23 = vsub.f32 %v5832_v57, %v5883_v8  ;;  %v2685_v50 = vsub.f32 %v5854_v62, %v5883_v8 }
 0x3b5   : > { %v2689_v32 = vadd.f32 1e-05, %v2656_v24  ;;  %v2686_v22 = vsub.f32 %v5848_v11, %v5883_v8  ;;  %v2688_v44 = vsub.f32 %v5864_v12, %v5883_v8  ;;  %v2657_v26 = vsub.f32 %v5631_v21, %v5883_v8 }
 0x3b6   : > { %v2658_v17 = vsub.f32 %v5628_v53, %v5883_v8  ;;  %v2659_v28 = vsub.f32 %v5647_v18, %v5883_v8  ;;  %v2660_v57 = vsub.f32 %v5642_v45, %v5883_v8  ;;  %v2661_v62 = vsub.f32 %v5662_v10, %v5883_v8 }
 0x3b7   : > { %4538 = vrsqrt.f32 %v2689_v32  ;;  %v2662_v11 = vsub.f32 %v5656_v52, %v5883_v8  ;;  %v2663_v12 = vsub.f32 %v5678_v48, %v5883_v8  ;;  %v2664_v21 = vsub.f32 %v5672_v25, %v5883_v8 }
 0x3b8   : > { %v2665_v53 = vsub.f32 %v5694_v40, %v5883_v8  ;;  %v2666_v18 = vsub.f32 %v5688_v38, %v5883_v8 }
 0x3c1   : > { %v4539_v54 = vpop.eup %4538 }
 0x3c2   : > { %v5951_v45 = vmul.f32 %v4539_v54, %v2687_v15  ;;  %v2691_v35 = vmul.f32 %v4539_v54, %v2657_v26  ;;  %v2692_v10 = vmul.f32 %v4539_v54, %v2658_v17  ;;  %v2693_v51 = vmul.f32 %v4539_v54, %v2659_v28 }
 0x3c3   : > { %v2694_v59 = vmul.f32 %v4539_v54, %v2660_v57  ;;  %v2695_v52 = vmul.f32 %v4539_v54, %v2661_v62  ;;  %v2696_v55 = vmul.f32 %v4539_v54, %v2662_v11  ;;  %v2697_v0 = vmul.f32 %v4539_v54, %v2663_v12 }
 0x3c4   : > { %v2698_v56 = vmul.f32 %v4539_v54, %v2664_v21  ;;  %v2699_v48 = vmul.f32 %v4539_v54, %v2665_v53  ;;  %v2700_v39 = vmul.f32 %v4539_v54, %v2666_v18  ;;  %v2701_v27 = vmul.f32 %v4539_v54, %v2667_v6 }
 0x3c5   : > { %v2702_v25 = vmul.f32 %v4539_v54, %v2668_v43  ;;  %v2703_v42 = vmul.f32 %v4539_v54, %v2669_v20  ;;  %v2704_v47 = vmul.f32 %v4539_v54, %v2670_v4  ;;  %v2705_v40 = vmul.f32 %v4539_v54, %v2671_v30 }
 0x3c6   : > { %v2706_v2 = vmul.f32 %v4539_v54, %v2672_v49  ;;  %v2707_v16 = vmul.f32 %v4539_v54, %v2673_v36  ;;  %v2708_v38 = vmul.f32 %v4539_v54, %v2674_v29  ;;  %v2709_v58 = vmul.f32 %v4539_v54, %v2675_v7 }
 0x3c7   : > { %v2710_v5 = vmul.f32 %v4539_v54, %v2676_v31  ;;  %v2711_v34 = vmul.f32 %v4539_v54, %v2677_v14  ;;  %v2712_v37 = vmul.f32 %v4539_v54, %v2678_v60  ;;  %v2713_v8 = vmul.f32 %v4539_v54, %v2679_v19 }
 0x3c8   : > { %v2714_v3 = vmul.f32 %v4539_v54, %v2680_v1  ;;  %v2715_v9 = vmul.f32 %v4539_v54, %v2681_v63  ;;  %v2716_v13 = vmul.f32 %v4539_v54, %v2682_v46  ;;  %v2717_v15 = vmul.f32 %v4539_v54, %v2683_v61 }
 0x3c9   : > { %v2718_v33 = vmul.f32 %v4539_v54, %v2684_v23  ;;  %v2719_v24 = vmul.f32 %v4539_v54, %v2685_v50  ;;  %v5953_v32 = vmul.f32 %v4539_v54, %v2686_v22  ;;  %v5955_v6 = vmul.f32 %v4539_v54, %v2688_v44 }
 0x3ca   : > { %v2723_v43 = vmax.f32 %v2691_v35, 0.0  ;;  %v2724_v20 = vmax.f32 %v2692_v10, 0.0  ;;  %v2725_v4 = vmax.f32 %v2693_v51, 0.0  ;;  %v2726_v30 = vmax.f32 %v2694_v59, 0.0  ;;  %v4542_v35 = vld [vmem:[%s4657_s16] sm:$0xff]  ;;  %v4543_v10 = vld [vmem:[%s4657_s16 + $0x8] sm:$0xff] }
 0x3cb   : > { %v2727_v49 = vmax.f32 %v2695_v52, 0.0  ;;  %v2728_v36 = vmax.f32 %v2696_v55, 0.0  ;;  %v2729_v29 = vmax.f32 %v2697_v0, 0.0  ;;  %v2730_v7 = vmax.f32 %v2698_v56, 0.0  ;;  %v4544_v51 = vld [vmem:[%s4657_s16 + $0x10] sm:$0xff]  ;;  %v4546_v59 = vld [vmem:[%s4657_s16 + $0x20] sm:$0xff] }
 0x3cc   : > { %4344 = vmatprep.mubr.msk.f32.mxu0 %vm373_vm1, %v2723_v43  ;;  %v2731_v31 = vmax.f32 %v2699_v48, 0.0  ;;  %v2733_v14 = vmax.f32 %v2701_v27, 0.0  ;;  %v2734_v60 = vmax.f32 %v2702_v25, 0.0  ;;  %v2735_v19 = vmax.f32 %v2703_v42, 0.0  ;;  %v4547_v52 = vld [vmem:[%s4657_s16 + $0x28] sm:$0xff]  ;;  %v4548_v55 = vld [vmem:[%s4657_s16 + $0x30] sm:$0xff] }
 0x3cd   : > { %4345 = vmatmul.mubr.msk.f32.vlgmr.msra.gmra.mrb[32].mxu0 %vm373_vm1, %v2724_v20  ;;  %v2736_v1 = vmax.f32 %v2704_v47, 0.0  ;;  %v2737_v63 = vmax.f32 %v2705_v40, 0.0  ;;  %v2738_v46 = vmax.f32 %v2706_v2, 0.0  ;;  %v2739_v61 = vmax.f32 %v2707_v16, 0.0  ;;  %v4549_v0 = vld [vmem:[%s4657_s16 + $0x38] sm:$0xff]  ;;  %v4550_v56 = vld [vmem:[%s4657_s16 + $0x40] sm:$0xff] }
 0x3ce   : > { %4393 = vmatpush3.msk.msra.mxu0 %vm470_vm0, %v5618_v41  ;;  %4347 = vmatprep.mubr.msk.f32.mxu0 %vm373_vm1, %v2725_v4  ;;  %v2732_v41 = vmax.f32 %v2700_v39, 0.0  ;;  %v2740_v23 = vmax.f32 %v2708_v38, 0.0  ;;  %v2741_v50 = vmax.f32 %v2709_v58, 0.0  ;;  %v2742_v22 = vmax.f32 %v2710_v5, 0.0  ;;  %v4551_v48 = vld [vmem:[%s4657_s16 + $0x48] sm:$0xff]  ;;  %v4552_v39 = vld [vmem:[%s4657_s16 + $0x50] sm:$0xff] }
 0x3cf   : > { %v2743_v44 = vmax.f32 %v2711_v34, 0.0  ;;  %v2744_v26 = vmax.f32 %v2712_v37, 0.0  ;;  %v2745_v17 = vmax.f32 %v2713_v8, 0.0  ;;  %v2746_v28 = vmax.f32 %v2714_v3, 0.0  ;;  %v4553_v27 = vld [vmem:[%s4657_s16 + $0x58] sm:$0xff]  ;;  %v4554_v25 = vld [vmem:[%s4657_s16 + $0x60] sm:$0xff] }
 0x3d0   : > { %v2747_v57 = vmax.f32 %v2715_v9, 0.0  ;;  %v2748_v62 = vmax.f32 %v2716_v13, 0.0  ;;  %v2749_v11 = vmax.f32 %v2717_v15, 0.0  ;;  %v2750_v54 = vmax.f32 %v2718_v33, 0.0  ;;  %v4555_v42 = vld [vmem:[%s4657_s16 + $0x68] sm:$0xff]  ;;  %v4556_v47 = vld [vmem:[%s4657_s16 + $0x70] sm:$0xff] }
 0x3d1   : > { %4348 = vmatmul.mubr.msk.f32.gmra.mrb[34].mxu0 %vm373_vm1, %v2726_v30  ;;  %v2751_v12 = vmax.f32 %v2719_v24, 0.0  ;;  %v2752_v21 = vmax.f32 %v5953_v32, 0.0  ;;  %v2753_v53 = vmax.f32 %v5951_v45, 0.0  ;;  %v2754_v18 = vmax.f32 %v5955_v6, 0.0  ;;  %v4545_v45 = vld [vmem:[%s4657_s16 + $0x18] sm:$0xff]  ;;  %v4558_v2 = vld [vmem:[%s4657_s16 + $0x80] sm:$0xff] }
 0x3d2   : > { %4350 = vmatprep.mubr.msk.f32.mxu0 %vm373_vm1, %v2727_v49  ;;  %v4557_v40 = vld [vmem:[%s4657_s16 + $0x78] sm:$0xff]  ;;  %v4559_v16 = vld [vmem:[%s4657_s16 + $0x88] sm:$0xff]  ;;  %v4560_v38 = vld [vmem:[%s4657_s16 + $0x90] sm:$0xff] }
 0x3d3   : > { %v4561_v58 = vld [vmem:[%s4657_s16 + $0x98] sm:$0xff]  ;;  %v4562_v5 = vld [vmem:[%s4657_s16 + $0xa0] sm:$0xff]  ;;  %v4563_v34 = vld [vmem:[%s4657_s16 + $0xa8] sm:$0xff] }
 0x3d4   : > { %v4564_v37 = vld [vmem:[%s4657_s16 + $0xb0] sm:$0xff]  ;;  %v4565_v8 = vld [vmem:[%s4657_s16 + $0xb8] sm:$0xff]  ;;  %v4566_v3 = vld [vmem:[%s4657_s16 + $0xc0] sm:$0xff] }
 0x3d5   : > { %4351 = vmatmul.mubr.msk.f32.gmra.mrb[36].mxu0 %vm373_vm1, %v2728_v36  ;;  %v4567_v9 = vld [vmem:[%s4657_s16 + $0xc8] sm:$0xff]  ;;  %v4568_v13 = vld [vmem:[%s4657_s16 + $0xd0] sm:$0xff]  ;;  %v4569_v15 = vld [vmem:[%s4657_s16 + $0xd8] sm:$0xff] }
 0x3d6   : > { %4353 = vmatprep.mubr.msk.f32.mxu0 %vm373_vm1, %v2729_v29  ;;  %v4570_v33 = vld [vmem:[%s4657_s16 + $0xe0] sm:$0xff]  ;;  %v4571_v24 = vld [vmem:[%s4657_s16 + $0xe8] sm:$0xff]  ;;  %v4572_v32 = vld [vmem:[%s4657_s16 + $0xf0] sm:$0xff] }
 0x3d7   : > { %v4573_v6 = vld [vmem:[%s4657_s16 + $0xf8] sm:$0xff]  ;;  %v6061_v43 = vld [vmem:[%s6634_s6] ss:$0 sm:$0xff] }
 0x3d9   : > { %4354 = vmatmul.mubr.msk.f32.gmra.mrb[38].mxu0 %vm373_vm1, %v2730_v7 }
 0x3da   : > { %4356 = vmatprep.mubr.msk.f32.mxu0 %vm373_vm1, %v2731_v31 }
 0x3dd   : > { %4357 = vmatmul.mubr.msk.f32.gmra.mrb[40].mxu0 %vm373_vm1, %v2732_v41 }
 0x3de   : > { %4359 = vmatprep.mubr.msk.f32.mxu0 %vm373_vm1, %v2733_v14 }
 0x3e1   : > { %4360 = vmatmul.mubr.msk.f32.gmra.mrb[42].mxu0 %vm373_vm1, %v2734_v60 }
 0x3e2   : > { %4362 = vmatprep.mubr.msk.f32.mxu0 %vm373_vm1, %v2735_v19 }
 0x3e5   : > { %4363 = vmatmul.mubr.msk.f32.gmra.mrb[44].mxu0 %vm373_vm1, %v2736_v1 }
 0x3e6   : > { %4365 = vmatprep.mubr.msk.f32.mxu0 %vm373_vm1, %v2737_v63 }
 0x3e9   : > { %4366 = vmatmul.mubr.msk.f32.gmra.mrb[46].mxu0 %vm373_vm1, %v2738_v46 }
 0x3ea   : > { %4368 = vmatprep.mubr.msk.f32.mxu0 %vm373_vm1, %v2739_v61 }
 0x3ed   : > { %4369 = vmatmul.mubr.msk.f32.gmra.mrb[48].mxu0 %vm373_vm1, %v2740_v23 }
 0x3ee   : > { %4371 = vmatprep.mubr.msk.f32.mxu0 %vm373_vm1, %v2741_v50 }
 0x3f1   : > { %4372 = vmatmul.mubr.msk.f32.gmra.mrb[50].mxu0 %vm373_vm1, %v2742_v22 }
 0x3f2   : > { %4374 = vmatprep.mubr.msk.f32.mxu0 %vm373_vm1, %v2743_v44 }
 0x3f5   : > { %4375 = vmatmul.mubr.msk.f32.gmra.mrb[52].mxu0 %vm373_vm1, %v2744_v26 }
 0x3f6   : > { %4377 = vmatprep.mubr.msk.f32.mxu0 %vm373_vm1, %v2745_v17 }
 0x3f9   : > { %4378 = vmatmul.mubr.msk.f32.gmra.mrb[54].mxu0 %vm373_vm1, %v2746_v28 }
 0x3fa   : > { %4380 = vmatprep.mubr.msk.f32.mxu0 %vm373_vm1, %v2747_v57 }
 0x3fd   : > { %4381 = vmatmul.mubr.msk.f32.gmra.mrb[56].mxu0 %vm373_vm1, %v2748_v62 }
 0x3fe   : > { %4383 = vmatprep.mubr.msk.f32.mxu0 %vm373_vm1, %v2749_v11 }
 0x401   : > { %4384 = vmatmul.mubr.msk.f32.gmra.mrb[58].mxu0 %vm373_vm1, %v2750_v54 }
 0x402   : > { %4386 = vmatprep.mubr.msk.f32.mxu0 %vm373_vm1, %v2751_v12 }
 0x405   : > { %4387 = vmatmul.mubr.msk.f32.gmra.mrb[60].mxu0 %vm373_vm1, %v2752_v21 }
 0x406   : > { %4389 = vmatprep.mubr.msk.f32.mxu0 %vm373_vm1, %v2753_v53 }
 0x409   : > { %4390 = vmatmul.mubr.msk.f32.gmra.mrb[62].mxu0 %vm373_vm1, %v2754_v18 }
 0x40a   : > { %4394 = vmatprep.mubr.msk.f32.mxu0 %vm373_vm1, %v4542_v35 }
 0x40d   : > { %4395 = vmatmul.mubr.msk.f32.vlgmr.msra.gmra.mrb[64].mxu0 %vm373_vm1, %v4543_v10 }
 0x40e   : > { %4397 = vmatprep.mubr.msk.f32.mxu0 %vm373_vm1, %v4544_v51 }
 0x411   : > { %4398 = vmatmul.mubr.msk.f32.gmra.mrb[66].mxu0 %vm373_vm1, %v4545_v45 }
 0x412   : > { %4400 = vmatprep.mubr.msk.f32.mxu0 %vm373_vm1, %v4546_v59 }
 0x415   : > { %4401 = vmatmul.mubr.msk.f32.gmra.mrb[68].mxu0 %vm373_vm1, %v4547_v52 }
 0x416   : > { %4403 = vmatprep.mubr.msk.f32.mxu0 %vm373_vm1, %v4548_v55 }
 0x419   : > { %4404 = vmatmul.mubr.msk.f32.gmra.mrb[70].mxu0 %vm373_vm1, %v4549_v0 }
 0x41a   : > { %4406 = vmatprep.mubr.msk.f32.mxu0 %vm373_vm1, %v4550_v56 }
 0x41d   : > { %4407 = vmatmul.mubr.msk.f32.gmra.mrb[72].mxu0 %vm373_vm1, %v4551_v48 }
 0x41e   : > { %4409 = vmatprep.mubr.msk.f32.mxu0 %vm373_vm1, %v4552_v39 }
 0x421   : > { %4410 = vmatmul.mubr.msk.f32.gmra.mrb[74].mxu0 %vm373_vm1, %v4553_v27 }
 0x422   : > { %4412 = vmatprep.mubr.msk.f32.mxu0 %vm373_vm1, %v4554_v25 }
 0x425   : > { %4413 = vmatmul.mubr.msk.f32.gmra.mrb[76].mxu0 %vm373_vm1, %v4555_v42 }
 0x426   : > { %4415 = vmatprep.mubr.msk.f32.mxu0 %vm373_vm1, %v4556_v47 }
 0x429   : > { %4416 = vmatmul.mubr.msk.f32.gmra.mrb[78].mxu0 %vm373_vm1, %v4557_v40 }
 0x42a   : > { %4418 = vmatprep.mubr.msk.f32.mxu0 %vm373_vm1, %v4558_v2 }
 0x42d   : > { %4419 = vmatmul.mubr.msk.f32.gmra.mrb[80].mxu0 %vm373_vm1, %v4559_v16 }
 0x42e   : > { %4421 = vmatprep.mubr.msk.f32.mxu0 %vm373_vm1, %v4560_v38 }
 0x431   : > { %4422 = vmatmul.mubr.msk.f32.gmra.mrb[82].mxu0 %vm373_vm1, %v4561_v58 }
 0x432   : > { %4424 = vmatprep.mubr.msk.f32.mxu0 %vm373_vm1, %v4562_v5 }
 0x435   : > { %4425 = vmatmul.mubr.msk.f32.gmra.mrb[84].mxu0 %vm373_vm1, %v4563_v34 }
 0x436   : > { %4427 = vmatprep.mubr.msk.f32.mxu0 %vm373_vm1, %v4564_v37 }
 0x439   : > { %4428 = vmatmul.mubr.msk.f32.gmra.mrb[86].mxu0 %vm373_vm1, %v4565_v8 }
 0x43a   : > { %4430 = vmatprep.mubr.msk.f32.mxu0 %vm373_vm1, %v4566_v3 }
 0x43d   : > { %4431 = vmatmul.mubr.msk.f32.gmra.mrb[88].mxu0 %vm373_vm1, %v4567_v9 }
 0x43e   : > { %4433 = vmatprep.mubr.msk.f32.mxu0 %vm373_vm1, %v4568_v13 }
 0x441   : > { %4434 = vmatmul.mubr.msk.f32.gmra.mrb[90].mxu0 %vm373_vm1, %v4569_v15 }
 0x442   : > { %4436 = vmatprep.mubr.msk.f32.mxu0 %vm373_vm1, %v4570_v33 }
 0x445   : > { %4437 = vmatmul.mubr.msk.f32.gmra.mrb[92].mxu0 %vm373_vm1, %v4571_v24 }
 0x446   : > { %4439 = vmatprep.mubr.msk.f32.mxu0 %vm373_vm1, %v4572_v32 }
 0x449   : > { %4440 = vmatmul.mubr.msk.f32.gmra.mrb[94].mxu0 %vm373_vm1, %v4573_v6 }
 0x4a0   : > { %v4346_v20 = vpop.f32.mrb[32].mxu0 }
 0x4a1   : > { %v6064_v4 = vadd.f32 %v4346_v20, %v6061_v43  ;;  %v2928_v30 = vpop.f32.mrb[33].mxu0 }
 0x4a2   : > { %v6067_v49 = vadd.f32 %v6061_v43, %v2928_v30 }
 0x4a3   : > { %v3159_v36 = vmul.f32 %v6064_v4, %v6064_v4  ;;  %v3089_v29 = vsel %vm3087_vm8, %v6064_v4, 0.0 }
 0x4a4   : > { %v3088_v7 = vsel %vm3087_vm8, %v6067_v49, 0.0  ;;  %v3158_v31 = vmul.f32 %v6067_v49, %v6067_v49  ;;  %v4349_v41 = vpop.f32.mrb[34].mxu0 }
 0x4a5   : > { %v6078_v14 = vadd.f32 %v4349_v41, %v6061_v43  ;;  %v2938_v60 = vpop.f32.mrb[35].mxu0  ;;  %v3191_v19 = vsel %vm3087_vm8, %v3159_v36, 0.0  ;;  %v3090_v46 = vadd.f32 %v3089_v29, %v3088_v7 }
 0x4a6   : > { %v3190_v1 = vsel %vm3087_vm8, %v3158_v31, 0.0  ;;  %v6083_v63 = vadd.f32 %v6061_v43, %v2938_v60 }
 0x4a7   : > { %v3161_v61 = vmul.f32 %v6078_v14, %v6078_v14  ;;  %v3192_v44 = vadd.f32 %v3191_v19, %v3190_v1  ;;  %v3093_v57 = vsel %vm3087_vm8, %v6078_v14, 0.0 }
 0x4a8   : > { %v3091_v23 = vsel %vm3087_vm8, %v6083_v63, 0.0  ;;  %v3160_v50 = vmul.f32 %v6083_v63, %v6083_v63  ;;  %v4352_v22 = vpop.f32.mrb[36].mxu0 }
 0x4a9   : > { %v3092_v26 = vadd.f32 %v3091_v23, %v3090_v46  ;;  %v6092_v17 = vadd.f32 %v4352_v22, %v6061_v43  ;;  %v2948_v28 = vpop.f32.mrb[37].mxu0  ;;  %v3195_v21 = vsel %vm3087_vm8, %v3161_v61, 0.0 }
 0x4aa   : > { %v3193_v62 = vsel %vm3087_vm8, %v3160_v50, 0.0  ;;  %v6098_v11 = vadd.f32 %v6061_v43, %v2948_v28 }
 0x4ab   : > { %v3194_v54 = vadd.f32 %v3193_v62, %v3192_v44  ;;  %v3094_v12 = vadd.f32 %v3093_v57, %v3092_v26  ;;  %v3163_v53 = vmul.f32 %v6092_v17, %v6092_v17  ;;  %v3097_v55 = vsel %vm3087_vm8, %v6092_v17, 0.0 }
 0x4ac   : > { %v3095_v18 = vsel %vm3087_vm8, %v6098_v11, 0.0  ;;  %v3162_v35 = vmul.f32 %v6098_v11, %v6098_v11  ;;  %v4355_v10 = vpop.f32.mrb[38].mxu0 }
 0x4ad   : > { %v3096_v51 = vadd.f32 %v3095_v18, %v3094_v12  ;;  %v3196_v45 = vadd.f32 %v3195_v21, %v3194_v54  ;;  %v6108_v59 = vadd.f32 %v4355_v10, %v6061_v43  ;;  %v2958_v52 = vpop.f32.mrb[39].mxu0  ;;  %v3199_v27 = vsel %vm3087_vm8, %v3163_v53, 0.0 }
 0x4ae   : > { %v3197_v0 = vsel %vm3087_vm8, %v3162_v35, 0.0  ;;  %v6114_v56 = vadd.f32 %v6061_v43, %v2958_v52 }
 0x4af   : > { %v3198_v48 = vadd.f32 %v3197_v0, %v3196_v45  ;;  %v3098_v39 = vadd.f32 %v3097_v55, %v3096_v51  ;;  %v3165_v25 = vmul.f32 %v6108_v59, %v6108_v59  ;;  %v3101_v5 = vsel %vm3087_vm8, %v6108_v59, 0.0 }
 0x4b0   : > { %v3099_v42 = vsel %vm3087_vm8, %v6114_v56, 0.0  ;;  %v3164_v47 = vmul.f32 %v6114_v56, %v6114_v56  ;;  %v4358_v40 = vpop.f32.mrb[40].mxu0 }
 0x4b1   : > { %v3100_v2 = vadd.f32 %v3099_v42, %v3098_v39  ;;  %v3200_v16 = vadd.f32 %v3199_v27, %v3198_v48  ;;  %v6124_v38 = vadd.f32 %v4358_v40, %v6061_v43  ;;  %v2968_v58 = vpop.f32.mrb[41].mxu0  ;;  %v3203_v9 = vsel %vm3087_vm8, %v3165_v25, 0.0 }
 0x4b2   : > { %v3201_v34 = vsel %vm3087_vm8, %v3164_v47, 0.0  ;;  %v6130_v37 = vadd.f32 %v6061_v43, %v2968_v58 }
 0x4b3   : > { %v3202_v8 = vadd.f32 %v3201_v34, %v3200_v16  ;;  %v3102_v3 = vadd.f32 %v3101_v5, %v3100_v2  ;;  %v3167_v13 = vmul.f32 %v6124_v38, %v6124_v38  ;;  %v3105_v36 = vsel %vm3087_vm8, %v6124_v38, 0.0 }
 0x4b4   : > { %v3103_v15 = vsel %vm3087_vm8, %v6130_v37, 0.0  ;;  %v3166_v33 = vmul.f32 %v6130_v37, %v6130_v37  ;;  %v4361_v24 = vpop.f32.mrb[42].mxu0 }
 0x4b5   : > { %v3104_v32 = vadd.f32 %v3103_v15, %v3102_v3  ;;  %v3204_v6 = vadd.f32 %v3203_v9, %v3202_v8  ;;  %v6140_v20 = vadd.f32 %v4361_v24, %v6061_v43  ;;  %v2978_v30 = vpop.f32.mrb[43].mxu0  ;;  %v3207_v60 = vsel %vm3087_vm8, %v3167_v13, 0.0 }
 0x4b6   : > { %v3205_v29 = vsel %vm3087_vm8, %v3166_v33, 0.0  ;;  %v6146_v7 = vadd.f32 %v6061_v43, %v2978_v30 }
 0x4b7   : > { %v3206_v31 = vadd.f32 %v3205_v29, %v3204_v6  ;;  %v3106_v41 = vadd.f32 %v3105_v36, %v3104_v32  ;;  %v3169_v19 = vmul.f32 %v6140_v20, %v6140_v20  ;;  %v3109_v26 = vsel %vm3087_vm8, %v6140_v20, 0.0 }
 0x4b8   : > { %v3107_v1 = vsel %vm3087_vm8, %v6146_v7, 0.0  ;;  %v3168_v46 = vmul.f32 %v6146_v7, %v6146_v7  ;;  %v4364_v61 = vpop.f32.mrb[44].mxu0 }
 0x4b9   : > { %v3108_v23 = vadd.f32 %v3107_v1, %v3106_v41  ;;  %v3208_v50 = vadd.f32 %v3207_v60, %v3206_v31  ;;  %v6156_v22 = vadd.f32 %v4364_v61, %v6061_v43  ;;  %v2988_v44 = vpop.f32.mrb[45].mxu0  ;;  %v3211_v12 = vsel %vm3087_vm8, %v3169_v19, 0.0 }
 0x4ba   : > { %v3209_v28 = vsel %vm3087_vm8, %v3168_v46, 0.0  ;;  %v6162_v57 = vadd.f32 %v6061_v43, %v2988_v44 }
 0x4bb   : > { %v3210_v62 = vadd.f32 %v3209_v28, %v3208_v50  ;;  %v3110_v54 = vadd.f32 %v3109_v26, %v3108_v23  ;;  %v3171_v21 = vmul.f32 %v6156_v22, %v6156_v22  ;;  %v3113_v55 = vsel %vm3087_vm8, %v6156_v22, 0.0 }
 0x4bc   : > { %v3111_v53 = vsel %vm3087_vm8, %v6162_v57, 0.0  ;;  %v3170_v18 = vmul.f32 %v6162_v57, %v6162_v57  ;;  %v4367_v35 = vpop.f32.mrb[46].mxu0 }
 0x4bd   : > { %v3112_v10 = vadd.f32 %v3111_v53, %v3110_v54  ;;  %v3212_v51 = vadd.f32 %v3211_v12, %v3210_v62  ;;  %v6172_v45 = vadd.f32 %v4367_v35, %v6061_v43  ;;  %v2998_v52 = vpop.f32.mrb[47].mxu0  ;;  %v3215_v25 = vsel %vm3087_vm8, %v3171_v21, 0.0 }
 0x4be   : > { %v3213_v0 = vsel %vm3087_vm8, %v3170_v18, 0.0  ;;  %v6178_v48 = vadd.f32 %v6061_v43, %v2998_v52 }
 0x4bf   : > { %v3214_v39 = vadd.f32 %v3213_v0, %v3212_v51  ;;  %v3114_v27 = vadd.f32 %v3113_v55, %v3112_v10  ;;  %v3173_v42 = vmul.f32 %v6172_v45, %v6172_v45  ;;  %v3117_v8 = vsel %vm3087_vm8, %v6172_v45, 0.0 }
 0x4c0   : > { %v3115_v47 = vsel %vm3087_vm8, %v6178_v48, 0.0  ;;  %v3172_v40 = vmul.f32 %v6178_v48, %v6178_v48  ;;  %v4370_v2 = vpop.f32.mrb[48].mxu0 }
 0x4c1   : > { %v3116_v16 = vadd.f32 %v3115_v47, %v3114_v27  ;;  %v3216_v58 = vadd.f32 %v3215_v25, %v3214_v39  ;;  %v6188_v5 = vadd.f32 %v4370_v2, %v6061_v43  ;;  %v3008_v34 = vpop.f32.mrb[49].mxu0  ;;  %v3219_v33 = vsel %vm3087_vm8, %v3173_v42, 0.0 }
 0x4c2   : > { %v3217_v3 = vsel %vm3087_vm8, %v3172_v40, 0.0  ;;  %v6194_v9 = vadd.f32 %v6061_v43, %v3008_v34 }
 0x4c3   : > { %v3218_v13 = vadd.f32 %v3217_v3, %v3216_v58  ;;  %v3118_v15 = vadd.f32 %v3117_v8, %v3116_v16  ;;  %v3175_v24 = vmul.f32 %v6188_v5, %v6188_v5  ;;  %v3121_v60 = vsel %vm3087_vm8, %v6188_v5, 0.0 }
 0x4c4   : > { %v3119_v32 = vsel %vm3087_vm8, %v6194_v9, 0.0  ;;  %v3174_v6 = vmul.f32 %v6194_v9, %v6194_v9  ;;  %v4373_v30 = vpop.f32.mrb[50].mxu0 }
 0x4c5   : > { %v3120_v36 = vadd.f32 %v3119_v32, %v3118_v15  ;;  %v3220_v29 = vadd.f32 %v3219_v33, %v3218_v13  ;;  %v6204_v31 = vadd.f32 %v4373_v30, %v6061_v43  ;;  %v3018_v41 = vpop.f32.mrb[51].mxu0  ;;  %v3223_v23 = vsel %vm3087_vm8, %v3175_v24, 0.0 }
 0x4c6   : > { %v3221_v19 = vsel %vm3087_vm8, %v3174_v6, 0.0  ;;  %v6210_v1 = vadd.f32 %v6061_v43, %v3018_v41 }
 0x4c7   : > { %v3222_v46 = vadd.f32 %v3221_v19, %v3220_v29  ;;  %v3122_v61 = vadd.f32 %v3121_v60, %v3120_v36  ;;  %v3177_v50 = vmul.f32 %v6204_v31, %v6204_v31  ;;  %v3125_v53 = vsel %vm3087_vm8, %v6204_v31, 0.0 }
 0x4c8   : > { %v3123_v44 = vsel %vm3087_vm8, %v6210_v1, 0.0  ;;  %v3176_v26 = vmul.f32 %v6210_v1, %v6210_v1  ;;  %v4376_v28 = vpop.f32.mrb[52].mxu0 }
 0x4c9   : > { %v3124_v62 = vadd.f32 %v3123_v44, %v3122_v61  ;;  %v3224_v54 = vadd.f32 %v3223_v23, %v3222_v46  ;;  %v6220_v12 = vadd.f32 %v4376_v28, %v6061_v43  ;;  %v3028_v21 = vpop.f32.mrb[53].mxu0  ;;  %v3227_v52 = vsel %vm3087_vm8, %v3177_v50, 0.0 }
 0x4ca   : > { %v3225_v18 = vsel %vm3087_vm8, %v3176_v26, 0.0  ;;  %v6226_v35 = vadd.f32 %v6061_v43, %v3028_v21 }
 0x4cb   : > { %v3226_v10 = vadd.f32 %v3225_v18, %v3224_v54  ;;  %v3126_v51 = vadd.f32 %v3125_v53, %v3124_v62  ;;  %v3179_v55 = vmul.f32 %v6220_v12, %v6220_v12  ;;  %v3129_v2 = vsel %vm3087_vm8, %v6220_v12, 0.0 }
 0x4cc   : > { %v3127_v0 = vsel %vm3087_vm8, %v6226_v35, 0.0  ;;  %v3178_v39 = vmul.f32 %v6226_v35, %v6226_v35  ;;  %v4379_v27 = vpop.f32.mrb[54].mxu0 }
 0x4cd   : > { %v3128_v25 = vadd.f32 %v3127_v0, %v3126_v51  ;;  %v3228_v42 = vadd.f32 %v3227_v52, %v3226_v10  ;;  %v6236_v47 = vadd.f32 %v4379_v27, %v6061_v43  ;;  %v3038_v40 = vpop.f32.mrb[55].mxu0  ;;  %v3231_v3 = vsel %vm3087_vm8, %v3179_v55, 0.0 }
 0x4ce   : > { %v3229_v16 = vsel %vm3087_vm8, %v3178_v39, 0.0  ;;  %v6242_v58 = vadd.f32 %v6061_v43, %v3038_v40 }
 0x4cf   : > { %v3230_v34 = vadd.f32 %v3229_v16, %v3228_v42  ;;  %v3130_v8 = vadd.f32 %v3129_v2, %v3128_v25  ;;  %v3181_v13 = vmul.f32 %v6236_v47, %v6236_v47  ;;  %v3133_v29 = vsel %vm3087_vm8, %v6236_v47, 0.0 }
 0x4d0   : > { %v3131_v15 = vsel %vm3087_vm8, %v6242_v58, 0.0  ;;  %v3180_v33 = vmul.f32 %v6242_v58, %v6242_v58  ;;  %v4382_v24 = vpop.f32.mrb[56].mxu0 }
 0x4d1   : > { %v3132_v32 = vadd.f32 %v3131_v15, %v3130_v8  ;;  %v3232_v6 = vadd.f32 %v3231_v3, %v3230_v34  ;;  %v6252_v30 = vadd.f32 %v4382_v24, %v6061_v43  ;;  %v3048_v36 = vpop.f32.mrb[57].mxu0  ;;  %v3235_v61 = vsel %vm3087_vm8, %v3181_v13, 0.0 }
 0x4d2   : > { %v3233_v41 = vsel %vm3087_vm8, %v3180_v33, 0.0  ;;  %v6258_v60 = vadd.f32 %v6061_v43, %v3048_v36 }
 0x4d3   : > { %v3234_v19 = vadd.f32 %v3233_v41, %v3232_v6  ;;  %v3134_v46 = vadd.f32 %v3133_v29, %v3132_v32  ;;  %v3183_v23 = vmul.f32 %v6252_v30, %v6252_v30  ;;  %v3137_v53 = vsel %vm3087_vm8, %v6252_v30, 0.0 }
 0x4d4   : > { %v3135_v50 = vsel %vm3087_vm8, %v6258_v60, 0.0  ;;  %v3182_v44 = vmul.f32 %v6258_v60, %v6258_v60  ;;  %v4385_v26 = vpop.f32.mrb[58].mxu0 }
 0x4d5   : > { %v3136_v28 = vadd.f32 %v3135_v50, %v3134_v46  ;;  %v3236_v62 = vadd.f32 %v3235_v61, %v3234_v19  ;;  %v6268_v54 = vadd.f32 %v4385_v26, %v6061_v43  ;;  %v3058_v21 = vpop.f32.mrb[59].mxu0  ;;  %v3239_v55 = vsel %vm3087_vm8, %v3183_v23, 0.0 }
 0x4d6   : > { %v3237_v18 = vsel %vm3087_vm8, %v3182_v44, 0.0  ;;  %v6274_v10 = vadd.f32 %v6061_v43, %v3058_v21 }
 0x4d7   : > { %v3238_v51 = vadd.f32 %v3237_v18, %v3236_v62  ;;  %v3138_v52 = vadd.f32 %v3137_v53, %v3136_v28  ;;  %v3185_v0 = vmul.f32 %v6268_v54, %v6268_v54  ;;  %v3141_v34 = vsel %vm3087_vm8, %v6268_v54, 0.0 }
 0x4d8   : > { %v3139_v39 = vsel %vm3087_vm8, %v6274_v10, 0.0  ;;  %v3184_v27 = vmul.f32 %v6274_v10, %v6274_v10  ;;  %v4388_v25 = vpop.f32.mrb[60].mxu0 }
 0x4d9   : > { %v3140_v42 = vadd.f32 %v3139_v39, %v3138_v52  ;;  %v3240_v40 = vadd.f32 %v3239_v55, %v3238_v51  ;;  %v6284_v2 = vadd.f32 %v4388_v25, %v6061_v43  ;;  %v3068_v16 = vpop.f32.mrb[61].mxu0  ;;  %v3243_v33 = vsel %vm3087_vm8, %v3185_v0, 0.0 }
 0x4da   : > { %v3241_v8 = vsel %vm3087_vm8, %v3184_v27, 0.0  ;;  %v6290_v3 = vadd.f32 %v6061_v43, %v3068_v16 }
 0x4db   : > { %6644 = vst [vmem:[#allocation3_spill] sm:$0xff] %v6284_v2  ;;  %v3242_v13 = vadd.f32 %v3241_v8, %v3240_v40  ;;  %v3142_v15 = vadd.f32 %v3141_v34, %v3140_v42  ;;  %v3187_v24 = vmul.f32 %v6284_v2, %v6284_v2  ;;  %v3145_v61 = vsel %vm3087_vm8, %v6284_v2, 0.0 }
 0x4dc   : > { %6645 = vst [vmem:[#allocation4_spill] sm:$0xff] %v6290_v3  ;;  %v3143_v32 = vsel %vm3087_vm8, %v6290_v3, 0.0  ;;  %v3186_v6 = vmul.f32 %v6290_v3, %v6290_v3  ;;  %v4391_v36 = vpop.f32.mrb[62].mxu0 }
 0x4dd   : > { %v3144_v29 = vadd.f32 %v3143_v32, %v3142_v15  ;;  %v3244_v41 = vadd.f32 %v3243_v33, %v3242_v13  ;;  %v6300_v19 = vadd.f32 %v4391_v36, %v6061_v43  ;;  %v3078_v46 = vpop.f32.mrb[63].mxu0  ;;  %v3247_v28 = vsel %vm3087_vm8, %v3187_v24, 0.0 }
 0x4de   : > { %v3245_v23 = vsel %vm3087_vm8, %v3186_v6, 0.0  ;;  %v6306_v50 = vadd.f32 %v6061_v43, %v3078_v46 }
 0x4df   : > { %6646 = vst [vmem:[#allocation5_spill] sm:$0xff] %v6300_v19  ;;  %v3246_v44 = vadd.f32 %v3245_v23, %v3244_v41  ;;  %v3146_v26 = vadd.f32 %v3145_v61, %v3144_v29  ;;  %v3189_v62 = vmul.f32 %v6300_v19, %v6300_v19  ;;  %v3149_v43 = vsel %vm3087_vm8, %v6300_v19, 0.0 }
 0x4e0   : > { %6647 = vst [vmem:[#allocation6_spill] sm:$0xff] %v6306_v50  ;;  %v3147_v21 = vsel %vm3087_vm8, %v6306_v50, 0.0  ;;  %v3188_v53 = vmul.f32 %v6306_v50, %v6306_v50  ;;  %v6315_v18 = vpop.f32.mrb[64].mxu0 }
 0x4e1   : > { %v3148_v51 = vadd.f32 %v3147_v21, %v3146_v26  ;;  %v3248_v52 = vadd.f32 %v3247_v28, %v3246_v44  ;;  %v6317_v55 = vpop.f32.mrb[65].mxu0  ;;  %v3251_v25 = vsel %vm3087_vm8, %v3189_v62, 0.0 }
 0x4e2   : > { %v3249_v0 = vsel %vm3087_vm8, %v3188_v53, 0.0 }
 0x4e3   : > { %v3150_v39 = vadd.f32 %v3149_v43, %v3148_v51  ;;  %v3250_v27 = vadd.f32 %v3249_v0, %v3248_v52 }
 0x4e4   : > { %v4399_v42 = vpop.f32.mrb[66].mxu0 }
 0x4e5   : > { %v3151_v40 = vrot.slane %v3150_v39, 4  ;;  %v3252_v16 = vadd.f32 %v3251_v25, %v3250_v27  ;;  %v3416_v34 = vpop.f32.mrb[67].mxu0 }
 0x4e7   : > { %v3152_v8 = vadd.f32 %v3151_v40, %v3150_v39  ;;  %v3253_v13 = vrot.slane %v3252_v16, 4 }
 0x4e8   : > { %v4402_v15 = vpop.f32.mrb[68].mxu0 }
 0x4e9   : > { %v3153_v33 = vrot.slane %v3152_v8, 2  ;;  %v3254_v24 = vadd.f32 %v3253_v13, %v3252_v16  ;;  %v3426_v32 = vpop.f32.mrb[69].mxu0 }
 0x4eb   : > { %v3154_v6 = vadd.f32 %v3153_v33, %v3152_v8  ;;  %v3255_v36 = vrot.slane %v3254_v24, 2 }
 0x4ec   : > { %v4405_v29 = vpop.f32.mrb[70].mxu0 }
 0x4ed   : > { %v3155_v41 = vrot.slane %v3154_v6, 1  ;;  %v3256_v46 = vadd.f32 %v3255_v36, %v3254_v24  ;;  %v3436_v61 = vpop.f32.mrb[71].mxu0 }
 0x4ef   : > { %v3156_v23 = vadd.f32 %v3155_v41, %v3154_v6  ;;  %v3257_v44 = vrot.slane %v3256_v46, 1 }
 0x4f0   : > { %v4408_v26 = vpop.f32.mrb[72].mxu0 }
 0x4f1   : > { %v6323_v28 = vmul.f32 0.00390625, %v3156_v23  ;;  %v3258_v62 = vadd.f32 %v3257_v44, %v3256_v46  ;;  %v3446_v21 = vpop.f32.mrb[73].mxu0 }
 0x4f3   : > { %v3259_v53 = vmul.f32 0.00390625, %v3258_v62  ;;  %v3260_v51 = vmul.f32 %v6323_v28, %v6323_v28 }
 0x4f4   : > { %v4411_v43 = vpop.f32.mrb[74].mxu0 }
 0x4f5   : > { %v3261_v0 = vsub.f32 %v3259_v53, %v3260_v51  ;;  %v3456_v39 = vpop.f32.mrb[75].mxu0  ;;  %v6356_v51 = vld [vmem:[%s6636_s8] ss:$0 sm:$0xff] }
 0x4f6   : > { %v3412_v46 = vadd.f32 %v6315_v18, %v6356_v51  ;;  %v3407_v62 = vadd.f32 %v6356_v51, %v6317_v55  ;;  %v3417_v53 = vadd.f32 %v6356_v51, %v3416_v34  ;;  %v3432_v6 = vadd.f32 %v4402_v15, %v6356_v51 }
 0x4f7   : > { %v3262_v25 = vmax.f32 %v3261_v0, 0.0  ;;  %v3427_v23 = vadd.f32 %v6356_v51, %v3426_v32  ;;  %v3442_v24 = vadd.f32 %v4405_v29, %v6356_v51  ;;  %v6387_v52 = vadd.f32 %v4408_v26, %v6356_v51 }
 0x4f8   : > { %v4414_v8 = vpop.f32.mrb[76].mxu0  ;;  %v3264_v18 = vsub.f32 %v6064_v4, %v6323_v28  ;;  %v3263_v55 = vsub.f32 %v6067_v49, %v6323_v28  ;;  %v6396_v34 = vadd.f32 %v6356_v51, %v3446_v21  ;;  %v3265_v32 = vsub.f32 %v6083_v63, %v6323_v28 }
 0x4f9   : > { %v3295_v36 = vadd.f32 1e-05, %v3262_v25  ;;  %v3466_v41 = vpop.f32.mrb[77].mxu0  ;;  %v3437_v25 = vadd.f32 %v6356_v51, %v3436_v61  ;;  %v3268_v29 = vsub.f32 %v6092_v17, %v6323_v28  ;;  %v3267_v61 = vsub.f32 %v6098_v11, %v6323_v28 }
 0x4fa   : > { %v3270_v4 = vsub.f32 %v6108_v59, %v6323_v28  ;;  %v3269_v49 = vsub.f32 %v6114_v56, %v6323_v28  ;;  %v3271_v26 = vsub.f32 %v6130_v37, %v6323_v28  ;;  %v3462_v63 = vadd.f32 %v4411_v43, %v6356_v51 }
 0x4fb   : > { %4540 = vrsqrt.f32 %v3295_v36  ;;  %v3422_v36 = vadd.f32 %v4399_v42, %v6356_v51  ;;  %v3266_v42 = vsub.f32 %v6078_v14, %v6323_v28  ;;  %v3272_v14 = vsub.f32 %v6124_v38, %v6323_v28 }
 0x4fc   : > { %v4417_v44 = vpop.f32.mrb[78].mxu0  ;;  %v3457_v21 = vadd.f32 %v6356_v51, %v3456_v39  ;;  %v3472_v17 = vadd.f32 %v4414_v8, %v6356_v51  ;;  %v3467_v11 = vadd.f32 %v6356_v51, %v3466_v41 }
 0x4fd   : > { %v3476_v0 = vpop.f32.mrb[79].mxu0  ;;  %v3482_v13 = vadd.f32 %v4417_v44, %v6356_v51 }
 0x4fe   : > { %v3477_v56 = vadd.f32 %v6356_v51, %v3476_v0 }
 0x500   : > { %v4420_v33 = vpop.f32.mrb[80].mxu0 }
 0x501   : > { %v3486_v15 = vpop.f32.mrb[81].mxu0  ;;  %v6421_v38 = vadd.f32 %v4420_v33, %v6356_v51 }
 0x502   : > { %v6424_v37 = vadd.f32 %v6356_v51, %v3486_v15 }
 0x504   : > { %v4423_v59 = vpop.f32.mrb[82].mxu0 }
 0x505   : > { %v6417_v16 = vpop.eup %4540  ;;  %v6427_v43 = vadd.f32 %v4423_v59, %v6356_v51  ;;  %v6429_v39 = vpop.f32.mrb[83].mxu0 }
 0x506   : > { %v3298_v8 = vmul.f32 %v6417_v16, %v3264_v18  ;;  %v3297_v41 = vmul.f32 %v6417_v16, %v3263_v55  ;;  %v3300_v44 = vmul.f32 %v6417_v16, %v3266_v42  ;;  %v3299_v0 = vmul.f32 %v6417_v16, %v3265_v32 }
 0x507   : > { %v3302_v33 = vmul.f32 %v6417_v16, %v3268_v29  ;;  %v3301_v40 = vmul.f32 %v6417_v16, %v3267_v61  ;;  %v3304_v15 = vmul.f32 %v6417_v16, %v3270_v4  ;;  %v3303_v27 = vmul.f32 %v6417_v16, %v3269_v49 }
 0x508   : > { %v3566_v59 = vadd.f32 %v3412_v46, %v3298_v8  ;;  %v3565_v50 = vadd.f32 %v3407_v62, %v3297_v41  ;;  %v3568_v19 = vadd.f32 %v3422_v36, %v3300_v44  ;;  %v3567_v3 = vadd.f32 %v3417_v53, %v3299_v0  ;;  %v6439_v2 = vpop.f32.mrb[84].mxu0 }
 0x509   : > { %v3570_v18 = vadd.f32 %v3432_v6, %v3302_v33  ;;  %v3569_v55 = vadd.f32 %v3427_v23, %v3301_v40  ;;  %v3572_v42 = vadd.f32 %v3442_v24, %v3304_v15  ;;  %v3571_v32 = vadd.f32 %v3437_v25, %v3303_v27  ;;  %v6448_v46 = vpop.f32.mrb[85].mxu0 }
 0x50a   : > { %v3598_v62 = vmax.f32 %v3566_v59, 0.0  ;;  %v3597_v53 = vmax.f32 %v3565_v50, 0.0  ;;  %v3600_v36 = vmax.f32 %v3568_v19, 0.0  ;;  %v3599_v29 = vmax.f32 %v3567_v3, 0.0 }
 0x50b   : > { %v3602_v61 = vmax.f32 %v3570_v18, 0.0  ;;  %v3601_v4 = vmax.f32 %v3569_v55, 0.0  ;;  %v3604_v49 = vmax.f32 %v3572_v42, 0.0  ;;  %v3603_v8 = vmax.f32 %v3571_v32, 0.0 }
 0x50c   : > { %3630 = vst.msk [vmem:[%s6446_s27 + $0x8] sm:$0xff] %vm3087_vm8, %v3598_v62  ;;  %3629 = vst.msk [vmem:[%s6446_s27] sm:$0xff] %vm3087_vm8, %v3597_v53  ;;  %v3306_v50 = vmul.f32 %v6417_v16, %v3272_v14  ;;  %v3305_v19 = vmul.f32 %v6417_v16, %v3271_v26  ;;  %v6648_v3 = vsub.f32 %v6140_v20, %v6323_v28  ;;  %v4429_v6 = vpop.f32.mrb[86].mxu0 }
 0x50d   : > { %3632 = vst.msk [vmem:[%s6446_s27 + $0x18] sm:$0xff] %vm3087_vm8, %v3600_v36  ;;  %3631 = vst.msk [vmem:[%s6446_s27 + $0x10] sm:$0xff] %vm3087_vm8, %v3599_v29  ;;  %v6649_v40 = vsub.f32 %v6146_v7, %v6323_v28  ;;  %v6650_v23 = vsub.f32 %v6156_v22, %v6323_v28  ;;  %v6651_v25 = vsub.f32 %v6162_v57, %v6323_v28  ;;  %v3516_v0 = vpop.f32.mrb[87].mxu0 }
 0x50e   : > { %v3308_v27 = vmul.f32 %v6417_v16, %v6648_v3  ;;  %3634 = vst.msk [vmem:[%s6446_s27 + $0x28] sm:$0xff] %vm3087_vm8, %v3602_v61  ;;  %3633 = vst.msk [vmem:[%s6446_s27 + $0x20] sm:$0xff] %vm3087_vm8, %v3601_v4  ;;  %v6652_v14 = vsub.f32 %v6172_v45, %v6323_v28  ;;  %v6653_v41 = vsub.f32 %v6178_v48, %v6323_v28 }
 0x50f   : > { %v3307_v24 = vmul.f32 %v6417_v16, %v6649_v40  ;;  %3636 = vst.msk [vmem:[%s6446_s27 + $0x38] sm:$0xff] %vm3087_vm8, %v3604_v49  ;;  %3635 = vst.msk [vmem:[%s6446_s27 + $0x30] sm:$0xff] %vm3087_vm8, %v3603_v8  ;;  %v3310_v20 = vmul.f32 %v6417_v16, %v6650_v23  ;;  %v3309_v7 = vmul.f32 %v6417_v16, %v6651_v25 }
 0x510   : > { %v3312_v26 = vmul.f32 %v6417_v16, %v6652_v14  ;;  %v3311_v44 = vmul.f32 %v6417_v16, %v6653_v41  ;;  %v3574_v22 = vadd.f32 %v6387_v52, %v3306_v50  ;;  %v3573_v33 = vadd.f32 %v6396_v34, %v3305_v19  ;;  %v4432_v53 = vpop.f32.mrb[88].mxu0 }
 0x511   : > { %v3576_v15 = vadd.f32 %v3462_v63, %v3308_v27  ;;  %v3575_v57 = vadd.f32 %v3457_v21, %v3307_v24  ;;  %v3578_v59 = vadd.f32 %v3472_v17, %v3310_v20  ;;  %v3577_v18 = vadd.f32 %v3467_v11, %v3309_v7  ;;  %v3526_v36 = vpop.f32.mrb[89].mxu0 }
 0x512   : > { %v3580_v45 = vadd.f32 %v3482_v13, %v3312_v26  ;;  %v3579_v55 = vadd.f32 %v3477_v56, %v3311_v44  ;;  %v3606_v42 = vmax.f32 %v3574_v22, 0.0  ;;  %v3605_v32 = vmax.f32 %v3573_v33, 0.0 }
 0x513   : > { %v3608_v48 = vmax.f32 %v3576_v15, 0.0  ;;  %v3607_v62 = vmax.f32 %v3575_v57, 0.0  ;;  %v3610_v52 = vmax.f32 %v3578_v59, 0.0  ;;  %v3609_v34 = vmax.f32 %v3577_v18, 0.0 }
 0x514   : > { %v3612_v63 = vmax.f32 %v3580_v45, 0.0  ;;  %v3611_v21 = vmax.f32 %v3579_v55, 0.0  ;;  %3638 = vst.msk [vmem:[%s6446_s27 + $0x48] sm:$0xff] %vm3087_vm8, %v3606_v42  ;;  %3637 = vst.msk [vmem:[%s6446_s27 + $0x40] sm:$0xff] %vm3087_vm8, %v3605_v32  ;;  %v6654_v13 = vsub.f32 %v6188_v5, %v6323_v28  ;;  %v6655_v11 = vsub.f32 %v6194_v9, %v6323_v28 }
 0x515   : > { %3640 = vst.msk [vmem:[%s6446_s27 + $0x58] sm:$0xff] %vm3087_vm8, %v3608_v48  ;;  %3639 = vst.msk [vmem:[%s6446_s27 + $0x50] sm:$0xff] %vm3087_vm8, %v3607_v62  ;;  %v6656_v29 = vsub.f32 %v6204_v31, %v6323_v28  ;;  %v6657_v4 = vsub.f32 %v6210_v1, %v6323_v28  ;;  %v3497_v5 = vadd.f32 %v6356_v51, %v6429_v39  ;;  %v4435_v39 = vpop.f32.mrb[90].mxu0 }
 0x516   : > { %v3314_v17 = vmul.f32 %v6417_v16, %v6654_v13  ;;  %v3313_v56 = vmul.f32 %v6417_v16, %v6655_v11  ;;  %3642 = vst.msk [vmem:[%s6446_s27 + $0x68] sm:$0xff] %vm3087_vm8, %v3610_v52  ;;  %3641 = vst.msk [vmem:[%s6446_s27 + $0x60] sm:$0xff] %vm3087_vm8, %v3609_v34  ;;  %v6658_v9 = vsub.f32 %v6220_v12, %v6323_v28  ;;  %v3536_v23 = vpop.f32.mrb[91].mxu0  ;;  %v6668_v13 = vld [vmem:[#allocation4_spill] sm:$0xff] }
 0x517   : > { %v3316_v61 = vmul.f32 %v6417_v16, %v6656_v29  ;;  %v3315_v49 = vmul.f32 %v6417_v16, %v6657_v4  ;;  %3644 = vst.msk [vmem:[%s6446_s27 + $0x78] sm:$0xff] %vm3087_vm8, %v3612_v63  ;;  %3643 = vst.msk [vmem:[%s6446_s27 + $0x70] sm:$0xff] %vm3087_vm8, %v3611_v21  ;;  %v3512_v1 = vadd.f32 %v6439_v2, %v6356_v51 }
 0x518   : > { %v3318_v31 = vmul.f32 %v6417_v16, %v6658_v9  ;;  %v6659_v8 = vsub.f32 %v6226_v35, %v6323_v28  ;;  %v3582_v19 = vadd.f32 %v6421_v38, %v3314_v17  ;;  %v3581_v3 = vadd.f32 %v6424_v37, %v3313_v56  ;;  %v4438_v33 = vpop.f32.mrb[92].mxu0 }
 0x519   : > { %v3584_v27 = vadd.f32 %v6427_v43, %v3316_v61  ;;  %v3507_v12 = vadd.f32 %v6356_v51, %v6448_v46  ;;  %v3583_v40 = vadd.f32 %v3497_v5, %v3315_v49  ;;  %v6660_v35 = vsub.f32 %v6236_v47, %v6323_v28  ;;  %v3546_v45 = vpop.f32.mrb[93].mxu0 }
 0x51a   : > { %v3317_v50 = vmul.f32 %v6417_v16, %v6659_v8  ;;  %v3586_v2 = vadd.f32 %v3512_v1, %v3318_v31  ;;  %v3522_v38 = vadd.f32 %v4429_v6, %v6356_v51  ;;  %v3614_v37 = vmax.f32 %v3582_v19, 0.0  ;;  %v6670_v31 = vld [vmem:[#allocation5_spill] sm:$0xff]  ;;  %v6672_v19 = vld [vmem:[#allocation6_spill] sm:$0xff] }
 0x51b   : > { %v3320_v24 = vmul.f32 %v6417_v16, %v6660_v35  ;;  %v3613_v43 = vmax.f32 %v3581_v3, 0.0  ;;  %v3616_v20 = vmax.f32 %v3584_v27, 0.0  ;;  %v3615_v46 = vmax.f32 %v3583_v40, 0.0 }
 0x51c   : > { %v3585_v25 = vadd.f32 %v3507_v12, %v3317_v50  ;;  %v3618_v7 = vmax.f32 %v3586_v2, 0.0  ;;  %v6661_v26 = vsub.f32 %v6242_v58, %v6323_v28  ;;  %3646 = vst.msk [vmem:[%s6446_s27 + $0x88] sm:$0xff] %vm3087_vm8, %v3614_v37  ;;  %v3517_v6 = vadd.f32 %v6356_v51, %v3516_v0  ;;  %v4441_v56 = vpop.f32.mrb[94].mxu0 }
 0x51d   : > { %v3588_v14 = vadd.f32 %v3522_v38, %v3320_v24  ;;  %3645 = vst.msk [vmem:[%s6446_s27 + $0x80] sm:$0xff] %vm3087_vm8, %v3613_v43  ;;  %3648 = vst.msk [vmem:[%s6446_s27 + $0x98] sm:$0xff] %vm3087_vm8, %v3616_v20  ;;  %v6662_v44 = vsub.f32 %v6252_v30, %v6323_v28  ;;  %v3532_v58 = vadd.f32 %v4432_v53, %v6356_v51  ;;  %v6666_v53 = vld [vmem:[#allocation3_spill] sm:$0xff]  ;;  %v3556_v5 = vpop.f32.mrb[95].mxu0 }
 0x51e   : > { %v3319_v41 = vmul.f32 %v6417_v16, %v6661_v26  ;;  %v3617_v47 = vmax.f32 %v3585_v25, 0.0  ;;  %3647 = vst.msk [vmem:[%s6446_s27 + $0x90] sm:$0xff] %vm3087_vm8, %v3615_v46  ;;  %3650 = vst.msk [vmem:[%s6446_s27 + $0xa8] sm:$0xff] %vm3087_vm8, %v3618_v7  ;;  %v6663_v57 = vsub.f32 %v6258_v60, %v6323_v28  ;;  %v3527_v0 = vadd.f32 %v6356_v51, %v3526_v36 }
 0x51f   : > { %v3322_v22 = vmul.f32 %v6417_v16, %v6662_v44  ;;  %v3620_v15 = vmax.f32 %v3588_v14, 0.0  ;;  %v6664_v30 = vsub.f32 %v6268_v54, %v6323_v28  ;;  %v3542_v32 = vadd.f32 %v4435_v39, %v6356_v51 }
 0x520   : > { %v3321_v59 = vmul.f32 %v6417_v16, %v6663_v57  ;;  %3649 = vst.msk [vmem:[%s6446_s27 + $0xa0] sm:$0xff] %vm3087_vm8, %v3617_v47  ;;  %v3587_v55 = vadd.f32 %v3517_v6, %v3319_v41  ;;  %v6665_v48 = vsub.f32 %v6274_v10, %v6323_v28  ;;  %v3537_v54 = vadd.f32 %v6356_v51, %v3536_v23 }
 0x521   : > { %v3324_v18 = vmul.f32 %v6417_v16, %v6664_v30  ;;  %v3590_v42 = vadd.f32 %v3532_v58, %v3322_v22  ;;  %3652 = vst.msk [vmem:[%s6446_s27 + $0xb8] sm:$0xff] %vm3087_vm8, %v3620_v15  ;;  %v6667_v52 = vsub.f32 %v6666_v53, %v6323_v28  ;;  %v3552_v63 = vadd.f32 %v4438_v33, %v6356_v51 }
 0x522   : > { %v3323_v60 = vmul.f32 %v6417_v16, %v6665_v48  ;;  %v3589_v62 = vadd.f32 %v3527_v0, %v3321_v59  ;;  %v3619_v21 = vmax.f32 %v3587_v55, 0.0  ;;  %v6669_v17 = vsub.f32 %v6668_v13, %v6323_v28 }
 0x523   : > { %v3326_v34 = vmul.f32 %v6417_v16, %v6667_v52  ;;  %v3622_v36 = vmax.f32 %v3590_v42, 0.0  ;;  %v3592_v10 = vadd.f32 %v3542_v32, %v3324_v18  ;;  %v3547_v49 = vadd.f32 %v6356_v51, %v3546_v45 }
 0x524   : > { %v3325_v11 = vmul.f32 %v6417_v16, %v6669_v17  ;;  %v3621_v29 = vmax.f32 %v3589_v62, 0.0  ;;  %v3591_v61 = vadd.f32 %v3537_v54, %v3323_v60  ;;  %3651 = vst.msk [vmem:[%s6446_s27 + $0xb0] sm:$0xff] %vm3087_vm8, %v3619_v21  ;;  %v6671_v1 = vsub.f32 %v6670_v31, %v6323_v28 }
 0x525   : > { %v3594_v4 = vadd.f32 %v3552_v63, %v3326_v34  ;;  %3654 = vst.msk [vmem:[%s6446_s27 + $0xc8] sm:$0xff] %vm3087_vm8, %v3622_v36  ;;  %v3624_v9 = vmax.f32 %v3592_v10, 0.0  ;;  %v3562_v50 = vadd.f32 %v4441_v56, %v6356_v51  ;;  %v6673_v3 = vsub.f32 %v6672_v19, %v6323_v28 }
 0x526   : > { %v3328_v8 = vmul.f32 %v6417_v16, %v6671_v1  ;;  %3653 = vst.msk [vmem:[%s6446_s27 + $0xc0] sm:$0xff] %vm3087_vm8, %v3621_v29  ;;  %v3623_v12 = vmax.f32 %v3591_v61, 0.0  ;;  %v3593_v40 = vadd.f32 %v3547_v49, %v3325_v11  ;;  %v3557_v2 = vadd.f32 %v6356_v51, %v3556_v5 }
 0x527   : > { %v3327_v27 = vmul.f32 %v6417_v16, %v6673_v3  ;;  %v3626_v39 = vmax.f32 %v3594_v4, 0.0  ;;  %3656 = vst.msk [vmem:[%s6446_s27 + $0xd8] sm:$0xff] %vm3087_vm8, %v3624_v9 }
 0x528   : > { %v3596_v35 = vadd.f32 %v3562_v50, %v3328_v8  ;;  %3655 = vst.msk [vmem:[%s6446_s27 + $0xd0] sm:$0xff] %vm3087_vm8, %v3623_v12  ;;  %v3625_v24 = vmax.f32 %v3593_v40, 0.0 }
 0x529   : > { %3658 = vst.msk [vmem:[%s6446_s27 + $0xe8] sm:$0xff] %vm3087_vm8, %v3626_v39  ;;  %v3595_v28 = vadd.f32 %v3557_v2, %v3327_v27 }
 0x52a   : > { %v3628_v38 = vmax.f32 %v3596_v35, 0.0  ;;  %3657 = vst.msk [vmem:[%s6446_s27 + $0xe0] sm:$0xff] %vm3087_vm8, %v3625_v24 }
 0x52b   : > { %v3627_v16 = vmax.f32 %v3595_v28, 0.0 }
 0x52c   : > { %3660 = vst.msk [vmem:[%s6446_s27 + $0xf8] sm:$0xff] %vm3087_vm8, %v3628_v38 }
 0x52d   : > { %3659 = vst.msk [vmem:[%s6446_s27 + $0xf0] sm:$0xff] %vm3087_vm8, %v3627_v16 }
 0x52e PF: > { %s19_s30 = sadd.s32 1, %s4580_s30  }
 0x52f   : > { %p16_p4 = scmp.ge.s32.totalorder %s19_s30, 4  }
 0x531   :  { %18 = sbr.rel (!%p16_p4) target bundleno = 1 (0x1), region = 89 }

</bundles_post_ra>
